<compile_context>
chip_gen: v7x
topology: tpu7x:2x2x1
jax: 0.10.0
libtpu: 0.0.40
codegen_flags: <defaults>
</compile_context>

<pallas_src>
import jax
import jax.numpy as jnp
from jax import lax
from jax.experimental import pallas as pl
from jax.experimental.pallas import tpu as pltpu


def _make_fused_conv_kernel(N, C0, C2, H, W, KE):
    """Single effective KE x KE valid conv, NCHW layout, VPU scalar-weight MACs."""
    H2, W2 = H - KE + 1, W - KE + 1

    def kernel(w_ref, b_ref, x_ref, o_ref):
        # w_ref: SMEM f32[C2*C0*KE*KE]  (flattened effective weights)
        # b_ref: SMEM f32[C2]           (effective bias)
        # x_ref: VMEM f32[N, C0, H, W]
        # o_ref: VMEM f32[N, C2, H2, W2]

        # f32 accumulators, one (N, H2, W2) slab per output channel,
        # initialized with the effective bias (scalar splat from SMEM).
        accs = [jnp.full((N, H2, W2), b_ref[c2], dtype=jnp.float32)
                for c2 in range(C2)]

        for ci in range(C0):
            planes = x_ref[:, ci, :, :]                  # (N, H, W) VMEM load
            for kh in range(KE):
                # hoisted sublane (row) shift: once per kh, not per (kh, kw)
                rows = planes[:, kh:kh + H2, :]          # (N, H2, W)
                for kw in range(KE):
                    window = rows[:, :, kw:kw + W2]      # lane shift -> XLU slot
                    for c2 in range(C2):
                        widx = ((c2 * C0 + ci) * KE + kh) * KE + kw
                        accs[c2] = accs[c2] + w_ref[widx] * window

        for c2 in range(C2):
            o_ref[:, c2, :, :] = accs[c2]

    return kernel, H2, W2


@jax.jit
def model_a_forward(x, w1, b1, w2, b2):
    """x: [N, 2, H, W] float32 (NCHW, PyTorch convention).
    w1: [5, 2, 3, 3] (OIHW), b1: [5], w2: [2, 5, 3, 3] (OIHW), b2: [2].
    Returns [N, 2, H-4, W-4] (NCHW)."""
    N, C0, H, W = x.shape
    K = w1.shape[-1]
    C2 = w2.shape[0]
    KE = 2 * K - 1                                       # 5x5 effective kernel

    w1f = w1.astype(jnp.float32)
    w2f = w2.astype(jnp.float32)

    # --- compose conv2 ∘ conv1 into one effective conv (plain XLA, tiny) ---
    # W_eff[c2, ci, p+a, q+b] += sum_c1 w2[c2, c1, p, q] * w1[c1, ci, a, b]
    w_eff = jnp.zeros((C2, C0, KE, KE), jnp.float32)
    for p in range(K):
        for q in range(K):
            contrib = jnp.einsum('oc,cikl->oikl', w2f[:, :, p, q], w1f)
            w_eff = w_eff.at[:, :, p:p + K, q:q + K].add(contrib)
    b_eff = (jnp.einsum('ocpq,c->o', w2f, b1.astype(jnp.float32))
             + b2.astype(jnp.float32))

    w_flat = w_eff.reshape(-1)                           # f32[C2*C0*KE*KE]

    kernel, H2, W2 = _make_fused_conv_kernel(N, C0, C2, H, W, KE)

    out = pl.pallas_call(
        kernel,
        out_shape=jax.ShapeDtypeStruct((N, C2, H2, W2), jnp.float32),
        in_specs=[
            pl.BlockSpec(memory_space=pltpu.MemorySpace.SMEM),   # weights
            pl.BlockSpec(memory_space=pltpu.MemorySpace.SMEM),   # bias
            pl.BlockSpec(memory_space=pltpu.MemorySpace.VMEM),   # x (whole batch)
        ],
        out_specs=pl.BlockSpec(memory_space=pltpu.MemorySpace.VMEM),
    )(w_flat, b_eff, x.astype(jnp.float32))
    return out


def _reference_forward(x, w1, b1, w2, b2):
    """Pure-JAX reference: the original two 3x3 convs (lax.conv)."""
    dn1 = lax.conv_dimension_numbers(x.shape, w1.shape, ("NCHW", "OIHW", "NCHW"))
    y = lax.conv_general_dilated(x, w1, (1, 1), "VALID", dimension_numbers=dn1)
    y = y + b1.reshape(1, -1, 1, 1)
    dn2 = lax.conv_dimension_numbers(y.shape, w2.shape, ("NCHW", "OIHW", "NCHW"))
    z = lax.conv_general_dilated(y, w2, (1, 1), "VALID", dimension_numbers=dn2)
    z = z + b2.reshape(1, -1, 1, 1)
    return z


if __name__ == "__main__":
    key = jax.random.PRNGKey(0)
    k_x, k_w1, k_b1, k_w2, k_b2 = jax.random.split(key, 5)

    # Small shapes consistent with the module: N=2, Cin=2, H=W=16.
    N, C0, H, W = 2, 2, 16, 16
    C1, C2, K = 5, 2, 3

    x = jax.random.normal(k_x, (N, C0, H, W), dtype=jnp.float32)

    # Deterministic parameter init in PyTorch OIHW layout.
    w1 = 0.1 * jax.random.normal(k_w1, (C1, C0, K, K), dtype=jnp.float32)
    b1 = 0.1 * jax.random.normal(k_b1, (C1,), dtype=jnp.float32)
    w2 = 0.1 * jax.random.normal(k_w2, (C2, C1, K, K), dtype=jnp.float32)
    b2 = 0.1 * jax.random.normal(k_b2, (C2,), dtype=jnp.float32)

    out = model_a_forward(x, w1, b1, w2, b2)
    out = jax.block_until_ready(out)

    ref = _reference_forward(x, w1, b1, w2, b2)
    assert out.shape == (N, C2, H - 2 * (K - 1), W - 2 * (K - 1)), out.shape
    # Composition changes f32 summation order slightly; 1e-4 tolerance is ample.
    assert jnp.allclose(out, ref, atol=1e-4, rtol=1e-4), "mismatch vs reference"

    print("KERNEL_OK")
</pallas_src>

<mosaic_0001>
module attributes {stable_mosaic.version = 11 : i64} {
  func.func @kernel(%arg0: memref<100xf32, #tpu.memory_space<smem>>, %arg1: memref<2xf32, #tpu.memory_space<smem>>, %arg2: memref<2x2x16x16xf32, #tpu.memory_space<vmem>>, %arg3: memref<2x2x12x12xf32, #tpu.memory_space<vmem>>) attributes {dimension_semantics = [], scalar_prefetch = 0 : i64, scratch_operands = 0 : i64, tpu.core_type = #tpu.core_type<tc>} {
    %c0 = arith.constant 0 : index
    %0 = memref.load %arg1[%c0] : memref<2xf32, #tpu.memory_space<smem>>
    %1 = vector.broadcast %0 : f32 to vector<2x12x12xf32>
    %c1 = arith.constant 1 : index
    %2 = memref.load %arg1[%c1] : memref<2xf32, #tpu.memory_space<smem>>
    %3 = vector.broadcast %2 : f32 to vector<2x12x12xf32>
    %c0_0 = arith.constant 0 : index
    %c0_1 = arith.constant 0 : index
    %c0_2 = arith.constant 0 : index
    %c0_3 = arith.constant 0 : index
    %4 = vector.load %arg2[%c0_0, %c0_1, %c0_2, %c0_3] : memref<2x2x16x16xf32, #tpu.memory_space<vmem>>, vector<2x1x16x16xf32>
    %5 = vector.shape_cast %4 : vector<2x1x16x16xf32> to vector<2x16x16xf32>
    %6 = vector.extract_strided_slice %5 {offsets = [0, 0, 0], sizes = [2, 12, 16], strides = [1, 1, 1]} : vector<2x16x16xf32> to vector<2x12x16xf32>
    %7 = vector.extract_strided_slice %6 {offsets = [0, 0, 0], sizes = [2, 12, 12], strides = [1, 1, 1]} : vector<2x12x16xf32> to vector<2x12x12xf32>
    %c0_4 = arith.constant 0 : index
    %8 = memref.load %arg0[%c0_4] : memref<100xf32, #tpu.memory_space<smem>>
    %9 = vector.broadcast %8 : f32 to vector<2x12x12xf32>
    %10 = arith.mulf %9, %7 : vector<2x12x12xf32>
    %11 = arith.addf %1, %10 : vector<2x12x12xf32>
    %c50 = arith.constant 50 : index
    %12 = memref.load %arg0[%c50] : memref<100xf32, #tpu.memory_space<smem>>
    %13 = vector.broadcast %12 : f32 to vector<2x12x12xf32>
    %14 = arith.mulf %13, %7 : vector<2x12x12xf32>
    %15 = arith.addf %3, %14 : vector<2x12x12xf32>
    %16 = vector.extract_strided_slice %6 {offsets = [0, 0, 1], sizes = [2, 12, 12], strides = [1, 1, 1]} : vector<2x12x16xf32> to vector<2x12x12xf32>
    %c1_5 = arith.constant 1 : index
    %17 = memref.load %arg0[%c1_5] : memref<100xf32, #tpu.memory_space<smem>>
    %18 = vector.broadcast %17 : f32 to vector<2x12x12xf32>
    %19 = arith.mulf %18, %16 : vector<2x12x12xf32>
    %20 = arith.addf %11, %19 : vector<2x12x12xf32>
    %c51 = arith.constant 51 : index
    %21 = memref.load %arg0[%c51] : memref<100xf32, #tpu.memory_space<smem>>
    %22 = vector.broadcast %21 : f32 to vector<2x12x12xf32>
    %23 = arith.mulf %22, %16 : vector<2x12x12xf32>
    %24 = arith.addf %15, %23 : vector<2x12x12xf32>
    %25 = vector.extract_strided_slice %6 {offsets = [0, 0, 2], sizes = [2, 12, 12], strides = [1, 1, 1]} : vector<2x12x16xf32> to vector<2x12x12xf32>
    %c2 = arith.constant 2 : index
    %26 = memref.load %arg0[%c2] : memref<100xf32, #tpu.memory_space<smem>>
    %27 = vector.broadcast %26 : f32 to vector<2x12x12xf32>
    %28 = arith.mulf %27, %25 : vector<2x12x12xf32>
    %29 = arith.addf %20, %28 : vector<2x12x12xf32>
    %c52 = arith.constant 52 : index
    %30 = memref.load %arg0[%c52] : memref<100xf32, #tpu.memory_space<smem>>
    %31 = vector.broadcast %30 : f32 to vector<2x12x12xf32>
    %32 = arith.mulf %31, %25 : vector<2x12x12xf32>
    %33 = arith.addf %24, %32 : vector<2x12x12xf32>
    %34 = vector.extract_strided_slice %6 {offsets = [0, 0, 3], sizes = [2, 12, 12], strides = [1, 1, 1]} : vector<2x12x16xf32> to vector<2x12x12xf32>
    %c3 = arith.constant 3 : index
    %35 = memref.load %arg0[%c3] : memref<100xf32, #tpu.memory_space<smem>>
    %36 = vector.broadcast %35 : f32 to vector<2x12x12xf32>
    %37 = arith.mulf %36, %34 : vector<2x12x12xf32>
    %38 = arith.addf %29, %37 : vector<2x12x12xf32>
    %c53 = arith.constant 53 : index
    %39 = memref.load %arg0[%c53] : memref<100xf32, #tpu.memory_space<smem>>
    %40 = vector.broadcast %39 : f32 to vector<2x12x12xf32>
    %41 = arith.mulf %40, %34 : vector<2x12x12xf32>
    %42 = arith.addf %33, %41 : vector<2x12x12xf32>
    %43 = vector.extract_strided_slice %6 {offsets = [0, 0, 4], sizes = [2, 12, 12], strides = [1, 1, 1]} : vector<2x12x16xf32> to vector<2x12x12xf32>
    %c4 = arith.constant 4 : index
    %44 = memref.load %arg0[%c4] : memref<100xf32, #tpu.memory_space<smem>>
    %45 = vector.broadcast %44 : f32 to vector<2x12x12xf32>
    %46 = arith.mulf %45, %43 : vector<2x12x12xf32>
    %47 = arith.addf %38, %46 : vector<2x12x12xf32>
    %c54 = arith.constant 54 : index
    %48 = memref.load %arg0[%c54] : memref<100xf32, #tpu.memory_space<smem>>
    %49 = vector.broadcast %48 : f32 to vector<2x12x12xf32>
    %50 = arith.mulf %49, %43 : vector<2x12x12xf32>
    %51 = arith.addf %42, %50 : vector<2x12x12xf32>
    %52 = vector.extract_strided_slice %5 {offsets = [0, 1, 0], sizes = [2, 12, 16], strides = [1, 1, 1]} : vector<2x16x16xf32> to vector<2x12x16xf32>
    %53 = vector.extract_strided_slice %52 {offsets = [0, 0, 0], sizes = [2, 12, 12], strides = [1, 1, 1]} : vector<2x12x16xf32> to vector<2x12x12xf32>
    %c5 = arith.constant 5 : index
    %54 = memref.load %arg0[%c5] : memref<100xf32, #tpu.memory_space<smem>>
    %55 = vector.broadcast %54 : f32 to vector<2x12x12xf32>
    %56 = arith.mulf %55, %53 : vector<2x12x12xf32>
    %57 = arith.addf %47, %56 : vector<2x12x12xf32>
    %c55 = arith.constant 55 : index
    %58 = memref.load %arg0[%c55] : memref<100xf32, #tpu.memory_space<smem>>
    %59 = vector.broadcast %58 : f32 to vector<2x12x12xf32>
    %60 = arith.mulf %59, %53 : vector<2x12x12xf32>
    %61 = arith.addf %51, %60 : vector<2x12x12xf32>
    %62 = vector.extract_strided_slice %52 {offsets = [0, 0, 1], sizes = [2, 12, 12], strides = [1, 1, 1]} : vector<2x12x16xf32> to vector<2x12x12xf32>
    %c6 = arith.constant 6 : index
    %63 = memref.load %arg0[%c6] : memref<100xf32, #tpu.memory_space<smem>>
    %64 = vector.broadcast %63 : f32 to vector<2x12x12xf32>
    %65 = arith.mulf %64, %62 : vector<2x12x12xf32>
    %66 = arith.addf %57, %65 : vector<2x12x12xf32>
    %c56 = arith.constant 56 : index
    %67 = memref.load %arg0[%c56] : memref<100xf32, #tpu.memory_space<smem>>
    %68 = vector.broadcast %67 : f32 to vector<2x12x12xf32>
    %69 = arith.mulf %68, %62 : vector<2x12x12xf32>
    %70 = arith.addf %61, %69 : vector<2x12x12xf32>
    %71 = vector.extract_strided_slice %52 {offsets = [0, 0, 2], sizes = [2, 12, 12], strides = [1, 1, 1]} : vector<2x12x16xf32> to vector<2x12x12xf32>
    %c7 = arith.constant 7 : index
    %72 = memref.load %arg0[%c7] : memref<100xf32, #tpu.memory_space<smem>>
    %73 = vector.broadcast %72 : f32 to vector<2x12x12xf32>
    %74 = arith.mulf %73, %71 : vector<2x12x12xf32>
    %75 = arith.addf %66, %74 : vector<2x12x12xf32>
    %c57 = arith.constant 57 : index
    %76 = memref.load %arg0[%c57] : memref<100xf32, #tpu.memory_space<smem>>
    %77 = vector.broadcast %76 : f32 to vector<2x12x12xf32>
    %78 = arith.mulf %77, %71 : vector<2x12x12xf32>
    %79 = arith.addf %70, %78 : vector<2x12x12xf32>
    %80 = vector.extract_strided_slice %52 {offsets = [0, 0, 3], sizes = [2, 12, 12], strides = [1, 1, 1]} : vector<2x12x16xf32> to vector<2x12x12xf32>
    %c8 = arith.constant 8 : index
    %81 = memref.load %arg0[%c8] : memref<100xf32, #tpu.memory_space<smem>>
    %82 = vector.broadcast %81 : f32 to vector<2x12x12xf32>
    %83 = arith.mulf %82, %80 : vector<2x12x12xf32>
    %84 = arith.addf %75, %83 : vector<2x12x12xf32>
    %c58 = arith.constant 58 : index
    %85 = memref.load %arg0[%c58] : memref<100xf32, #tpu.memory_space<smem>>
    %86 = vector.broadcast %85 : f32 to vector<2x12x12xf32>
    %87 = arith.mulf %86, %80 : vector<2x12x12xf32>
    %88 = arith.addf %79, %87 : vector<2x12x12xf32>
    %89 = vector.extract_strided_slice %52 {offsets = [0, 0, 4], sizes = [2, 12, 12], strides = [1, 1, 1]} : vector<2x12x16xf32> to vector<2x12x12xf32>
    %c9 = arith.constant 9 : index
    %90 = memref.load %arg0[%c9] : memref<100xf32, #tpu.memory_space<smem>>
    %91 = vector.broadcast %90 : f32 to vector<2x12x12xf32>
    %92 = arith.mulf %91, %89 : vector<2x12x12xf32>
    %93 = arith.addf %84, %92 : vector<2x12x12xf32>
    %c59 = arith.constant 59 : index
    %94 = memref.load %arg0[%c59] : memref<100xf32, #tpu.memory_space<smem>>
    %95 = vector.broadcast %94 : f32 to vector<2x12x12xf32>
    %96 = arith.mulf %95, %89 : vector<2x12x12xf32>
    %97 = arith.addf %88, %96 : vector<2x12x12xf32>
    %98 = vector.extract_strided_slice %5 {offsets = [0, 2, 0], sizes = [2, 12, 16], strides = [1, 1, 1]} : vector<2x16x16xf32> to vector<2x12x16xf32>
    %99 = vector.extract_strided_slice %98 {offsets = [0, 0, 0], sizes = [2, 12, 12], strides = [1, 1, 1]} : vector<2x12x16xf32> to vector<2x12x12xf32>
    %c10 = arith.constant 10 : index
    %100 = memref.load %arg0[%c10] : memref<100xf32, #tpu.memory_space<smem>>
    %101 = vector.broadcast %100 : f32 to vector<2x12x12xf32>
    %102 = arith.mulf %101, %99 : vector<2x12x12xf32>
    %103 = arith.addf %93, %102 : vector<2x12x12xf32>
    %c60 = arith.constant 60 : index
    %104 = memref.load %arg0[%c60] : memref<100xf32, #tpu.memory_space<smem>>
    %105 = vector.broadcast %104 : f32 to vector<2x12x12xf32>
    %106 = arith.mulf %105, %99 : vector<2x12x12xf32>
    %107 = arith.addf %97, %106 : vector<2x12x12xf32>
    %108 = vector.extract_strided_slice %98 {offsets = [0, 0, 1], sizes = [2, 12, 12], strides = [1, 1, 1]} : vector<2x12x16xf32> to vector<2x12x12xf32>
    %c11 = arith.constant 11 : index
    %109 = memref.load %arg0[%c11] : memref<100xf32, #tpu.memory_space<smem>>
    %110 = vector.broadcast %109 : f32 to vector<2x12x12xf32>
    %111 = arith.mulf %110, %108 : vector<2x12x12xf32>
    %112 = arith.addf %103, %111 : vector<2x12x12xf32>
    %c61 = arith.constant 61 : index
    %113 = memref.load %arg0[%c61] : memref<100xf32, #tpu.memory_space<smem>>
    %114 = vector.broadcast %113 : f32 to vector<2x12x12xf32>
    %115 = arith.mulf %114, %108 : vector<2x12x12xf32>
    %116 = arith.addf %107, %115 : vector<2x12x12xf32>
    %117 = vector.extract_strided_slice %98 {offsets = [0, 0, 2], sizes = [2, 12, 12], strides = [1, 1, 1]} : vector<2x12x16xf32> to vector<2x12x12xf32>
    %c12 = arith.constant 12 : index
    %118 = memref.load %arg0[%c12] : memref<100xf32, #tpu.memory_space<smem>>
    %119 = vector.broadcast %118 : f32 to vector<2x12x12xf32>
    %120 = arith.mulf %119, %117 : vector<2x12x12xf32>
    %121 = arith.addf %112, %120 : vector<2x12x12xf32>
    %c62 = arith.constant 62 : index
    %122 = memref.load %arg0[%c62] : memref<100xf32, #tpu.memory_space<smem>>
    %123 = vector.broadcast %122 : f32 to vector<2x12x12xf32>
    %124 = arith.mulf %123, %117 : vector<2x12x12xf32>
    %125 = arith.addf %116, %124 : vector<2x12x12xf32>
    %126 = vector.extract_strided_slice %98 {offsets = [0, 0, 3], sizes = [2, 12, 12], strides = [1, 1, 1]} : vector<2x12x16xf32> to vector<2x12x12xf32>
    %c13 = arith.constant 13 : index
    %127 = memref.load %arg0[%c13] : memref<100xf32, #tpu.memory_space<smem>>
    %128 = vector.broadcast %127 : f32 to vector<2x12x12xf32>
    %129 = arith.mulf %128, %126 : vector<2x12x12xf32>
    %130 = arith.addf %121, %129 : vector<2x12x12xf32>
    %c63 = arith.constant 63 : index
    %131 = memref.load %arg0[%c63] : memref<100xf32, #tpu.memory_space<smem>>
    %132 = vector.broadcast %131 : f32 to vector<2x12x12xf32>
    %133 = arith.mulf %132, %126 : vector<2x12x12xf32>
    %134 = arith.addf %125, %133 : vector<2x12x12xf32>
    %135 = vector.extract_strided_slice %98 {offsets = [0, 0, 4], sizes = [2, 12, 12], strides = [1, 1, 1]} : vector<2x12x16xf32> to vector<2x12x12xf32>
    %c14 = arith.constant 14 : index
    %136 = memref.load %arg0[%c14] : memref<100xf32, #tpu.memory_space<smem>>
    %137 = vector.broadcast %136 : f32 to vector<2x12x12xf32>
    %138 = arith.mulf %137, %135 : vector<2x12x12xf32>
    %139 = arith.addf %130, %138 : vector<2x12x12xf32>
    %c64 = arith.constant 64 : index
    %140 = memref.load %arg0[%c64] : memref<100xf32, #tpu.memory_space<smem>>
    %141 = vector.broadcast %140 : f32 to vector<2x12x12xf32>
    %142 = arith.mulf %141, %135 : vector<2x12x12xf32>
    %143 = arith.addf %134, %142 : vector<2x12x12xf32>
    %144 = vector.extract_strided_slice %5 {offsets = [0, 3, 0], sizes = [2, 12, 16], strides = [1, 1, 1]} : vector<2x16x16xf32> to vector<2x12x16xf32>
    %145 = vector.extract_strided_slice %144 {offsets = [0, 0, 0], sizes = [2, 12, 12], strides = [1, 1, 1]} : vector<2x12x16xf32> to vector<2x12x12xf32>
    %c15 = arith.constant 15 : index
    %146 = memref.load %arg0[%c15] : memref<100xf32, #tpu.memory_space<smem>>
    %147 = vector.broadcast %146 : f32 to vector<2x12x12xf32>
    %148 = arith.mulf %147, %145 : vector<2x12x12xf32>
    %149 = arith.addf %139, %148 : vector<2x12x12xf32>
    %c65 = arith.constant 65 : index
    %150 = memref.load %arg0[%c65] : memref<100xf32, #tpu.memory_space<smem>>
    %151 = vector.broadcast %150 : f32 to vector<2x12x12xf32>
    %152 = arith.mulf %151, %145 : vector<2x12x12xf32>
    %153 = arith.addf %143, %152 : vector<2x12x12xf32>
    %154 = vector.extract_strided_slice %144 {offsets = [0, 0, 1], sizes = [2, 12, 12], strides = [1, 1, 1]} : vector<2x12x16xf32> to vector<2x12x12xf32>
    %c16 = arith.constant 16 : index
    %155 = memref.load %arg0[%c16] : memref<100xf32, #tpu.memory_space<smem>>
    %156 = vector.broadcast %155 : f32 to vector<2x12x12xf32>
    %157 = arith.mulf %156, %154 : vector<2x12x12xf32>
    %158 = arith.addf %149, %157 : vector<2x12x12xf32>
    %c66 = arith.constant 66 : index
    %159 = memref.load %arg0[%c66] : memref<100xf32, #tpu.memory_space<smem>>
    %160 = vector.broadcast %159 : f32 to vector<2x12x12xf32>
    %161 = arith.mulf %160, %154 : vector<2x12x12xf32>
    %162 = arith.addf %153, %161 : vector<2x12x12xf32>
    %163 = vector.extract_strided_slice %144 {offsets = [0, 0, 2], sizes = [2, 12, 12], strides = [1, 1, 1]} : vector<2x12x16xf32> to vector<2x12x12xf32>
    %c17 = arith.constant 17 : index
    %164 = memref.load %arg0[%c17] : memref<100xf32, #tpu.memory_space<smem>>
    %165 = vector.broadcast %164 : f32 to vector<2x12x12xf32>
    %166 = arith.mulf %165, %163 : vector<2x12x12xf32>
    %167 = arith.addf %158, %166 : vector<2x12x12xf32>
    %c67 = arith.constant 67 : index
    %168 = memref.load %arg0[%c67] : memref<100xf32, #tpu.memory_space<smem>>
    %169 = vector.broadcast %168 : f32 to vector<2x12x12xf32>
    %170 = arith.mulf %169, %163 : vector<2x12x12xf32>
    %171 = arith.addf %162, %170 : vector<2x12x12xf32>
    %172 = vector.extract_strided_slice %144 {offsets = [0, 0, 3], sizes = [2, 12, 12], strides = [1, 1, 1]} : vector<2x12x16xf32> to vector<2x12x12xf32>
    %c18 = arith.constant 18 : index
    %173 = memref.load %arg0[%c18] : memref<100xf32, #tpu.memory_space<smem>>
    %174 = vector.broadcast %173 : f32 to vector<2x12x12xf32>
    %175 = arith.mulf %174, %172 : vector<2x12x12xf32>
    %176 = arith.addf %167, %175 : vector<2x12x12xf32>
    %c68 = arith.constant 68 : index
    %177 = memref.load %arg0[%c68] : memref<100xf32, #tpu.memory_space<smem>>
    %178 = vector.broadcast %177 : f32 to vector<2x12x12xf32>
    %179 = arith.mulf %178, %172 : vector<2x12x12xf32>
    %180 = arith.addf %171, %179 : vector<2x12x12xf32>
    %181 = vector.extract_strided_slice %144 {offsets = [0, 0, 4], sizes = [2, 12, 12], strides = [1, 1, 1]} : vector<2x12x16xf32> to vector<2x12x12xf32>
    %c19 = arith.constant 19 : index
    %182 = memref.load %arg0[%c19] : memref<100xf32, #tpu.memory_space<smem>>
    %183 = vector.broadcast %182 : f32 to vector<2x12x12xf32>
    %184 = arith.mulf %183, %181 : vector<2x12x12xf32>
    %185 = arith.addf %176, %184 : vector<2x12x12xf32>
    %c69 = arith.constant 69 : index
    %186 = memref.load %arg0[%c69] : memref<100xf32, #tpu.memory_space<smem>>
    %187 = vector.broadcast %186 : f32 to vector<2x12x12xf32>
    %188 = arith.mulf %187, %181 : vector<2x12x12xf32>
    %189 = arith.addf %180, %188 : vector<2x12x12xf32>
    %190 = vector.extract_strided_slice %5 {offsets = [0, 4, 0], sizes = [2, 12, 16], strides = [1, 1, 1]} : vector<2x16x16xf32> to vector<2x12x16xf32>
    %191 = vector.extract_strided_slice %190 {offsets = [0, 0, 0], sizes = [2, 12, 12], strides = [1, 1, 1]} : vector<2x12x16xf32> to vector<2x12x12xf32>
    %c20 = arith.constant 20 : index
    %192 = memref.load %arg0[%c20] : memref<100xf32, #tpu.memory_space<smem>>
    %193 = vector.broadcast %192 : f32 to vector<2x12x12xf32>
    %194 = arith.mulf %193, %191 : vector<2x12x12xf32>
    %195 = arith.addf %185, %194 : vector<2x12x12xf32>
    %c70 = arith.constant 70 : index
    %196 = memref.load %arg0[%c70] : memref<100xf32, #tpu.memory_space<smem>>
    %197 = vector.broadcast %196 : f32 to vector<2x12x12xf32>
    %198 = arith.mulf %197, %191 : vector<2x12x12xf32>
    %199 = arith.addf %189, %198 : vector<2x12x12xf32>
    %200 = vector.extract_strided_slice %190 {offsets = [0, 0, 1], sizes = [2, 12, 12], strides = [1, 1, 1]} : vector<2x12x16xf32> to vector<2x12x12xf32>
    %c21 = arith.constant 21 : index
    %201 = memref.load %arg0[%c21] : memref<100xf32, #tpu.memory_space<smem>>
    %202 = vector.broadcast %201 : f32 to vector<2x12x12xf32>
    %203 = arith.mulf %202, %200 : vector<2x12x12xf32>
    %204 = arith.addf %195, %203 : vector<2x12x12xf32>
    %c71 = arith.constant 71 : index
    %205 = memref.load %arg0[%c71] : memref<100xf32, #tpu.memory_space<smem>>
    %206 = vector.broadcast %205 : f32 to vector<2x12x12xf32>
    %207 = arith.mulf %206, %200 : vector<2x12x12xf32>
    %208 = arith.addf %199, %207 : vector<2x12x12xf32>
    %209 = vector.extract_strided_slice %190 {offsets = [0, 0, 2], sizes = [2, 12, 12], strides = [1, 1, 1]} : vector<2x12x16xf32> to vector<2x12x12xf32>
    %c22 = arith.constant 22 : index
    %210 = memref.load %arg0[%c22] : memref<100xf32, #tpu.memory_space<smem>>
    %211 = vector.broadcast %210 : f32 to vector<2x12x12xf32>
    %212 = arith.mulf %211, %209 : vector<2x12x12xf32>
    %213 = arith.addf %204, %212 : vector<2x12x12xf32>
    %c72 = arith.constant 72 : index
    %214 = memref.load %arg0[%c72] : memref<100xf32, #tpu.memory_space<smem>>
    %215 = vector.broadcast %214 : f32 to vector<2x12x12xf32>
    %216 = arith.mulf %215, %209 : vector<2x12x12xf32>
    %217 = arith.addf %208, %216 : vector<2x12x12xf32>
    %218 = vector.extract_strided_slice %190 {offsets = [0, 0, 3], sizes = [2, 12, 12], strides = [1, 1, 1]} : vector<2x12x16xf32> to vector<2x12x12xf32>
    %c23 = arith.constant 23 : index
    %219 = memref.load %arg0[%c23] : memref<100xf32, #tpu.memory_space<smem>>
    %220 = vector.broadcast %219 : f32 to vector<2x12x12xf32>
    %221 = arith.mulf %220, %218 : vector<2x12x12xf32>
    %222 = arith.addf %213, %221 : vector<2x12x12xf32>
    %c73 = arith.constant 73 : index
    %223 = memref.load %arg0[%c73] : memref<100xf32, #tpu.memory_space<smem>>
    %224 = vector.broadcast %223 : f32 to vector<2x12x12xf32>
    %225 = arith.mulf %224, %218 : vector<2x12x12xf32>
    %226 = arith.addf %217, %225 : vector<2x12x12xf32>
    %227 = vector.extract_strided_slice %190 {offsets = [0, 0, 4], sizes = [2, 12, 12], strides = [1, 1, 1]} : vector<2x12x16xf32> to vector<2x12x12xf32>
    %c24 = arith.constant 24 : index
    %228 = memref.load %arg0[%c24] : memref<100xf32, #tpu.memory_space<smem>>
    %229 = vector.broadcast %228 : f32 to vector<2x12x12xf32>
    %230 = arith.mulf %229, %227 : vector<2x12x12xf32>
    %231 = arith.addf %222, %230 : vector<2x12x12xf32>
    %c74 = arith.constant 74 : index
    %232 = memref.load %arg0[%c74] : memref<100xf32, #tpu.memory_space<smem>>
    %233 = vector.broadcast %232 : f32 to vector<2x12x12xf32>
    %234 = arith.mulf %233, %227 : vector<2x12x12xf32>
    %235 = arith.addf %226, %234 : vector<2x12x12xf32>
    %c0_6 = arith.constant 0 : index
    %c1_7 = arith.constant 1 : index
    %c0_8 = arith.constant 0 : index
    %c0_9 = arith.constant 0 : index
    %236 = vector.load %arg2[%c0_6, %c1_7, %c0_8, %c0_9] : memref<2x2x16x16xf32, #tpu.memory_space<vmem>>, vector<2x1x16x16xf32>
    %237 = vector.shape_cast %236 : vector<2x1x16x16xf32> to vector<2x16x16xf32>
    %238 = vector.extract_strided_slice %237 {offsets = [0, 0, 0], sizes = [2, 12, 16], strides = [1, 1, 1]} : vector<2x16x16xf32> to vector<2x12x16xf32>
    %239 = vector.extract_strided_slice %238 {offsets = [0, 0, 0], sizes = [2, 12, 12], strides = [1, 1, 1]} : vector<2x12x16xf32> to vector<2x12x12xf32>
    %c25 = arith.constant 25 : index
    %240 = memref.load %arg0[%c25] : memref<100xf32, #tpu.memory_space<smem>>
    %241 = vector.broadcast %240 : f32 to vector<2x12x12xf32>
    %242 = arith.mulf %241, %239 : vector<2x12x12xf32>
    %243 = arith.addf %231, %242 : vector<2x12x12xf32>
    %c75 = arith.constant 75 : index
    %244 = memref.load %arg0[%c75] : memref<100xf32, #tpu.memory_space<smem>>
    %245 = vector.broadcast %244 : f32 to vector<2x12x12xf32>
    %246 = arith.mulf %245, %239 : vector<2x12x12xf32>
    %247 = arith.addf %235, %246 : vector<2x12x12xf32>
    %248 = vector.extract_strided_slice %238 {offsets = [0, 0, 1], sizes = [2, 12, 12], strides = [1, 1, 1]} : vector<2x12x16xf32> to vector<2x12x12xf32>
    %c26 = arith.constant 26 : index
    %249 = memref.load %arg0[%c26] : memref<100xf32, #tpu.memory_space<smem>>
    %250 = vector.broadcast %249 : f32 to vector<2x12x12xf32>
    %251 = arith.mulf %250, %248 : vector<2x12x12xf32>
    %252 = arith.addf %243, %251 : vector<2x12x12xf32>
    %c76 = arith.constant 76 : index
    %253 = memref.load %arg0[%c76] : memref<100xf32, #tpu.memory_space<smem>>
    %254 = vector.broadcast %253 : f32 to vector<2x12x12xf32>
    %255 = arith.mulf %254, %248 : vector<2x12x12xf32>
    %256 = arith.addf %247, %255 : vector<2x12x12xf32>
    %257 = vector.extract_strided_slice %238 {offsets = [0, 0, 2], sizes = [2, 12, 12], strides = [1, 1, 1]} : vector<2x12x16xf32> to vector<2x12x12xf32>
    %c27 = arith.constant 27 : index
    %258 = memref.load %arg0[%c27] : memref<100xf32, #tpu.memory_space<smem>>
    %259 = vector.broadcast %258 : f32 to vector<2x12x12xf32>
    %260 = arith.mulf %259, %257 : vector<2x12x12xf32>
    %261 = arith.addf %252, %260 : vector<2x12x12xf32>
    %c77 = arith.constant 77 : index
    %262 = memref.load %arg0[%c77] : memref<100xf32, #tpu.memory_space<smem>>
    %263 = vector.broadcast %262 : f32 to vector<2x12x12xf32>
    %264 = arith.mulf %263, %257 : vector<2x12x12xf32>
    %265 = arith.addf %256, %264 : vector<2x12x12xf32>
    %266 = vector.extract_strided_slice %238 {offsets = [0, 0, 3], sizes = [2, 12, 12], strides = [1, 1, 1]} : vector<2x12x16xf32> to vector<2x12x12xf32>
    %c28 = arith.constant 28 : index
    %267 = memref.load %arg0[%c28] : memref<100xf32, #tpu.memory_space<smem>>
    %268 = vector.broadcast %267 : f32 to vector<2x12x12xf32>
    %269 = arith.mulf %268, %266 : vector<2x12x12xf32>
    %270 = arith.addf %261, %269 : vector<2x12x12xf32>
    %c78 = arith.constant 78 : index
    %271 = memref.load %arg0[%c78] : memref<100xf32, #tpu.memory_space<smem>>
    %272 = vector.broadcast %271 : f32 to vector<2x12x12xf32>
    %273 = arith.mulf %272, %266 : vector<2x12x12xf32>
    %274 = arith.addf %265, %273 : vector<2x12x12xf32>
    %275 = vector.extract_strided_slice %238 {offsets = [0, 0, 4], sizes = [2, 12, 12], strides = [1, 1, 1]} : vector<2x12x16xf32> to vector<2x12x12xf32>
    %c29 = arith.constant 29 : index
    %276 = memref.load %arg0[%c29] : memref<100xf32, #tpu.memory_space<smem>>
    %277 = vector.broadcast %276 : f32 to vector<2x12x12xf32>
    %278 = arith.mulf %277, %275 : vector<2x12x12xf32>
    %279 = arith.addf %270, %278 : vector<2x12x12xf32>
    %c79 = arith.constant 79 : index
    %280 = memref.load %arg0[%c79] : memref<100xf32, #tpu.memory_space<smem>>
    %281 = vector.broadcast %280 : f32 to vector<2x12x12xf32>
    %282 = arith.mulf %281, %275 : vector<2x12x12xf32>
    %283 = arith.addf %274, %282 : vector<2x12x12xf32>
    %284 = vector.extract_strided_slice %237 {offsets = [0, 1, 0], sizes = [2, 12, 16], strides = [1, 1, 1]} : vector<2x16x16xf32> to vector<2x12x16xf32>
    %285 = vector.extract_strided_slice %284 {offsets = [0, 0, 0], sizes = [2, 12, 12], strides = [1, 1, 1]} : vector<2x12x16xf32> to vector<2x12x12xf32>
    %c30 = arith.constant 30 : index
    %286 = memref.load %arg0[%c30] : memref<100xf32, #tpu.memory_space<smem>>
    %287 = vector.broadcast %286 : f32 to vector<2x12x12xf32>
    %288 = arith.mulf %287, %285 : vector<2x12x12xf32>
    %289 = arith.addf %279, %288 : vector<2x12x12xf32>
    %c80 = arith.constant 80 : index
    %290 = memref.load %arg0[%c80] : memref<100xf32, #tpu.memory_space<smem>>
    %291 = vector.broadcast %290 : f32 to vector<2x12x12xf32>
    %292 = arith.mulf %291, %285 : vector<2x12x12xf32>
    %293 = arith.addf %283, %292 : vector<2x12x12xf32>
    %294 = vector.extract_strided_slice %284 {offsets = [0, 0, 1], sizes = [2, 12, 12], strides = [1, 1, 1]} : vector<2x12x16xf32> to vector<2x12x12xf32>
    %c31 = arith.constant 31 : index
    %295 = memref.load %arg0[%c31] : memref<100xf32, #tpu.memory_space<smem>>
    %296 = vector.broadcast %295 : f32 to vector<2x12x12xf32>
    %297 = arith.mulf %296, %294 : vector<2x12x12xf32>
    %298 = arith.addf %289, %297 : vector<2x12x12xf32>
    %c81 = arith.constant 81 : index
    %299 = memref.load %arg0[%c81] : memref<100xf32, #tpu.memory_space<smem>>
    %300 = vector.broadcast %299 : f32 to vector<2x12x12xf32>
    %301 = arith.mulf %300, %294 : vector<2x12x12xf32>
    %302 = arith.addf %293, %301 : vector<2x12x12xf32>
    %303 = vector.extract_strided_slice %284 {offsets = [0, 0, 2], sizes = [2, 12, 12], strides = [1, 1, 1]} : vector<2x12x16xf32> to vector<2x12x12xf32>
    %c32 = arith.constant 32 : index
    %304 = memref.load %arg0[%c32] : memref<100xf32, #tpu.memory_space<smem>>
    %305 = vector.broadcast %304 : f32 to vector<2x12x12xf32>
    %306 = arith.mulf %305, %303 : vector<2x12x12xf32>
    %307 = arith.addf %298, %306 : vector<2x12x12xf32>
    %c82 = arith.constant 82 : index
    %308 = memref.load %arg0[%c82] : memref<100xf32, #tpu.memory_space<smem>>
    %309 = vector.broadcast %308 : f32 to vector<2x12x12xf32>
    %310 = arith.mulf %309, %303 : vector<2x12x12xf32>
    %311 = arith.addf %302, %310 : vector<2x12x12xf32>
    %312 = vector.extract_strided_slice %284 {offsets = [0, 0, 3], sizes = [2, 12, 12], strides = [1, 1, 1]} : vector<2x12x16xf32> to vector<2x12x12xf32>
    %c33 = arith.constant 33 : index
    %313 = memref.load %arg0[%c33] : memref<100xf32, #tpu.memory_space<smem>>
    %314 = vector.broadcast %313 : f32 to vector<2x12x12xf32>
    %315 = arith.mulf %314, %312 : vector<2x12x12xf32>
    %316 = arith.addf %307, %315 : vector<2x12x12xf32>
    %c83 = arith.constant 83 : index
    %317 = memref.load %arg0[%c83] : memref<100xf32, #tpu.memory_space<smem>>
    %318 = vector.broadcast %317 : f32 to vector<2x12x12xf32>
    %319 = arith.mulf %318, %312 : vector<2x12x12xf32>
    %320 = arith.addf %311, %319 : vector<2x12x12xf32>
    %321 = vector.extract_strided_slice %284 {offsets = [0, 0, 4], sizes = [2, 12, 12], strides = [1, 1, 1]} : vector<2x12x16xf32> to vector<2x12x12xf32>
    %c34 = arith.constant 34 : index
    %322 = memref.load %arg0[%c34] : memref<100xf32, #tpu.memory_space<smem>>
    %323 = vector.broadcast %322 : f32 to vector<2x12x12xf32>
    %324 = arith.mulf %323, %321 : vector<2x12x12xf32>
    %325 = arith.addf %316, %324 : vector<2x12x12xf32>
    %c84 = arith.constant 84 : index
    %326 = memref.load %arg0[%c84] : memref<100xf32, #tpu.memory_space<smem>>
    %327 = vector.broadcast %326 : f32 to vector<2x12x12xf32>
    %328 = arith.mulf %327, %321 : vector<2x12x12xf32>
    %329 = arith.addf %320, %328 : vector<2x12x12xf32>
    %330 = vector.extract_strided_slice %237 {offsets = [0, 2, 0], sizes = [2, 12, 16], strides = [1, 1, 1]} : vector<2x16x16xf32> to vector<2x12x16xf32>
    %331 = vector.extract_strided_slice %330 {offsets = [0, 0, 0], sizes = [2, 12, 12], strides = [1, 1, 1]} : vector<2x12x16xf32> to vector<2x12x12xf32>
    %c35 = arith.constant 35 : index
    %332 = memref.load %arg0[%c35] : memref<100xf32, #tpu.memory_space<smem>>
    %333 = vector.broadcast %332 : f32 to vector<2x12x12xf32>
    %334 = arith.mulf %333, %331 : vector<2x12x12xf32>
    %335 = arith.addf %325, %334 : vector<2x12x12xf32>
    %c85 = arith.constant 85 : index
    %336 = memref.load %arg0[%c85] : memref<100xf32, #tpu.memory_space<smem>>
    %337 = vector.broadcast %336 : f32 to vector<2x12x12xf32>
    %338 = arith.mulf %337, %331 : vector<2x12x12xf32>
    %339 = arith.addf %329, %338 : vector<2x12x12xf32>
    %340 = vector.extract_strided_slice %330 {offsets = [0, 0, 1], sizes = [2, 12, 12], strides = [1, 1, 1]} : vector<2x12x16xf32> to vector<2x12x12xf32>
    %c36 = arith.constant 36 : index
    %341 = memref.load %arg0[%c36] : memref<100xf32, #tpu.memory_space<smem>>
    %342 = vector.broadcast %341 : f32 to vector<2x12x12xf32>
    %343 = arith.mulf %342, %340 : vector<2x12x12xf32>
    %344 = arith.addf %335, %343 : vector<2x12x12xf32>
    %c86 = arith.constant 86 : index
    %345 = memref.load %arg0[%c86] : memref<100xf32, #tpu.memory_space<smem>>
    %346 = vector.broadcast %345 : f32 to vector<2x12x12xf32>
    %347 = arith.mulf %346, %340 : vector<2x12x12xf32>
    %348 = arith.addf %339, %347 : vector<2x12x12xf32>
    %349 = vector.extract_strided_slice %330 {offsets = [0, 0, 2], sizes = [2, 12, 12], strides = [1, 1, 1]} : vector<2x12x16xf32> to vector<2x12x12xf32>
    %c37 = arith.constant 37 : index
    %350 = memref.load %arg0[%c37] : memref<100xf32, #tpu.memory_space<smem>>
    %351 = vector.broadcast %350 : f32 to vector<2x12x12xf32>
    %352 = arith.mulf %351, %349 : vector<2x12x12xf32>
    %353 = arith.addf %344, %352 : vector<2x12x12xf32>
    %c87 = arith.constant 87 : index
    %354 = memref.load %arg0[%c87] : memref<100xf32, #tpu.memory_space<smem>>
    %355 = vector.broadcast %354 : f32 to vector<2x12x12xf32>
    %356 = arith.mulf %355, %349 : vector<2x12x12xf32>
    %357 = arith.addf %348, %356 : vector<2x12x12xf32>
    %358 = vector.extract_strided_slice %330 {offsets = [0, 0, 3], sizes = [2, 12, 12], strides = [1, 1, 1]} : vector<2x12x16xf32> to vector<2x12x12xf32>
    %c38 = arith.constant 38 : index
    %359 = memref.load %arg0[%c38] : memref<100xf32, #tpu.memory_space<smem>>
    %360 = vector.broadcast %359 : f32 to vector<2x12x12xf32>
    %361 = arith.mulf %360, %358 : vector<2x12x12xf32>
    %362 = arith.addf %353, %361 : vector<2x12x12xf32>
    %c88 = arith.constant 88 : index
    %363 = memref.load %arg0[%c88] : memref<100xf32, #tpu.memory_space<smem>>
    %364 = vector.broadcast %363 : f32 to vector<2x12x12xf32>
    %365 = arith.mulf %364, %358 : vector<2x12x12xf32>
    %366 = arith.addf %357, %365 : vector<2x12x12xf32>
    %367 = vector.extract_strided_slice %330 {offsets = [0, 0, 4], sizes = [2, 12, 12], strides = [1, 1, 1]} : vector<2x12x16xf32> to vector<2x12x12xf32>
    %c39 = arith.constant 39 : index
    %368 = memref.load %arg0[%c39] : memref<100xf32, #tpu.memory_space<smem>>
    %369 = vector.broadcast %368 : f32 to vector<2x12x12xf32>
    %370 = arith.mulf %369, %367 : vector<2x12x12xf32>
    %371 = arith.addf %362, %370 : vector<2x12x12xf32>
    %c89 = arith.constant 89 : index
    %372 = memref.load %arg0[%c89] : memref<100xf32, #tpu.memory_space<smem>>
    %373 = vector.broadcast %372 : f32 to vector<2x12x12xf32>
    %374 = arith.mulf %373, %367 : vector<2x12x12xf32>
    %375 = arith.addf %366, %374 : vector<2x12x12xf32>
    %376 = vector.extract_strided_slice %237 {offsets = [0, 3, 0], sizes = [2, 12, 16], strides = [1, 1, 1]} : vector<2x16x16xf32> to vector<2x12x16xf32>
    %377 = vector.extract_strided_slice %376 {offsets = [0, 0, 0], sizes = [2, 12, 12], strides = [1, 1, 1]} : vector<2x12x16xf32> to vector<2x12x12xf32>
    %c40 = arith.constant 40 : index
    %378 = memref.load %arg0[%c40] : memref<100xf32, #tpu.memory_space<smem>>
    %379 = vector.broadcast %378 : f32 to vector<2x12x12xf32>
    %380 = arith.mulf %379, %377 : vector<2x12x12xf32>
    %381 = arith.addf %371, %380 : vector<2x12x12xf32>
    %c90 = arith.constant 90 : index
    %382 = memref.load %arg0[%c90] : memref<100xf32, #tpu.memory_space<smem>>
    %383 = vector.broadcast %382 : f32 to vector<2x12x12xf32>
    %384 = arith.mulf %383, %377 : vector<2x12x12xf32>
    %385 = arith.addf %375, %384 : vector<2x12x12xf32>
    %386 = vector.extract_strided_slice %376 {offsets = [0, 0, 1], sizes = [2, 12, 12], strides = [1, 1, 1]} : vector<2x12x16xf32> to vector<2x12x12xf32>
    %c41 = arith.constant 41 : index
    %387 = memref.load %arg0[%c41] : memref<100xf32, #tpu.memory_space<smem>>
    %388 = vector.broadcast %387 : f32 to vector<2x12x12xf32>
    %389 = arith.mulf %388, %386 : vector<2x12x12xf32>
    %390 = arith.addf %381, %389 : vector<2x12x12xf32>
    %c91 = arith.constant 91 : index
    %391 = memref.load %arg0[%c91] : memref<100xf32, #tpu.memory_space<smem>>
    %392 = vector.broadcast %391 : f32 to vector<2x12x12xf32>
    %393 = arith.mulf %392, %386 : vector<2x12x12xf32>
    %394 = arith.addf %385, %393 : vector<2x12x12xf32>
    %395 = vector.extract_strided_slice %376 {offsets = [0, 0, 2], sizes = [2, 12, 12], strides = [1, 1, 1]} : vector<2x12x16xf32> to vector<2x12x12xf32>
    %c42 = arith.constant 42 : index
    %396 = memref.load %arg0[%c42] : memref<100xf32, #tpu.memory_space<smem>>
    %397 = vector.broadcast %396 : f32 to vector<2x12x12xf32>
    %398 = arith.mulf %397, %395 : vector<2x12x12xf32>
    %399 = arith.addf %390, %398 : vector<2x12x12xf32>
    %c92 = arith.constant 92 : index
    %400 = memref.load %arg0[%c92] : memref<100xf32, #tpu.memory_space<smem>>
    %401 = vector.broadcast %400 : f32 to vector<2x12x12xf32>
    %402 = arith.mulf %401, %395 : vector<2x12x12xf32>
    %403 = arith.addf %394, %402 : vector<2x12x12xf32>
    %404 = vector.extract_strided_slice %376 {offsets = [0, 0, 3], sizes = [2, 12, 12], strides = [1, 1, 1]} : vector<2x12x16xf32> to vector<2x12x12xf32>
    %c43 = arith.constant 43 : index
    %405 = memref.load %arg0[%c43] : memref<100xf32, #tpu.memory_space<smem>>
    %406 = vector.broadcast %405 : f32 to vector<2x12x12xf32>
    %407 = arith.mulf %406, %404 : vector<2x12x12xf32>
    %408 = arith.addf %399, %407 : vector<2x12x12xf32>
    %c93 = arith.constant 93 : index
    %409 = memref.load %arg0[%c93] : memref<100xf32, #tpu.memory_space<smem>>
    %410 = vector.broadcast %409 : f32 to vector<2x12x12xf32>
    %411 = arith.mulf %410, %404 : vector<2x12x12xf32>
    %412 = arith.addf %403, %411 : vector<2x12x12xf32>
    %413 = vector.extract_strided_slice %376 {offsets = [0, 0, 4], sizes = [2, 12, 12], strides = [1, 1, 1]} : vector<2x12x16xf32> to vector<2x12x12xf32>
    %c44 = arith.constant 44 : index
    %414 = memref.load %arg0[%c44] : memref<100xf32, #tpu.memory_space<smem>>
    %415 = vector.broadcast %414 : f32 to vector<2x12x12xf32>
    %416 = arith.mulf %415, %413 : vector<2x12x12xf32>
    %417 = arith.addf %408, %416 : vector<2x12x12xf32>
    %c94 = arith.constant 94 : index
    %418 = memref.load %arg0[%c94] : memref<100xf32, #tpu.memory_space<smem>>
    %419 = vector.broadcast %418 : f32 to vector<2x12x12xf32>
    %420 = arith.mulf %419, %413 : vector<2x12x12xf32>
    %421 = arith.addf %412, %420 : vector<2x12x12xf32>
    %422 = vector.extract_strided_slice %237 {offsets = [0, 4, 0], sizes = [2, 12, 16], strides = [1, 1, 1]} : vector<2x16x16xf32> to vector<2x12x16xf32>
    %423 = vector.extract_strided_slice %422 {offsets = [0, 0, 0], sizes = [2, 12, 12], strides = [1, 1, 1]} : vector<2x12x16xf32> to vector<2x12x12xf32>
    %c45 = arith.constant 45 : index
    %424 = memref.load %arg0[%c45] : memref<100xf32, #tpu.memory_space<smem>>
    %425 = vector.broadcast %424 : f32 to vector<2x12x12xf32>
    %426 = arith.mulf %425, %423 : vector<2x12x12xf32>
    %427 = arith.addf %417, %426 : vector<2x12x12xf32>
    %c95 = arith.constant 95 : index
    %428 = memref.load %arg0[%c95] : memref<100xf32, #tpu.memory_space<smem>>
    %429 = vector.broadcast %428 : f32 to vector<2x12x12xf32>
    %430 = arith.mulf %429, %423 : vector<2x12x12xf32>
    %431 = arith.addf %421, %430 : vector<2x12x12xf32>
    %432 = vector.extract_strided_slice %422 {offsets = [0, 0, 1], sizes = [2, 12, 12], strides = [1, 1, 1]} : vector<2x12x16xf32> to vector<2x12x12xf32>
    %c46 = arith.constant 46 : index
    %433 = memref.load %arg0[%c46] : memref<100xf32, #tpu.memory_space<smem>>
    %434 = vector.broadcast %433 : f32 to vector<2x12x12xf32>
    %435 = arith.mulf %434, %432 : vector<2x12x12xf32>
    %436 = arith.addf %427, %435 : vector<2x12x12xf32>
    %c96 = arith.constant 96 : index
    %437 = memref.load %arg0[%c96] : memref<100xf32, #tpu.memory_space<smem>>
    %438 = vector.broadcast %437 : f32 to vector<2x12x12xf32>
    %439 = arith.mulf %438, %432 : vector<2x12x12xf32>
    %440 = arith.addf %431, %439 : vector<2x12x12xf32>
    %441 = vector.extract_strided_slice %422 {offsets = [0, 0, 2], sizes = [2, 12, 12], strides = [1, 1, 1]} : vector<2x12x16xf32> to vector<2x12x12xf32>
    %c47 = arith.constant 47 : index
    %442 = memref.load %arg0[%c47] : memref<100xf32, #tpu.memory_space<smem>>
    %443 = vector.broadcast %442 : f32 to vector<2x12x12xf32>
    %444 = arith.mulf %443, %441 : vector<2x12x12xf32>
    %445 = arith.addf %436, %444 : vector<2x12x12xf32>
    %c97 = arith.constant 97 : index
    %446 = memref.load %arg0[%c97] : memref<100xf32, #tpu.memory_space<smem>>
    %447 = vector.broadcast %446 : f32 to vector<2x12x12xf32>
    %448 = arith.mulf %447, %441 : vector<2x12x12xf32>
    %449 = arith.addf %440, %448 : vector<2x12x12xf32>
    %450 = vector.extract_strided_slice %422 {offsets = [0, 0, 3], sizes = [2, 12, 12], strides = [1, 1, 1]} : vector<2x12x16xf32> to vector<2x12x12xf32>
    %c48 = arith.constant 48 : index
    %451 = memref.load %arg0[%c48] : memref<100xf32, #tpu.memory_space<smem>>
    %452 = vector.broadcast %451 : f32 to vector<2x12x12xf32>
    %453 = arith.mulf %452, %450 : vector<2x12x12xf32>
    %454 = arith.addf %445, %453 : vector<2x12x12xf32>
    %c98 = arith.constant 98 : index
    %455 = memref.load %arg0[%c98] : memref<100xf32, #tpu.memory_space<smem>>
    %456 = vector.broadcast %455 : f32 to vector<2x12x12xf32>
    %457 = arith.mulf %456, %450 : vector<2x12x12xf32>
    %458 = arith.addf %449, %457 : vector<2x12x12xf32>
    %459 = vector.extract_strided_slice %422 {offsets = [0, 0, 4], sizes = [2, 12, 12], strides = [1, 1, 1]} : vector<2x12x16xf32> to vector<2x12x12xf32>
    %c49 = arith.constant 49 : index
    %460 = memref.load %arg0[%c49] : memref<100xf32, #tpu.memory_space<smem>>
    %461 = vector.broadcast %460 : f32 to vector<2x12x12xf32>
    %462 = arith.mulf %461, %459 : vector<2x12x12xf32>
    %463 = arith.addf %454, %462 : vector<2x12x12xf32>
    %c99 = arith.constant 99 : index
    %464 = memref.load %arg0[%c99] : memref<100xf32, #tpu.memory_space<smem>>
    %465 = vector.broadcast %464 : f32 to vector<2x12x12xf32>
    %466 = arith.mulf %465, %459 : vector<2x12x12xf32>
    %467 = arith.addf %458, %466 : vector<2x12x12xf32>
    %c0_10 = arith.constant 0 : index
    %c0_11 = arith.constant 0 : index
    %c0_12 = arith.constant 0 : index
    %c0_13 = arith.constant 0 : index
    %468 = vector.load %arg3[%c0_10, %c0_11, %c0_12, %c0_13] : memref<2x2x12x12xf32, #tpu.memory_space<vmem>>, vector<2x1x12x12xf32>
    %469 = vector.shape_cast %468 : vector<2x1x12x12xf32> to vector<2x12x12xf32>
    %470 = vector.shape_cast %463 : vector<2x12x12xf32> to vector<2x1x12x12xf32>
    tpu.vector_store %arg3[%c0_10, %c0_11, %c0_12, %c0_13], %470 {strides = array<i32>} : memref<2x2x12x12xf32, #tpu.memory_space<vmem>>, vector<2x1x12x12xf32>,
    %c0_14 = arith.constant 0 : index
    %c1_15 = arith.constant 1 : index
    %c0_16 = arith.constant 0 : index
    %c0_17 = arith.constant 0 : index
    %471 = vector.load %arg3[%c0_14, %c1_15, %c0_16, %c0_17] : memref<2x2x12x12xf32, #tpu.memory_space<vmem>>, vector<2x1x12x12xf32>
    %472 = vector.shape_cast %471 : vector<2x1x12x12xf32> to vector<2x12x12xf32>
    %473 = vector.shape_cast %467 : vector<2x12x12xf32> to vector<2x1x12x12xf32>
    tpu.vector_store %arg3[%c0_14, %c1_15, %c0_16, %c0_17], %473 {strides = array<i32>} : memref<2x2x12x12xf32, #tpu.memory_space<vmem>>, vector<2x1x12x12xf32>,
    return
  }
}

</mosaic_0001>

<bundles_post_ra>
// kernel: model_a_forward.1
= control target key start
LH: loop header
LB: loop body
LE: loop exit
PB: predicated region body
PF: predicated region fallthrough
CT: control target
= control target key end

     0   :  { %8 = vsyncpa [#allocation3], 0  ;;  %s5417_s0 = inlined_call_operand.vmem [shape: f32[100], index: 0, kind: input, shape index: {}]   ;;  %s5418_s1 = inlined_call_operand.vmem [shape: f32[2], index: 1, kind: input, shape index: {}]   ;;  %s5419_s2 = inlined_call_operand.vmem [shape: f32[2,2,16,16], index: 2, kind: input, shape index: {}]   ;;  %s5420_s3 = inlined_call_operand.vmem [shape: f32[2,2,12,12], index: 3, kind: output, shape index: {}]  }
   0x1   :  { %s16_s14 = sshll.u32 %s5417_s0, 4  ;;  %s17_s14 = int_to_ptr.vmem [resolvable:$true] %s16_s14 }
   0x2   :  { %9 = vsyncpa [#allocation5], 0  ;;  %s26_s17 = sshll.u32 %s5418_s1, 4  ;;  %s3091_s18 = scalar_lea.vmem %s17_s14, 16  ;;  %s27_s17 = int_to_ptr.vmem [resolvable:$true] %s26_s17 }
   0x3   :  { %p3092_p0 = scmp.ne.s32.totalorder %s17_s14, %s3091_s18  ;;  %p3096_p1 = scmp.lt.s32.totalorder %s17_s14, %s17_s14 }
   0x4   :  { %p3097_p2 = scmp.lt.s32.totalorder %s3091_s18, %s3091_s18 }
   0x6   :  { %p3098_p3 = por %p3097_p2, %p3096_p1 }
   0x8   :  { %p3099_p4 = pnand %p3098_p3, %p3092_p0 }
   0xa   :  { %3102 = shalt.err (!%p3099_p4)
}
   0xb   :  { %s3119_s19 = smov [#allocation2]   ;;  %s3103_s20 = scalar_lea.vmem %s27_s17, 16 }
   0xc   :  { %19 = dma.vmem_to_smem %s17_s14, 16, %s3119_s19, [#allocation3]  }
   0xd   :  { %p3104_p5 = scmp.ne.s32.totalorder %s27_s17, %s3103_s20  ;;  %p3108_p6 = scmp.lt.s32.totalorder %s27_s17, %s27_s17 }
   0xe   :  { %p3109_p7 = scmp.lt.s32.totalorder %s3103_s20, %s3103_s20 }
  0x10   :  { %p3110_p8 = por %p3109_p7, %p3108_p6 }
  0x12   :  { %p3111_p9 = pnand %p3110_p8, %p3104_p5 }
  0x14   :  { %3114 = shalt.err (!%p3111_p9)
}
  0x15   :  { %s3120_s0 = smov [#allocation4]  }
  0x16   :  { %29 = dma.vmem_to_smem %s27_s17, 16, %s3120_s0, [#allocation5]  }
  0x17   :  { %3115 = dma.done.wait [#allocation3], 16  }
  0x18   :  { %3116 = vsyncadd [#allocation3], 4294967280 }
  0x19   :  { %3117 = dma.done.wait [#allocation5], 16  }
  0x1a   :  { %3118 = vsyncadd [#allocation5], 4294967280 }
  0x1b   :  { %38 = sfence }
  0x1c   :  { %s2963_s1 = sld [smem:[#allocation2 + $0x1]]  ;;  %s2964_s21 = sld [smem:[#allocation2 + $0x33]]  ;;  %v3154_v0 = vld [vmem:[%s5419_s2 + $0x20] sm:$0xff]  ;;  %v3164_v3 = vld [vmem:[%s5419_s2 + $0x28] sm:$0xff]  ;;  %vm285_vm0 = vcmask 1046528   ;;  %vm590_vm1 = vcmask 1045504  }
  0x1d   :  { %v3159_v1 = vld [vmem:[%s5419_s2] sm:$0xff]  ;;  %v3169_v4 = vld [vmem:[%s5419_s2 + $0x8] sm:$0xff]  ;;  %s3121_s30 = smov 127   ;;  %s2965_s4 = sld [smem:[#allocation2 + $0x2]]  ;;  %vm895_vm2 = vcmask 1044480   ;;  %vm1200_vm3 = vcmask 1043456  }
  0x1e   :  { %s2966_s5 = sld [smem:[#allocation2 + $0x34]]  ;;  %s3122_s6 = smov 126   ;;  %vm2946_vm4 = vcmask 93184   ;;  %vm2944_vm5 = vcmask 97280  }
  0x1f   :  { %s2967_s7 = sld [smem:[#allocation2 + $0x3]]  ;;  %s2968_s8 = sld [smem:[#allocation2 + $0x35]] }
  0x20   :  { %s3123_s9 = smov 125   ;;  %s2969_s10 = sld [smem:[#allocation2 + $0x4]] }
  0x21   :  { %s2970_s11 = sld [smem:[#allocation2 + $0x36]]  ;;  %s3124_s13 = smov 124  }
  0x22   :  { %v68_v2 = vstv %s2963_s1  ;;  %v94_v9 = vstv %s2964_s21  ;;  %s2973_s12 = sld [smem:[#allocation2 + $0x6]]  ;;  %s2974_s14 = sld [smem:[#allocation2 + $0x38]] }
  0x23   :  { %v71_v5 = vmul.f32 %v68_v2, %v3154_v0  ;;  %v69_v6 = vmul.f32 %v68_v2, %v3159_v1  ;;  %v72_v7 = vmul.f32 %v68_v2, %v3164_v3  ;;  %v70_v8 = vmul.f32 %v68_v2, %v3169_v4  ;;  %s2975_s15 = sld [smem:[#allocation2 + $0x7]]  ;;  %s2976_s16 = sld [smem:[#allocation2 + $0x39]] }
  0x24   :  { %v96_v10 = vmul.f32 %v94_v9, %v3169_v4  ;;  %v95_v11 = vmul.f32 %v94_v9, %v3159_v1  ;;  %v98_v12 = vmul.f32 %v94_v9, %v3164_v3  ;;  %v97_v13 = vmul.f32 %v94_v9, %v3154_v0  ;;  %s2977_s17 = sld [smem:[#allocation2 + $0x8]]  ;;  %s2978_s18 = sld [smem:[#allocation2 + $0x3a]] }
  0x25   :  { %81 = vrot.lane.b32.xlu1 %v71_v5, %s3121_s30  ;;  %77 = vrot.lane.b32.xlu0 %v69_v6, %s3121_s30  ;;  %v120_v14 = vstv %s2965_s4  ;;  %v146_v19 = vstv %s2966_s5  ;;  %s2979_s19 = sld [smem:[#allocation2 + $0x9]]  ;;  %s2980_s20 = sld [smem:[#allocation2 + $0x3b]] }
  0x26   :  { %v122_v15 = vmul.f32 %v120_v14, %v3169_v4  ;;  %v121_v16 = vmul.f32 %v120_v14, %v3159_v1  ;;  %v124_v17 = vmul.f32 %v120_v14, %v3164_v3  ;;  %v123_v18 = vmul.f32 %v120_v14, %v3154_v0  ;;  %s2983_s0 = sld [smem:[#allocation2 + $0xb]]  ;;  %s2984_s1 = sld [smem:[#allocation2 + $0x3d]] }
  0x27   :  { %v148_v20 = vmul.f32 %v146_v19, %v3169_v4  ;;  %v147_v21 = vmul.f32 %v146_v19, %v3159_v1  ;;  %v150_v22 = vmul.f32 %v146_v19, %v3164_v3  ;;  %v149_v23 = vmul.f32 %v146_v19, %v3154_v0  ;;  %s2985_s21 = sld [smem:[#allocation2 + $0xc]]  ;;  %s2986_s22 = sld [smem:[#allocation2 + $0x3e]] }
  0x28   :  { %v172_v24 = vstv %s2967_s7  ;;  %v198_v29 = vstv %s2968_s8  ;;  %v224_v34 = vstv %s2969_s10  ;;  %v250_v39 = vstv %s2970_s11  ;;  %s2987_s23 = sld [smem:[#allocation2 + $0xd]]  ;;  %s2988_s24 = sld [smem:[#allocation2 + $0x3f]] }
  0x29   :  { %83 = vrot.lane.b32.xlu1 %v72_v7, %s3121_s30  ;;  %79 = vrot.lane.b32.xlu0 %v70_v8, %s3121_s30  ;;  %v174_v25 = vmul.f32 %v172_v24, %v3169_v4  ;;  %v173_v26 = vmul.f32 %v172_v24, %v3159_v1  ;;  %v176_v27 = vmul.f32 %v172_v24, %v3164_v3  ;;  %v325_v40 = vstv %s2973_s12  ;;  %s2989_s25 = sld [smem:[#allocation2 + $0xe]]  ;;  %s2990_s26 = sld [smem:[#allocation2 + $0x40]] }
  0x2a   :  { %v175_v28 = vmul.f32 %v172_v24, %v3154_v0  ;;  %v200_v30 = vmul.f32 %v198_v29, %v3169_v4  ;;  %v199_v31 = vmul.f32 %v198_v29, %v3159_v1  ;;  %v202_v32 = vmul.f32 %v198_v29, %v3164_v3  ;;  %s2993_s27 = sld [smem:[#allocation2 + $0x10]]  ;;  %s2994_s28 = sld [smem:[#allocation2 + $0x42]] }
  0x2b   :  { %v201_v33 = vmul.f32 %v198_v29, %v3154_v0  ;;  %v226_v35 = vmul.f32 %v224_v34, %v3169_v4  ;;  %v225_v36 = vmul.f32 %v224_v34, %v3159_v1  ;;  %v228_v37 = vmul.f32 %v224_v34, %v3164_v3  ;;  %s2995_s29 = sld [smem:[#allocation2 + $0x11]]  ;;  %s2996_s4 = sld [smem:[#allocation2 + $0x43]] }
  0x2c   :  { %v227_v38 = vmul.f32 %v224_v34, %v3154_v0  ;;  %v252_v41 = vmul.f32 %v250_v39, %v3169_v4  ;;  %v251_v42 = vmul.f32 %v250_v39, %v3159_v1  ;;  %v327_v43 = vmul.f32 %v325_v40, %v3169_v4  ;;  %s2997_s5 = sld [smem:[#allocation2 + $0x12]]  ;;  %s2998_s7 = sld [smem:[#allocation2 + $0x44]] }
  0x2d   :  { %105 = vrot.lane.b32.xlu1 %v96_v10, %s3121_s30  ;;  %103 = vrot.lane.b32.xlu0 %v95_v11, %s3121_s30  ;;  %v326_v44 = vmul.f32 %v325_v40, %v3159_v1  ;;  %v254_v45 = vmul.f32 %v250_v39, %v3164_v3  ;;  %v253_v46 = vmul.f32 %v250_v39, %v3154_v0  ;;  %v357_v47 = vstv %s2974_s14  ;;  %s2999_s8 = sld [smem:[#allocation2 + $0x13]]  ;;  %s3000_s10 = sld [smem:[#allocation2 + $0x45]] }
  0x2e   :  { %v335_v48 = vrot.slane %v327_v43, 1  ;;  %v329_v50 = vmul.f32 %v325_v40, %v3164_v3  ;;  %v328_v51 = vmul.f32 %v325_v40, %v3154_v0  ;;  %v359_v52 = vmul.f32 %v357_v47, %v3169_v4  ;;  %s3003_s11 = sld [smem:[#allocation2 + $0x15]]  ;;  %s3019_s12 = sld [smem:[#allocation2 + $0x1b]] }
  0x2f   :  { %v334_v49 = vrot.slane %v326_v44, 1  ;;  %v358_v56 = vmul.f32 %v357_v47, %v3159_v1  ;;  %v361_v57 = vmul.f32 %v357_v47, %v3164_v3  ;;  %v360_v61 = vmul.f32 %v357_v47, %v3154_v0  ;;  %s3020_s14 = sld [smem:[#allocation2 + $0x4d]] }
  0x30   :  { %v338_v54 = vrot.slane %v329_v50, 1  ;;  %v337_v55 = vrot.slane %v328_v51, 1  ;;  %v367_v59 = vrot.slane %v359_v52, 1  ;;  %v389_v62 = vstv %s2975_s15  ;;  %s3021_s15 = sld [smem:[#allocation2 + $0x1c]] }
  0x31   :  { %109 = vrot.lane.b32.xlu1 %v98_v12, %s3121_s30  ;;  %107 = vrot.lane.b32.xlu0 %v97_v13, %s3121_s30  ;;  %v336_v53 = vsel %vm285_vm0, %v334_v49, %v335_v48  ;;  %v366_v60 = vrot.slane %v358_v56, 1  ;;  %v370_v63 = vrot.slane %v361_v57, 1  ;;  %v369_v5 = vrot.slane %v360_v61, 1 }
  0x32   :  { %v339_v58 = vsel %vm285_vm0, %v337_v55, %v338_v54  ;;  %v391_v6 = vmul.f32 %v389_v62, %v3169_v4  ;;  %v390_v7 = vmul.f32 %v389_v62, %v3159_v1  ;;  %v393_v8 = vmul.f32 %v389_v62, %v3164_v3 }
  0x33   :  { %v368_v2 = vsel %vm285_vm0, %v366_v60, %v367_v59  ;;  %v421_v9 = vstv %s2976_s16  ;;  %v371_v10 = vsel %vm285_vm0, %v369_v5, %v370_v63  ;;  %v392_v13 = vmul.f32 %v389_v62, %v3154_v0  ;;  %s3022_s16 = sld [smem:[#allocation2 + $0x4e]] }
  0x34   :  { %v399_v11 = vrot.slane %v391_v6, 1  ;;  %v398_v12 = vrot.slane %v390_v7, 1  ;;  %v423_v14 = vmul.f32 %v421_v9, %v3169_v4  ;;  %v425_v19 = vmul.f32 %v421_v9, %v3164_v3 }
  0x35   :  { %131 = vrot.lane.b32.xlu1 %v122_v15, %s3122_s6  ;;  %129 = vrot.lane.b32.xlu0 %v121_v16, %s3122_s6  ;;  %v402_v16 = vrot.slane %v393_v8, 1  ;;  %v453_v24 = vstv %s2977_s17  ;;  %v549_v57 = vstv %s2980_s20  ;;  %s3023_s17 = sld [smem:[#allocation2 + $0x1d]]  ;;  %s3028_s20 = sld [smem:[#allocation2 + $0x51]] }
  0x36   :  { %v400_v15 = vsel %vm285_vm0, %v398_v12, %v399_v11  ;;  %v454_v29 = vmul.f32 %v453_v24, %v3159_v1  ;;  %v456_v34 = vmul.f32 %v453_v24, %v3154_v0  ;;  %v553_v6 = vmul.f32 %v549_v57, %v3164_v3 }
  0x37   :  { %v552_v7 = vmul.f32 %v549_v57, %v3154_v0 }
  0x38   :  { %v562_v12 = vrot.slane %v553_v6, 1 }
  0x39   :  { %135 = vrot.lane.b32.xlu1 %v124_v17, %s3122_s6  ;;  %133 = vrot.lane.b32.xlu0 %v123_v18, %s3122_s6  ;;  %v401_v17 = vrot.slane %v392_v13, 1  ;;  %v422_v18 = vmul.f32 %v421_v9, %v3159_v1  ;;  %v561_v13 = vrot.slane %v552_v7, 1 }
  0x3d   :  { %157 = vrot.lane.b32.xlu1 %v148_v20, %s3122_s6  ;;  %155 = vrot.lane.b32.xlu0 %v147_v21, %s3122_s6  ;;  %v403_v20 = vsel %vm285_vm0, %v401_v17, %v402_v16  ;;  %v431_v21 = vrot.slane %v423_v14, 1 }
  0x41   :  { %161 = vrot.lane.b32.xlu1 %v150_v22, %s3122_s6  ;;  %159 = vrot.lane.b32.xlu0 %v149_v23, %s3122_s6  ;;  %v430_v22 = vrot.slane %v422_v18, 1  ;;  %v424_v23 = vmul.f32 %v421_v9, %v3154_v0 }
  0x45   :  { %183 = vrot.lane.b32.xlu1 %v174_v25, %s3123_s9  ;;  %181 = vrot.lane.b32.xlu0 %v173_v26, %s3123_s9  ;;  %v434_v25 = vrot.slane %v425_v19, 1  ;;  %v432_v26 = vsel %vm285_vm0, %v430_v22, %v431_v21  ;;  %v563_v19 = vsel %vm285_vm0, %v561_v13, %v562_v12 }
  0x49   :  { %187 = vrot.lane.b32.xlu1 %v176_v27, %s3123_s9  ;;  %185 = vrot.lane.b32.xlu0 %v175_v28, %s3123_s9  ;;  %v433_v27 = vrot.slane %v424_v23, 1  ;;  %v455_v28 = vmul.f32 %v453_v24, %v3169_v4 }
  0x4d   :  { %209 = vrot.lane.b32.xlu1 %v200_v30, %s3123_s9  ;;  %207 = vrot.lane.b32.xlu0 %v199_v31, %s3123_s9  ;;  %v457_v30 = vmul.f32 %v453_v24, %v3164_v3  ;;  %v435_v31 = vsel %vm285_vm0, %v433_v27, %v434_v25 }
  0x51   :  { %213 = vrot.lane.b32.xlu1 %v202_v32, %s3123_s9  ;;  %211 = vrot.lane.b32.xlu0 %v201_v33, %s3123_s9  ;;  %v463_v32 = vrot.slane %v455_v28, 1  ;;  %v462_v33 = vrot.slane %v454_v29, 1 }
  0x55   :  { %235 = vrot.lane.b32.xlu1 %v226_v35, %s3124_s13  ;;  %233 = vrot.lane.b32.xlu0 %v225_v36, %s3124_s13  ;;  %v485_v35 = vstv %s2978_s18  ;;  %v466_v36 = vrot.slane %v457_v30, 1  ;;  %s3024_s18 = sld [smem:[#allocation2 + $0x4f]] }
  0x56   :  { %v487_v39 = vmul.f32 %v485_v35, %v3169_v4  ;;  %v486_v40 = vmul.f32 %v485_v35, %v3159_v1 }
  0x58   :  { %v495_v44 = vrot.slane %v487_v39, 1 }
  0x59   :  { %239 = vrot.lane.b32.xlu1 %v228_v37, %s3124_s13  ;;  %237 = vrot.lane.b32.xlu0 %v227_v38, %s3124_s13  ;;  %v464_v37 = vsel %vm285_vm0, %v462_v33, %v463_v32  ;;  %v465_v38 = vrot.slane %v456_v34, 1  ;;  %v694_v34 = vstv %s2985_s21  ;;  %s3006_s21 = sld [smem:[#allocation2 + $0x48]] }
  0x5b   :  { %v467_v43 = vsel %vm285_vm0, %v465_v38, %v466_v36 }
  0x5d   :  { %261 = vrot.lane.b32.xlu1 %v252_v41, %s3124_s13  ;;  %259 = vrot.lane.b32.xlu0 %v251_v42, %s3124_s13  ;;  %v489_v41 = vmul.f32 %v485_v35, %v3164_v3  ;;  %v517_v42 = vstv %s2979_s19  ;;  %s3004_s19 = sld [smem:[#allocation2 + $0x47]] }
  0x5e   :  { %v519_v47 = vmul.f32 %v517_v42, %v3169_v4  ;;  %v521_v55 = vmul.f32 %v517_v42, %v3164_v3  ;;  %v520_v56 = vmul.f32 %v517_v42, %v3154_v0 }
  0x5f   :  { %v498_v50 = vrot.slane %v489_v41, 1  ;;  %v696_v41 = vmul.f32 %v694_v34, %v3169_v4 }
  0x60   :  { %v527_v52 = vrot.slane %v519_v47, 1  ;;  %v530_v61 = vrot.slane %v521_v55, 1  ;;  %v529_v62 = vrot.slane %v520_v56, 1  ;;  %v726_v55 = vstv %s2986_s22  ;;  %s3007_s22 = sld [smem:[#allocation2 + $0x17]] }
  0x61   :  { %265 = vrot.lane.b32.xlu1 %v254_v45, %s3124_s13  ;;  %263 = vrot.lane.b32.xlu0 %v253_v46, %s3124_s13  ;;  %v494_v45 = vrot.slane %v486_v40, 1  ;;  %v488_v46 = vmul.f32 %v485_v35, %v3154_v0 }
  0x62   :  { %v531_v5 = vsel %vm285_vm0, %v529_v62, %v530_v61 }
  0x63   :  { %v496_v49 = vsel %vm285_vm0, %v494_v45, %v495_v44  ;;  %v497_v51 = vrot.slane %v488_v46, 1 }
  0x65   :  { %342 = vrot.lane.b32.xlu1 %v335_v48, %s3121_s30  ;;  %340 = vrot.lane.b32.xlu0 %v336_v53, %s3121_s30  ;;  %v518_v48 = vmul.f32 %v517_v42, %v3159_v1  ;;  %v695_v42 = vmul.f32 %v694_v34, %v3159_v1 }
  0x67   :  { %v526_v53 = vrot.slane %v518_v48, 1  ;;  %v704_v48 = vrot.slane %v696_v41, 2 }
  0x69   :  { %346 = vrot.lane.b32.xlu1 %v338_v54, %s3121_s30  ;;  %344 = vrot.lane.b32.xlu0 %v339_v58, %s3121_s30  ;;  %v499_v54 = vsel %vm285_vm0, %v497_v51, %v498_v50  ;;  %v551_v58 = vmul.f32 %v549_v57, %v3169_v4  ;;  %v528_v60 = vsel %vm285_vm0, %v526_v53, %v527_v52 }
  0x6a   :  { %v698_v51 = vmul.f32 %v694_v34, %v3164_v3 }
  0x6d   :  { %374 = vrot.lane.b32.xlu1 %v367_v59, %s3121_s30  ;;  %372 = vrot.lane.b32.xlu0 %v368_v2, %s3121_s30  ;;  %v550_v59 = vmul.f32 %v549_v57, %v3159_v1  ;;  %v707_v57 = vrot.slane %v698_v51, 2 }
  0x6f   :  { %v558_v2 = vrot.slane %v550_v59, 1  ;;  %v728_v59 = vmul.f32 %v726_v55, %v3169_v4 }
  0x71   :  { %378 = vrot.lane.b32.xlu1 %v370_v63, %s3121_s30  ;;  %376 = vrot.lane.b32.xlu0 %v371_v10, %s3121_s30  ;;  %v559_v63 = vrot.slane %v551_v58, 1  ;;  %v630_v10 = vstv %s2983_s0  ;;  %v736_v6 = vrot.slane %v728_v59, 2  ;;  %s3029_s0 = sld [smem:[#allocation2 + $0x20]] }
  0x72   :  { %v632_v14 = vmul.f32 %v630_v10, %v3169_v4  ;;  %v634_v18 = vmul.f32 %v630_v10, %v3164_v3  ;;  %v633_v22 = vmul.f32 %v630_v10, %v3154_v0 }
  0x74   :  { %v642_v28 = vrot.slane %v633_v22, 2 }
  0x75   :  { %406 = vrot.lane.b32.xlu1 %v399_v11, %s3122_s6  ;;  %404 = vrot.lane.b32.xlu0 %v400_v15, %s3122_s6  ;;  %v560_v11 = vsel %vm285_vm0, %v558_v2, %v559_v63  ;;  %v631_v15 = vmul.f32 %v630_v10, %v3159_v1  ;;  %v758_v2 = vstv %s2987_s23  ;;  %v729_v10 = vmul.f32 %v726_v55, %v3154_v0  ;;  %s3008_s23 = sld [smem:[#allocation2 + $0x49]] }
  0x76   :  { %v760_v13 = vmul.f32 %v758_v2, %v3169_v4 }
  0x78   :  { %v768_v22 = vrot.slane %v760_v13, 2 }
  0x79   :  { %410 = vrot.lane.b32.xlu1 %v402_v16, %s3122_s6  ;;  %408 = vrot.lane.b32.xlu0 %v403_v20, %s3122_s6  ;;  %v640_v20 = vrot.slane %v632_v14, 2  ;;  %v759_v14 = vmul.f32 %v758_v2, %v3159_v1 }
  0x7d   :  { %438 = vrot.lane.b32.xlu1 %v431_v21, %s3122_s6  ;;  %436 = vrot.lane.b32.xlu0 %v432_v26, %s3122_s6  ;;  %v639_v21 = vrot.slane %v631_v15, 2  ;;  %v643_v26 = vrot.slane %v634_v18, 2 }
  0x7f   :  { %v641_v27 = vsel %vm590_vm1, %v639_v21, %v640_v20  ;;  %v644_v35 = vsel %vm590_vm1, %v642_v28, %v643_v26  ;;  %v761_v28 = vmul.f32 %v758_v2, %v3154_v0 }
  0x81   :  { %442 = vrot.lane.b32.xlu1 %v434_v25, %s3122_s6  ;;  %440 = vrot.lane.b32.xlu0 %v435_v31, %s3122_s6  ;;  %v662_v25 = vstv %s2984_s1  ;;  %s3005_s1 = sld [smem:[#allocation2 + $0x16]] }
  0x82   :  { %v664_v29 = vmul.f32 %v662_v25, %v3169_v4  ;;  %v663_v30 = vmul.f32 %v662_v25, %v3159_v1  ;;  %v666_v33 = vmul.f32 %v662_v25, %v3164_v3  ;;  %v665_v38 = vmul.f32 %v662_v25, %v3154_v0 }
  0x83   :  { %v767_v25 = vrot.slane %v759_v14, 2 }
  0x84   :  { %v674_v45 = vrot.slane %v665_v38, 2 }
  0x85   :  { %470 = vrot.lane.b32.xlu1 %v463_v32, %s3123_s9  ;;  %468 = vrot.lane.b32.xlu0 %v464_v37, %s3123_s9  ;;  %v671_v37 = vrot.slane %v663_v30, 2 }
  0x89   :  { %474 = vrot.lane.b32.xlu1 %v466_v36, %s3123_s9  ;;  %472 = vrot.lane.b32.xlu0 %v467_v43, %s3123_s9  ;;  %v672_v36 = vrot.slane %v664_v29, 2 }
  0x8b   :  { %v673_v43 = vsel %vm590_vm1, %v671_v37, %v672_v36 }
  0x8d   :  { %502 = vrot.lane.b32.xlu1 %v495_v44, %s3123_s9  ;;  %500 = vrot.lane.b32.xlu0 %v496_v49, %s3123_s9  ;;  %v675_v44 = vrot.slane %v666_v33, 2  ;;  %v703_v49 = vrot.slane %v695_v42, 2  ;;  %v790_v33 = vstv %s2988_s24  ;;  %s3009_s24 = sld [smem:[#allocation2 + $0x18]] }
  0x8e   :  { %v792_v37 = vmul.f32 %v790_v33, %v3169_v4  ;;  %v791_v38 = vmul.f32 %v790_v33, %v3159_v1 }
  0x8f   :  { %v705_v56 = vsel %vm590_vm1, %v703_v49, %v704_v48 }
  0x90   :  { %v799_v49 = vrot.slane %v791_v38, 2 }
  0x91   :  { %506 = vrot.lane.b32.xlu1 %v498_v50, %s3123_s9  ;;  %504 = vrot.lane.b32.xlu0 %v499_v54, %s3123_s9  ;;  %v676_v50 = vsel %vm590_vm1, %v674_v45, %v675_v44 }
  0x95   :  { %534 = vrot.lane.b32.xlu1 %v527_v52, %s3124_s13  ;;  %532 = vrot.lane.b32.xlu0 %v528_v60, %s3124_s13  ;;  %v697_v52 = vmul.f32 %v694_v34, %v3154_v0  ;;  %v727_v60 = vmul.f32 %v726_v55, %v3159_v1  ;;  %v769_v34 = vsel %vm590_vm1, %v767_v25, %v768_v22 }
  0x97   :  { %v3307_v8 = vpop.permute.xlu1 %81  ;;  %v3309_v9 = vpop.permute.xlu0 %77  ;;  %v706_v58 = vrot.slane %v697_v52, 2  ;;  %v735_v7 = vrot.slane %v727_v60, 2  ;;  %v822_v52 = vstv %s2989_s25  ;;  %s3010_s25 = sld [smem:[#allocation2 + $0x4a]] }
  0x98   :  { %v823_v59 = vmul.f32 %v822_v52, %v3159_v1  ;;  %v825_v13 = vmul.f32 %v822_v52, %v3154_v0 }
  0x99   :  { %538 = vrot.lane.b32.xlu1 %v530_v61, %s3124_s13  ;;  %536 = vrot.lane.b32.xlu0 %v531_v5, %s3124_s13  ;;  %v708_v5 = vsel %vm590_vm1, %v706_v58, %v707_v57  ;;  %v737_v15 = vsel %vm590_vm1, %v735_v7, %v736_v6  ;;  %v824_v58 = vmul.f32 %v822_v52, %v3169_v4 }
  0x9a   :  { %v831_v7 = vrot.slane %v823_v59, 2  ;;  %v834_v25 = vrot.slane %v825_v13, 2 }
  0x9b   :  { %v3316_v16 = vpop.permute.xlu1 %83  ;;  %v3318_v17 = vpop.permute.xlu0 %79 }
  0x9d   :  { %566 = vrot.lane.b32.xlu1 %v559_v63, %s3124_s13  ;;  %564 = vrot.lane.b32.xlu0 %v560_v11, %s3124_s13  ;;  %v730_v63 = vmul.f32 %v726_v55, %v3164_v3 }
  0x9f   :  { %v3325_v23 = vpop.permute.xlu1 %105  ;;  %v3327_v24 = vpop.permute.xlu0 %103  ;;  %v739_v18 = vrot.slane %v730_v63, 2 }
  0xa1   :  { %570 = vrot.lane.b32.xlu1 %v562_v12, %s3124_s13  ;;  %568 = vrot.lane.b32.xlu0 %v563_v19, %s3124_s13  ;;  %v738_v19 = vrot.slane %v729_v10, 2  ;;  %v826_v10 = vmul.f32 %v822_v52, %v3164_v3 }
  0xa3   :  { %v3334_v31 = vpop.permute.xlu1 %109  ;;  %v3336_v32 = vpop.permute.xlu0 %107 }
  0xa5   :  { %647 = vrot.lane.b32.xlu1 %v640_v20, %s3121_s30  ;;  %645 = vrot.lane.b32.xlu0 %v641_v27, %s3121_s30  ;;  %v762_v27 = vmul.f32 %v758_v2, %v3164_v3 }
  0xa7   :  { %v3343_v39 = vpop.permute.xlu1 %131  ;;  %v3345_v40 = vpop.permute.xlu0 %129 }
  0xa9   :  { %651 = vrot.lane.b32.xlu1 %v643_v26, %s3121_s30  ;;  %649 = vrot.lane.b32.xlu0 %v644_v35, %s3121_s30  ;;  %v740_v26 = vsel %vm590_vm1, %v738_v19, %v739_v18  ;;  %v771_v35 = vrot.slane %v762_v27, 2 }
  0xab   :  { %v3352_v46 = vpop.permute.xlu1 %135  ;;  %v3354_v47 = vpop.permute.xlu0 %133 }
  0xad   :  { %679 = vrot.lane.b32.xlu1 %v672_v36, %s3121_s30  ;;  %677 = vrot.lane.b32.xlu0 %v673_v43, %s3121_s30  ;;  %v770_v36 = vrot.slane %v761_v28, 2  ;;  %v794_v43 = vmul.f32 %v790_v33, %v3164_v3 }
  0xaf   :  { %v3361_v53 = vpop.permute.xlu1 %157  ;;  %v3363_v54 = vpop.permute.xlu0 %155  ;;  %v772_v45 = vsel %vm590_vm1, %v770_v36, %v771_v35  ;;  %v803_v55 = vrot.slane %v794_v43, 2 }
  0xb1   :  { %683 = vrot.lane.b32.xlu1 %v675_v44, %s3121_s30  ;;  %681 = vrot.lane.b32.xlu0 %v676_v50, %s3121_s30  ;;  %v793_v44 = vmul.f32 %v790_v33, %v3154_v0 }
  0xb3   :  { %v3370_v61 = vpop.permute.xlu1 %161  ;;  %v3372_v62 = vpop.permute.xlu0 %159 }
  0xb4   :  { %5434 = vst [vmem:[#allocation8_spill] sm:$0xff] %v3372_v62 }
  0xb5   :  { %711 = vrot.lane.b32.xlu1 %v704_v48, %s3122_s6  ;;  %709 = vrot.lane.b32.xlu0 %v705_v56, %s3122_s6  ;;  %v800_v48 = vrot.slane %v792_v37, 2  ;;  %v802_v56 = vrot.slane %v793_v44, 2  ;;  %v935_v44 = vstv %s2993_s27  ;;  %s3981_s27 = sld [smem:[#allocation4 + $0x1]] }
  0xb6   :  { %v937_v52 = vmul.f32 %v935_v44, %v3169_v4  ;;  %v938_v59 = vmul.f32 %v935_v44, %v3154_v0 }
  0xb7   :  { %v3379_v11 = vpop.permute.xlu1 %183  ;;  %v3381_v12 = vpop.permute.xlu0 %181  ;;  %v804_v2 = vsel %vm590_vm1, %v802_v56, %v803_v55 }
  0xb8   :  { %5435 = vst [vmem:[#allocation9_spill] sm:$0xff] %v3379_v11  ;;  %5436 = vst [vmem:[#allocation10_spill] sm:$0xff] %v3381_v12 }
  0xb9   :  { %715 = vrot.lane.b32.xlu1 %v707_v57, %s3122_s6  ;;  %713 = vrot.lane.b32.xlu0 %v708_v5, %s3122_s6  ;;  %v801_v57 = vsel %vm590_vm1, %v799_v49, %v800_v48  ;;  %v854_v5 = vstv %s2990_s26  ;;  %s3017_s26 = sld [smem:[#allocation2 + $0x1a]] }
  0xba   :  { %v858_v33 = vmul.f32 %v854_v5, %v3164_v3  ;;  %v857_v37 = vmul.f32 %v854_v5, %v3154_v0 }
  0xbb   :  { %v3388_v20 = vpop.permute.xlu1 %187  ;;  %v3390_v21 = vpop.permute.xlu0 %185 }
  0xbc   :  { %5437 = vst [vmem:[#allocation11_spill] sm:$0xff] %v3388_v20  ;;  %5438 = vst [vmem:[#allocation12_spill] sm:$0xff] %v3390_v21  ;;  %v866_v49 = vrot.slane %v857_v37, 2 }
  0xbd   :  { %743 = vrot.lane.b32.xlu1 %v736_v6, %s3122_s6  ;;  %741 = vrot.lane.b32.xlu0 %v737_v15, %s3122_s6  ;;  %v832_v6 = vrot.slane %v824_v58, 2  ;;  %v939_v58 = vmul.f32 %v935_v44, %v3164_v3 }
  0xbf   :  { %v3397_v29 = vpop.permute.xlu1 %209  ;;  %v3399_v30 = vpop.permute.xlu0 %207  ;;  %v833_v19 = vsel %vm590_vm1, %v831_v7, %v832_v6  ;;  %v967_v7 = vstv %s2994_s28  ;;  %s3991_s28 = sld [smem:[#allocation2 + $0x37]] }
  0xc0   :  { %5439 = vst [vmem:[#allocation13_spill] sm:$0xff] %v3397_v29  ;;  %5440 = vst [vmem:[#allocation14_spill] sm:$0xff] %v3399_v30 }
  0xc1   :  { %747 = vrot.lane.b32.xlu1 %v739_v18, %s3122_s6  ;;  %745 = vrot.lane.b32.xlu0 %v740_v26, %s3122_s6  ;;  %v856_v18 = vmul.f32 %v854_v5, %v3169_v4  ;;  %v855_v26 = vmul.f32 %v854_v5, %v3159_v1  ;;  %v945_v5 = vrot.slane %v937_v52, 3  ;;  %v999_v52 = vstv %s2995_s29  ;;  %s4004_s29 = sld [smem:[#allocation2 + $0xa]] }
  0xc3   :  { %v3406_v41 = vpop.permute.xlu1 %213  ;;  %v3408_v42 = vpop.permute.xlu0 %211  ;;  %v863_v36 = vrot.slane %v855_v26, 2  ;;  %v947_v26 = vrot.slane %v938_v59, 3 }
  0xc4   :  { %5441 = vst [vmem:[#allocation15_spill] sm:$0xff] %v3406_v41  ;;  %5442 = vst [vmem:[#allocation16_spill] sm:$0xff] %v3408_v42 }
  0xc5   :  { %775 = vrot.lane.b32.xlu1 %v768_v22, %s3123_s9  ;;  %773 = vrot.lane.b32.xlu0 %v769_v34, %s3123_s9  ;;  %v835_v22 = vrot.slane %v826_v10, 2 }
  0xc7   :  { %v3415_v50 = vpop.permute.xlu1 %235  ;;  %v3417_v51 = vpop.permute.xlu0 %233  ;;  %v836_v34 = vsel %vm590_vm1, %v834_v25, %v835_v22  ;;  %v948_v25 = vrot.slane %v939_v58, 3 }
  0xc8   :  { %5443 = vst [vmem:[#allocation17_spill] sm:$0xff] %v3415_v50  ;;  %5444 = vst [vmem:[#allocation18_spill] sm:$0xff] %v3417_v51 }
  0xc9   :  { %779 = vrot.lane.b32.xlu1 %v771_v35, %s3123_s9  ;;  %777 = vrot.lane.b32.xlu0 %v772_v45, %s3123_s9  ;;  %v864_v35 = vrot.slane %v856_v18, 2  ;;  %v867_v45 = vrot.slane %v858_v33, 2  ;;  %v969_v18 = vmul.f32 %v967_v7, %v3169_v4  ;;  %v949_v37 = vsel %vm895_vm2, %v947_v26, %v948_v25 }
  0xcb   :  { %v3424_v60 = vpop.permute.xlu1 %239  ;;  %v3426_v63 = vpop.permute.xlu0 %237 }
  0xcc   :  { %5445 = vst [vmem:[#allocation19_spill] sm:$0xff] %v3424_v60  ;;  %5446 = vst [vmem:[#allocation20_spill] sm:$0xff] %v3426_v63 }
  0xcd   :  { %807 = vrot.lane.b32.xlu1 %v800_v48, %s3123_s9  ;;  %805 = vrot.lane.b32.xlu0 %v801_v57, %s3123_s9  ;;  %v865_v48 = vsel %vm590_vm1, %v863_v36, %v864_v35 }
  0xcf   :  { %v3433_v14 = vpop.permute.xlu1 %261  ;;  %v3435_v15 = vpop.permute.xlu0 %259 }
  0xd0   :  { %5447 = vst [vmem:[#allocation21_spill] sm:$0xff] %v3433_v14  ;;  %5448 = vst [vmem:[#allocation22_spill] sm:$0xff] %v3435_v15  ;;  %v301_v15 = vstv %s3991_s28 }
  0xd1   :  { %811 = vrot.lane.b32.xlu1 %v803_v55, %s3123_s9  ;;  %809 = vrot.lane.b32.xlu0 %v804_v2, %s3123_s9  ;;  %v936_v55 = vmul.f32 %v935_v44, %v3159_v1  ;;  %v868_v2 = vsel %vm590_vm1, %v866_v49, %v867_v45  ;;  %v971_v44 = vmul.f32 %v967_v7, %v3164_v3 }
  0xd3   :  { %v3442_v27 = vpop.permute.xlu1 %265  ;;  %v3444_v28 = vpop.permute.xlu0 %263  ;;  %v980_v58 = vrot.slane %v971_v44, 3 }
  0xd4   :  { %5449 = vst [vmem:[#allocation23_spill] sm:$0xff] %v3442_v27  ;;  %5450 = vst [vmem:[#allocation24_spill] sm:$0xff] %v3444_v28 }
  0xd5   :  { %839 = vrot.lane.b32.xlu1 %v832_v6, %s3124_s13  ;;  %837 = vrot.lane.b32.xlu0 %v833_v19, %s3124_s13  ;;  %v944_v6 = vrot.slane %v936_v55, 3  ;;  %v968_v19 = vmul.f32 %v967_v7, %v3159_v1 }
  0xd7   :  { %v3451_v38 = vpop.permute.xlu1 %342  ;;  %v3453_v43 = vpop.permute.xlu0 %340  ;;  %v976_v36 = vrot.slane %v968_v19, 3  ;;  %v1002_v19 = vmul.f32 %v999_v52, %v3154_v0 }
  0xd8   :  { %5451 = vst [vmem:[#allocation25_spill] sm:$0xff] %v3451_v38  ;;  %5452 = vst [vmem:[#allocation26_spill] sm:$0xff] %v3453_v43 }
  0xd9   :  { %843 = vrot.lane.b32.xlu1 %v835_v22, %s3124_s13  ;;  %841 = vrot.lane.b32.xlu0 %v836_v34, %s3124_s13  ;;  %v946_v22 = vsel %vm895_vm2, %v944_v6, %v945_v5 }
  0xdb   :  { %v3460_v56 = vpop.permute.xlu1 %346  ;;  %v3462_v57 = vpop.permute.xlu0 %344 }
  0xdc   :  { %5453 = vst [vmem:[#allocation27_spill] sm:$0xff] %v3460_v56  ;;  %5454 = vst [vmem:[#allocation28_spill] sm:$0xff] %v3462_v57 }
  0xdd   :  { %871 = vrot.lane.b32.xlu1 %v864_v35, %s3124_s13  ;;  %869 = vrot.lane.b32.xlu0 %v865_v48, %s3124_s13  ;;  %v977_v35 = vrot.slane %v969_v18, 3  ;;  %v1003_v18 = vmul.f32 %v999_v52, %v3164_v3 }
  0xdf   :  { %v3469_v10 = vpop.permute.xlu1 %374  ;;  %v3471_v13 = vpop.permute.xlu0 %372  ;;  %v978_v55 = vsel %vm895_vm2, %v976_v36, %v977_v35  ;;  %v1031_v36 = vstv %s2996_s4  ;;  %s4012_s4 = sld [smem:[#allocation2 + $0x22]] }
  0xe0   :  { %5455 = vst [vmem:[#allocation29_spill] sm:$0xff] %v3469_v10  ;;  %5456 = vst [vmem:[#allocation30_spill] sm:$0xff] %v3471_v13 }
  0xe1   :  { %875 = vrot.lane.b32.xlu1 %v867_v45, %s3124_s13  ;;  %873 = vrot.lane.b32.xlu0 %v868_v2, %s3124_s13  ;;  %v970_v45 = vmul.f32 %v967_v7, %v3154_v0  ;;  %v1001_v2 = vmul.f32 %v999_v52, %v3169_v4 }
  0xe3   :  { %v3478_v33 = vpop.permute.xlu1 %378  ;;  %v3480_v34 = vpop.permute.xlu0 %376  ;;  %v979_v59 = vrot.slane %v970_v45, 3  ;;  %v1011_v45 = vrot.slane %v1002_v19, 3  ;;  %v1034_v19 = vmul.f32 %v1031_v36, %v3154_v0 }
  0xe4   :  { %5457 = vst [vmem:[#allocation31_spill] sm:$0xff] %v3478_v33  ;;  %5458 = vst [vmem:[#allocation32_spill] sm:$0xff] %v3480_v34 }
  0xe5   :  { %952 = vrot.lane.b32.xlu1 %v945_v5, %s3121_s30  ;;  %950 = vrot.lane.b32.xlu0 %v946_v22, %s3121_s30  ;;  %v1000_v5 = vmul.f32 %v999_v52, %v3159_v1  ;;  %v981_v22 = vsel %vm895_vm2, %v979_v59, %v980_v58  ;;  %v1032_v59 = vmul.f32 %v1031_v36, %v3159_v1  ;;  %v1969_v51 = vstv %s4012_s4 }
  0xe7   :  { %v3487_v48 = vpop.permute.xlu1 %406  ;;  %v3489_v49 = vpop.permute.xlu0 %404  ;;  %v1008_v26 = vrot.slane %v1000_v5, 3 }
  0xe8   :  { %5459 = vst [vmem:[#allocation33_spill] sm:$0xff] %v3487_v48  ;;  %5460 = vst [vmem:[#allocation34_spill] sm:$0xff] %v3489_v49 }
  0xe9   :  { %956 = vrot.lane.b32.xlu1 %v948_v25, %s3121_s30  ;;  %954 = vrot.lane.b32.xlu0 %v949_v37, %s3121_s30  ;;  %v1009_v25 = vrot.slane %v1001_v2, 3 }
  0xeb   :  { %v3496_v6 = vpop.permute.xlu1 %410  ;;  %v3498_v7 = vpop.permute.xlu0 %408  ;;  %v1010_v52 = vsel %vm895_vm2, %v1008_v26, %v1009_v25 }
  0xec   :  { %5461 = vst [vmem:[#allocation35_spill] sm:$0xff] %v3496_v6  ;;  %5462 = vst [vmem:[#allocation36_spill] sm:$0xff] %v3498_v7 }
  0xed   :  { %984 = vrot.lane.b32.xlu1 %v977_v35, %s3121_s30  ;;  %982 = vrot.lane.b32.xlu0 %v978_v55, %s3121_s30  ;;  %v1012_v35 = vrot.slane %v1003_v18, 3  ;;  %v1033_v55 = vmul.f32 %v1031_v36, %v3169_v4  ;;  %v1035_v18 = vmul.f32 %v1031_v36, %v3164_v3 }
  0xef   :  { %v3505_v37 = vpop.permute.xlu1 %438  ;;  %v3507_v44 = vpop.permute.xlu0 %436 }
  0xf0   :  { %5463 = vst [vmem:[#allocation37_spill] sm:$0xff] %v3505_v37  ;;  %5464 = vst [vmem:[#allocation38_spill] sm:$0xff] %v3507_v44  ;;  %v1041_v44 = vrot.slane %v1033_v55, 3  ;;  %v1063_v37 = vstv %s2997_s5  ;;  %s3018_s5 = sld [smem:[#allocation2 + $0x4c]] }
  0xf1   :  { %988 = vrot.lane.b32.xlu1 %v980_v58, %s3121_s30  ;;  %986 = vrot.lane.b32.xlu0 %v981_v22, %s3121_s30  ;;  %v1013_v58 = vsel %vm895_vm2, %v1011_v45, %v1012_v35  ;;  %v1040_v22 = vrot.slane %v1032_v59, 3  ;;  %v1064_v45 = vmul.f32 %v1063_v37, %v3159_v1  ;;  %v1043_v59 = vrot.slane %v1034_v19, 3 }
  0xf2   :  { %v1095_v19 = vstv %s2998_s7  ;;  %s4089_s7 = sld [smem:[#allocation2 + $0x54]] }
  0xf3   :  { %v3514_v2 = vpop.permute.xlu1 %442  ;;  %v3516_v5 = vpop.permute.xlu0 %440  ;;  %v1042_v55 = vsel %vm895_vm2, %v1040_v22, %v1041_v44 }
  0xf4   :  { %5465 = vst [vmem:[#allocation39_spill] sm:$0xff] %v3514_v2  ;;  %5466 = vst [vmem:[#allocation40_spill] sm:$0xff] %v3516_v5  ;;  %v1066_v2 = vmul.f32 %v1063_v37, %v3154_v0 }
  0xf5   :  { %1016 = vrot.lane.b32.xlu1 %v1009_v25, %s3122_s6  ;;  %1014 = vrot.lane.b32.xlu0 %v1010_v52, %s3122_s6  ;;  %v1065_v25 = vmul.f32 %v1063_v37, %v3169_v4  ;;  %v1044_v52 = vrot.slane %v1035_v18, 3 }
  0xf7   :  { %v3523_v26 = vpop.permute.xlu1 %470  ;;  %v3525_v7 = vpop.permute.xlu0 %468 }
  0xf8   :  { %5467 = vst [vmem:[#allocation41_spill] sm:$0xff] %v3523_v26  ;;  %5468 = vst [vmem:[#allocation42_spill] sm:$0xff] %v3525_v7  ;;  %v1073_v7 = vrot.slane %v1065_v25, 3  ;;  %v1067_v26 = vmul.f32 %v1063_v37, %v3164_v3 }
  0xf9   :  { %1020 = vrot.lane.b32.xlu1 %v1012_v35, %s3122_s6  ;;  %1018 = vrot.lane.b32.xlu0 %v1013_v58, %s3122_s6  ;;  %v1072_v35 = vrot.slane %v1064_v45, 3  ;;  %v1045_v58 = vsel %vm895_vm2, %v1043_v59, %v1044_v52  ;;  %v1075_v45 = vrot.slane %v1066_v2, 3  ;;  %v1096_v59 = vmul.f32 %v1095_v19, %v3159_v1 }
  0xfa   :  { %v1076_v25 = vrot.slane %v1067_v26, 3 }
  0xfb   :  { %v3532_v5 = vpop.permute.xlu1 %474  ;;  %v3534_v36 = vpop.permute.xlu0 %472  ;;  %v1104_v2 = vrot.slane %v1096_v59, 3 }
  0xfc   :  { %5469 = vst [vmem:[#allocation43_spill] sm:$0xff] %v3532_v5  ;;  %5470 = vst [vmem:[#allocation44_spill] sm:$0xff] %v3534_v36 }
  0xfd   :  { %1048 = vrot.lane.b32.xlu1 %v1041_v44, %s3122_s6  ;;  %1046 = vrot.lane.b32.xlu0 %v1042_v55, %s3122_s6  ;;  %v1074_v44 = vsel %vm895_vm2, %v1072_v35, %v1073_v7  ;;  %v1097_v55 = vmul.f32 %v1095_v19, %v3169_v4  ;;  %v1077_v35 = vsel %vm895_vm2, %v1075_v45, %v1076_v25 }
  0xff   :  { %v3541_v22 = vpop.permute.xlu1 %502  ;;  %v3543_v18 = vpop.permute.xlu0 %500  ;;  %v1105_v26 = vrot.slane %v1097_v55, 3 }
 0x100   :  { %5471 = vst [vmem:[#allocation45_spill] sm:$0xff] %v3541_v22  ;;  %5472 = vst [vmem:[#allocation46_spill] sm:$0xff] %v3543_v18  ;;  %v1127_v18 = vstv %s2999_s8  ;;  %s4127_s8 = sld [smem:[#allocation2 + $0x24]] }
 0x101   :  { %1052 = vrot.lane.b32.xlu1 %v1044_v52, %s3122_s6  ;;  %1050 = vrot.lane.b32.xlu0 %v1045_v58, %s3122_s6  ;;  %v1099_v52 = vmul.f32 %v1095_v19, %v3164_v3  ;;  %v1098_v58 = vmul.f32 %v1095_v19, %v3154_v0  ;;  %v1106_v19 = vsel %vm895_vm2, %v1104_v2, %v1105_v26 }
 0x102   :  { %v1128_v45 = vmul.f32 %v1127_v18, %v3159_v1 }
 0x103   :  { %v3550_v36 = vpop.permute.xlu1 %506  ;;  %v3552_v37 = vpop.permute.xlu0 %504 }
 0x104   :  { %5473 = vst [vmem:[#allocation47_spill] sm:$0xff] %v3550_v36  ;;  %5474 = vst [vmem:[#allocation48_spill] sm:$0xff] %v3552_v37  ;;  %v1129_v37 = vmul.f32 %v1127_v18, %v3169_v4 }
 0x105   :  { %1080 = vrot.lane.b32.xlu1 %v1073_v7, %s3123_s9  ;;  %1078 = vrot.lane.b32.xlu0 %v1074_v44, %s3123_s9  ;;  %v1108_v7 = vrot.slane %v1099_v52, 3  ;;  %v1107_v44 = vrot.slane %v1098_v58, 3  ;;  %v1131_v52 = vmul.f32 %v1127_v18, %v3164_v3  ;;  %v1130_v58 = vmul.f32 %v1127_v18, %v3154_v0 }
 0x107   :  { %v3559_v22 = vpop.permute.xlu1 %534  ;;  %v3561_v5 = vpop.permute.xlu0 %532  ;;  %v1140_v18 = vrot.slane %v1131_v52, 3  ;;  %v3607_v52 = vld [vmem:[%s5419_s2 + $0x20] sm:$0xff] }
 0x108   :  { %5475 = vst [vmem:[#allocation49_spill] sm:$0xff] %v3559_v22  ;;  %5476 = vst [vmem:[#allocation50_spill] sm:$0xff] %v3561_v5  ;;  %v1137_v5 = vrot.slane %v1129_v37, 3  ;;  %v1159_v22 = vstv %s3000_s10  ;;  %v3587_v37 = vld [vmem:[%s5419_s2] sm:$0xff]  ;;  %s4162_s10 = sld [smem:[#allocation2 + $0xf]] }
 0x109   :  { %1084 = vrot.lane.b32.xlu1 %v1076_v25, %s3123_s9  ;;  %1082 = vrot.lane.b32.xlu0 %v1077_v35, %s3123_s9  ;;  %v1109_v25 = vsel %vm895_vm2, %v1107_v44, %v1108_v7  ;;  %v1136_v35 = vrot.slane %v1128_v45, 3  ;;  %v1160_v3 = vmul.f32 %v3587_v37, %v1159_v22  ;;  %v1139_v44 = vrot.slane %v1130_v58, 3 }
 0x10b   :  { %v3568_v55 = vpop.permute.xlu1 %538  ;;  %v3570_v59 = vpop.permute.xlu0 %536  ;;  %v1138_v0 = vsel %vm895_vm2, %v1136_v35, %v1137_v5 }
 0x10c   :  { %5477 = vst [vmem:[#allocation51_spill] sm:$0xff] %v3568_v55  ;;  %5478 = vst [vmem:[#allocation52_spill] sm:$0xff] %v3570_v59  ;;  %v1272_v59 = vstv %s3004_s19  ;;  %s3027_s19 = sld [smem:[#allocation2 + $0x1f]] }
 0x10d   :  { %1112 = vrot.lane.b32.xlu1 %v1105_v26, %s3123_s9  ;;  %1110 = vrot.lane.b32.xlu0 %v1106_v19, %s3123_s9  ;;  %v1161_v26 = vmul.f32 %v1159_v22, %v3169_v4 }
 0x10f   :  { %v3577_v2 = vpop.permute.xlu1 %566  ;;  %v3579_v1 = vpop.permute.xlu0 %564  ;;  %v1169_v4 = vrot.slane %v1161_v26, 3 }
 0x110   :  { %5479 = vst [vmem:[#allocation53_spill] sm:$0xff] %v3577_v2  ;;  %5480 = vst [vmem:[#allocation54_spill] sm:$0xff] %v3579_v1  ;;  %v3601_v1 = vld [vmem:[%s5419_s2 + $0x28] sm:$0xff] }
 0x111   :  { %1116 = vrot.lane.b32.xlu1 %v1108_v7, %s3123_s9  ;;  %1114 = vrot.lane.b32.xlu0 %v1109_v25, %s3123_s9  ;;  %v1168_v7 = vrot.slane %v1160_v3, 3  ;;  %v1141_v25 = vsel %vm895_vm2, %v1139_v44, %v1140_v18  ;;  %v1163_v35 = vmul.f32 %v3601_v1, %v1159_v22  ;;  %v1240_v3 = vstv %s3003_s11  ;;  %s4200_s11 = sld [smem:[#allocation2 + $0x41]] }
 0x112   :  { %v4082_v42 = vmul.f32 %v3601_v1, %v301_v15 }
 0x113   :  { %v3591_v19 = vpop.permute.xlu1 %570  ;;  %v3593_v45 = vpop.permute.xlu0 %568  ;;  %v1172_v44 = vrot.slane %v1163_v35, 3 }
 0x114   :  { %5481 = vst [vmem:[#allocation55_spill] sm:$0xff] %v3591_v19  ;;  %5482 = vst [vmem:[#allocation56_spill] sm:$0xff] %v3593_v45  ;;  %v3620_v19 = vld [vmem:[%s5419_s2 + $0x8] sm:$0xff]  ;;  %v5421_v62 = vrot.slane %v4082_v42, 1 }
 0x115   :  { %1144 = vrot.lane.b32.xlu1 %v1137_v5, %s3124_s13  ;;  %1142 = vrot.lane.b32.xlu0 %v1138_v0, %s3124_s13  ;;  %v1162_v5 = vmul.f32 %v3607_v52, %v1159_v22  ;;  %v1170_v0 = vsel %vm895_vm2, %v1168_v7, %v1169_v4  ;;  %v1242_v22 = vmul.f32 %v3620_v19, %v1240_v3 }
 0x116   :  { %v1243_v7 = vmul.f32 %v3607_v52, %v1240_v3 }
 0x117   :  { %v3610_v58 = vpop.permute.xlu1 %647  ;;  %v3612_v26 = vpop.permute.xlu0 %645  ;;  %v1171_v45 = vrot.slane %v1162_v5, 3  ;;  %v1250_v35 = vrot.slane %v1242_v22, 4 }
 0x118   :  { %5483 = vst [vmem:[#allocation57_spill] sm:$0xff] %v3610_v58  ;;  %5484 = vst [vmem:[#allocation58_spill] sm:$0xff] %v3612_v26  ;;  %v1241_v58 = vmul.f32 %v3587_v37, %v1240_v3 }
 0x119   :  { %1148 = vrot.lane.b32.xlu1 %v1140_v18, %s3124_s13  ;;  %1146 = vrot.lane.b32.xlu0 %v1141_v25, %s3124_s13  ;;  %v1244_v18 = vmul.f32 %v3601_v1, %v1240_v3  ;;  %v1173_v25 = vsel %vm895_vm2, %v1171_v45, %v1172_v44  ;;  %v1273_v45 = vmul.f32 %v3587_v37, %v1272_v59 }
 0x11a   :  { %v1249_v5 = vrot.slane %v1241_v58, 4 }
 0x11b   :  { %v3624_v2 = vpop.permute.xlu1 %651  ;;  %v3626_v26 = vpop.permute.xlu0 %649 }
 0x11c   :  { %5485 = vst [vmem:[#allocation59_spill] sm:$0xff] %v3624_v2  ;;  %5486 = vst [vmem:[#allocation60_spill] sm:$0xff] %v3626_v26  ;;  %v1274_v26 = vmul.f32 %v3620_v19, %v1272_v59  ;;  %v1251_v3 = vsel %vm1200_vm3, %v1249_v5, %v1250_v35 }
 0x11d   :  { %1176 = vrot.lane.b32.xlu1 %v1169_v4, %s3124_s13  ;;  %1174 = vrot.lane.b32.xlu0 %v1170_v0, %s3124_s13  ;;  %v1253_v4 = vrot.slane %v1244_v18, 4  ;;  %v1252_v0 = vrot.slane %v1243_v7, 4  ;;  %v1276_v18 = vmul.f32 %v3601_v1, %v1272_v59  ;;  %v1275_v7 = vmul.f32 %v3607_v52, %v1272_v59 }
 0x11f   :  { %v3633_v55 = vpop.permute.xlu1 %679  ;;  %v3635_v36 = vpop.permute.xlu0 %677 }
 0x120   :  { %5487 = vst [vmem:[#allocation61_spill] sm:$0xff] %v3633_v55  ;;  %5488 = vst [vmem:[#allocation62_spill] sm:$0xff] %v3635_v36  ;;  %v1282_v36 = vrot.slane %v1274_v26, 4  ;;  %v1304_v55 = vstv %s3005_s1  ;;  %s3030_s1 = sld [smem:[#allocation2 + $0x52]] }
 0x121   :  { %1180 = vrot.lane.b32.xlu1 %v1172_v44, %s3124_s13  ;;  %1178 = vrot.lane.b32.xlu0 %v1173_v25, %s3124_s13  ;;  %v1254_v44 = vsel %vm1200_vm3, %v1252_v0, %v1253_v4  ;;  %v1281_v25 = vrot.slane %v1273_v45, 4  ;;  %v1305_v0 = vmul.f32 %v3587_v37, %v1304_v55  ;;  %v1284_v45 = vrot.slane %v1275_v7, 4 }
 0x122   :  { %v1336_v7 = vstv %s3006_s21  ;;  %s47_s21 = sld [smem:[#allocation2]] }
 0x123   :  { %v3642_v58 = vpop.permute.xlu1 %683  ;;  %v3644_v22 = vpop.permute.xlu0 %681  ;;  %v1283_v26 = vsel %vm1200_vm3, %v1281_v25, %v1282_v36 }
 0x124   :  { %5489 = vst [vmem:[#allocation63_spill] sm:$0xff] %v3642_v58  ;;  %5490 = vst [vmem:[#allocation64_spill] sm:$0xff] %v3644_v22  ;;  %v1307_v58 = vmul.f32 %v3607_v52, %v1304_v55 }
 0x125   :  { %1257 = vrot.lane.b32.xlu1 %v1250_v35, %s3121_s30  ;;  %1255 = vrot.lane.b32.xlu0 %v1251_v3, %s3121_s30  ;;  %v1306_v35 = vmul.f32 %v3620_v19, %v1304_v55  ;;  %v1285_v3 = vrot.slane %v1276_v18, 4 }
 0x127   :  { %v3651_v5 = vpop.permute.xlu1 %711  ;;  %v3653_v2 = vpop.permute.xlu0 %709 }
 0x128   :  { %5491 = vst [vmem:[#allocation65_spill] sm:$0xff] %v3651_v5  ;;  %5492 = vst [vmem:[#allocation66_spill] sm:$0xff] %v3653_v2  ;;  %v1314_v2 = vrot.slane %v1306_v35, 4  ;;  %v1308_v5 = vmul.f32 %v3601_v1, %v1304_v55 }
 0x129   :  { %1261 = vrot.lane.b32.xlu1 %v1253_v4, %s3121_s30  ;;  %1259 = vrot.lane.b32.xlu0 %v1254_v44, %s3121_s30  ;;  %v1313_v4 = vrot.slane %v1305_v0, 4  ;;  %v1286_v44 = vsel %vm1200_vm3, %v1284_v45, %v1285_v3  ;;  %v1316_v0 = vrot.slane %v1307_v58, 4  ;;  %v1337_v45 = vmul.f32 %v3587_v37, %v1336_v7 }
 0x12a   :  { %v1317_v35 = vrot.slane %v1308_v5, 4 }
 0x12b   :  { %v3660_v22 = vpop.permute.xlu1 %715  ;;  %v3662_v59 = vpop.permute.xlu0 %713  ;;  %v1345_v58 = vrot.slane %v1337_v45, 4 }
 0x12c   :  { %5493 = vst [vmem:[#allocation67_spill] sm:$0xff] %v3660_v22  ;;  %5494 = vst [vmem:[#allocation68_spill] sm:$0xff] %v3662_v59 }
 0x12d   :  { %1289 = vrot.lane.b32.xlu1 %v1282_v36, %s3121_s30  ;;  %1287 = vrot.lane.b32.xlu0 %v1283_v26, %s3121_s30  ;;  %v1315_v36 = vsel %vm1200_vm3, %v1313_v4, %v1314_v2  ;;  %v1338_v26 = vmul.f32 %v3620_v19, %v1336_v7  ;;  %v1318_v4 = vsel %vm1200_vm3, %v1316_v0, %v1317_v35 }
 0x12f   :  { %v3669_v25 = vpop.permute.xlu1 %743  ;;  %v3671_v18 = vpop.permute.xlu0 %741  ;;  %v1346_v5 = vrot.slane %v1338_v26, 4 }
 0x130   :  { %5495 = vst [vmem:[#allocation69_spill] sm:$0xff] %v3669_v25  ;;  %5496 = vst [vmem:[#allocation70_spill] sm:$0xff] %v3671_v18  ;;  %v1368_v18 = vstv %s3007_s22  ;;  %s3031_s22 = sld [smem:[#allocation2 + $0x21]] }
 0x131   :  { %1293 = vrot.lane.b32.xlu1 %v1285_v3, %s3121_s30  ;;  %1291 = vrot.lane.b32.xlu0 %v1286_v44, %s3121_s30  ;;  %v1340_v3 = vmul.f32 %v3601_v1, %v1336_v7  ;;  %v1339_v44 = vmul.f32 %v3607_v52, %v1336_v7  ;;  %v1347_v7 = vsel %vm1200_vm3, %v1345_v58, %v1346_v5 }
 0x132   :  { %v1369_v0 = vmul.f32 %v3587_v37, %v1368_v18 }
 0x133   :  { %v3678_v59 = vpop.permute.xlu1 %747  ;;  %v3680_v55 = vpop.permute.xlu0 %745 }
 0x134   :  { %5497 = vst [vmem:[#allocation71_spill] sm:$0xff] %v3678_v59  ;;  %5498 = vst [vmem:[#allocation72_spill] sm:$0xff] %v3680_v55  ;;  %v1370_v55 = vmul.f32 %v3620_v19, %v1368_v18  ;;  %v1400_v59 = vstv %s3008_s23  ;;  %s39_s23 = sld [smem:[#allocation4]] }
 0x135   :  { %1321 = vrot.lane.b32.xlu1 %v1314_v2, %s3122_s6  ;;  %1319 = vrot.lane.b32.xlu0 %v1315_v36, %s3122_s6  ;;  %v1349_v2 = vrot.slane %v1340_v3, 4  ;;  %v1348_v36 = vrot.slane %v1339_v44, 4  ;;  %v1372_v3 = vmul.f32 %v3601_v1, %v1368_v18  ;;  %v1371_v44 = vmul.f32 %v3607_v52, %v1368_v18 }
 0x137   :  { %v3687_v25 = vpop.permute.xlu1 %775  ;;  %v3689_v22 = vpop.permute.xlu0 %773 }
 0x138   :  { %5499 = vst [vmem:[#allocation73_spill] sm:$0xff] %v3687_v25  ;;  %5500 = vst [vmem:[#allocation74_spill] sm:$0xff] %v3689_v22  ;;  %v1378_v22 = vrot.slane %v1370_v55, 4 }
 0x139   :  { %1325 = vrot.lane.b32.xlu1 %v1317_v35, %s3122_s6  ;;  %1323 = vrot.lane.b32.xlu0 %v1318_v4, %s3122_s6  ;;  %v1350_v35 = vsel %vm1200_vm3, %v1348_v36, %v1349_v2  ;;  %v1377_v4 = vrot.slane %v1369_v0, 4  ;;  %v1401_v36 = vmul.f32 %v3587_v37, %v1400_v59  ;;  %v1380_v0 = vrot.slane %v1371_v44, 4 }
 0x13b   :  { %v3696_v26 = vpop.permute.xlu1 %779  ;;  %v3698_v45 = vpop.permute.xlu0 %777  ;;  %v1379_v55 = vsel %vm1200_vm3, %v1377_v4, %v1378_v22 }
 0x13c   :  { %5501 = vst [vmem:[#allocation75_spill] sm:$0xff] %v3696_v26  ;;  %5502 = vst [vmem:[#allocation76_spill] sm:$0xff] %v3698_v45  ;;  %v1403_v26 = vmul.f32 %v3607_v52, %v1400_v59 }
 0x13d   :  { %1353 = vrot.lane.b32.xlu1 %v1346_v5, %s3122_s6  ;;  %1351 = vrot.lane.b32.xlu0 %v1347_v7, %s3122_s6  ;;  %v1402_v5 = vmul.f32 %v3620_v19, %v1400_v59  ;;  %v1381_v7 = vrot.slane %v1372_v3, 4  ;;  %v1432_v3 = vstv %s3009_s24  ;;  %s2962_s24 = sld [smem:[#allocation2 + $0x32]] }
 0x13f   :  { %v3705_v58 = vpop.permute.xlu1 %807  ;;  %v3707_v25 = vpop.permute.xlu0 %805 }
 0x140   :  { %5503 = vst [vmem:[#allocation77_spill] sm:$0xff] %v3705_v58  ;;  %5504 = vst [vmem:[#allocation78_spill] sm:$0xff] %v3707_v25  ;;  %v1410_v25 = vrot.slane %v1402_v5, 4  ;;  %v1404_v58 = vmul.f32 %v3601_v1, %v1400_v59  ;;  %v1412_v5 = vrot.slane %v1403_v26, 4 }
 0x141   :  { %1357 = vrot.lane.b32.xlu1 %v1349_v2, %s3122_s6  ;;  %1355 = vrot.lane.b32.xlu0 %v1350_v35, %s3122_s6  ;;  %v1409_v2 = vrot.slane %v1401_v36, 4  ;;  %v1382_v35 = vsel %vm1200_vm3, %v1380_v0, %v1381_v7  ;;  %v1434_v36 = vmul.f32 %v3620_v19, %v1432_v3 }
 0x142   :  { %v1413_v44 = vrot.slane %v1404_v58, 4 }
 0x143   :  { %v3714_v45 = vpop.permute.xlu1 %811  ;;  %v3716_v18 = vpop.permute.xlu0 %809  ;;  %v1442_v58 = vrot.slane %v1434_v36, 4 }
 0x144   :  { %5505 = vst [vmem:[#allocation79_spill] sm:$0xff] %v3714_v45  ;;  %5506 = vst [vmem:[#allocation80_spill] sm:$0xff] %v3716_v18 }
 0x145   :  { %1385 = vrot.lane.b32.xlu1 %v1378_v22, %s3123_s9  ;;  %1383 = vrot.lane.b32.xlu0 %v1379_v55, %s3123_s9  ;;  %v1411_v22 = vsel %vm1200_vm3, %v1409_v2, %v1410_v25  ;;  %v1433_v55 = vmul.f32 %v3587_v37, %v1432_v3  ;;  %v1414_v2 = vsel %vm1200_vm3, %v1412_v5, %v1413_v44 }
 0x147   :  { %v3723_v6 = vpop.permute.xlu1 %839  ;;  %v3725_v4 = vpop.permute.xlu0 %837  ;;  %v1441_v26 = vrot.slane %v1433_v55, 4 }
 0x148   :  { %5507 = vst [vmem:[#allocation81_spill] sm:$0xff] %v3723_v6  ;;  %5508 = vst [vmem:[#allocation82_spill] sm:$0xff] %v3725_v4  ;;  %v1464_v4 = vstv %s3010_s25  ;;  %s2971_s25 = sld [smem:[#allocation2 + $0x5]] }
 0x149   :  { %1389 = vrot.lane.b32.xlu1 %v1381_v7, %s3123_s9  ;;  %1387 = vrot.lane.b32.xlu0 %v1382_v35, %s3123_s9  ;;  %v1436_v7 = vmul.f32 %v3601_v1, %v1432_v3  ;;  %v1435_v35 = vmul.f32 %v3607_v52, %v1432_v3  ;;  %v1465_v3 = vmul.f32 %v3587_v37, %v1464_v4 }
 0x14b   :  { %v3732_v0 = vpop.permute.xlu1 %843  ;;  %v3734_v59 = vpop.permute.xlu0 %841 }
 0x14c   :  { %5509 = vst [vmem:[#allocation83_spill] sm:$0xff] %v3732_v0  ;;  %5510 = vst [vmem:[#allocation84_spill] sm:$0xff] %v3734_v59  ;;  %v1444_v59 = vrot.slane %v1435_v35, 4  ;;  %v1466_v0 = vmul.f32 %v3620_v19, %v1464_v4  ;;  %v1467_v35 = vmul.f32 %v3607_v52, %v1464_v4 }
 0x14d   :  { %1417 = vrot.lane.b32.xlu1 %v1410_v25, %s3123_s9  ;;  %1415 = vrot.lane.b32.xlu0 %v1411_v22, %s3123_s9  ;;  %v1445_v25 = vrot.slane %v1436_v7, 4  ;;  %v1443_v22 = vsel %vm1200_vm3, %v1441_v26, %v1442_v58  ;;  %v1468_v7 = vmul.f32 %v3601_v1, %v1464_v4 }
 0x14e   :  { %v1474_v55 = vrot.slane %v1466_v0, 4 }
 0x14f   :  { %v3741_v18 = vpop.permute.xlu1 %871  ;;  %v3743_v45 = vpop.permute.xlu0 %869 }
 0x150   :  { %5511 = vst [vmem:[#allocation85_spill] sm:$0xff] %v3741_v18  ;;  %5512 = vst [vmem:[#allocation86_spill] sm:$0xff] %v3743_v45 }
 0x151   :  { %1421 = vrot.lane.b32.xlu1 %v1413_v44, %s3123_s9  ;;  %1419 = vrot.lane.b32.xlu0 %v1414_v2, %s3123_s9  ;;  %v1446_v44 = vsel %vm1200_vm3, %v1444_v59, %v1445_v25  ;;  %v1473_v2 = vrot.slane %v1465_v3, 4  ;;  %v1521_v3 = vstv %s3017_s26  ;;  %s3979_s26 = sld [smem:[#allocation2 + $0x53]] }
 0x153   :  { %v3750_v5 = vpop.permute.xlu1 %875  ;;  %v3752_v36 = vpop.permute.xlu0 %873 }
 0x154   :  { %5513 = vst [vmem:[#allocation87_spill] sm:$0xff] %v3750_v5  ;;  %5514 = vst [vmem:[#allocation88_spill] sm:$0xff] %v3752_v36  ;;  %v1476_v36 = vrot.slane %v1467_v35, 4  ;;  %v3794_v35 = vld [vmem:[%s5419_s2 + $0x38] sm:$0xff] }
 0x155   :  { %1449 = vrot.lane.b32.xlu1 %v1442_v58, %s3124_s13  ;;  %1447 = vrot.lane.b32.xlu0 %v1443_v22, %s3124_s13  ;;  %v1475_v58 = vsel %vm1200_vm3, %v1473_v2, %v1474_v55  ;;  %v1477_v22 = vrot.slane %v1468_v7, 4 }
 0x157   :  { %v3759_v26 = vpop.permute.xlu1 %952  ;;  %v3761_v45 = vpop.permute.xlu0 %950  ;;  %v1478_v4 = vsel %vm1200_vm3, %v1476_v36, %v1477_v22  ;;  %v1937_v57 = vstv %s3979_s26  ;;  %s5035_s26 = sld [smem:[#allocation2 + $0x60]] }
 0x158   :  { %5515 = vst [vmem:[#allocation89_spill] sm:$0xff] %v3759_v26  ;;  %5516 = vst [vmem:[#allocation90_spill] sm:$0xff] %v3761_v45 }
 0x159   :  { %1453 = vrot.lane.b32.xlu1 %v1445_v25, %s3124_s13  ;;  %1451 = vrot.lane.b32.xlu0 %v1446_v44, %s3124_s13  ;;  %v3776_v25 = vld [vmem:[%s5419_s2 + $0x18] sm:$0xff]  ;;  %v3781_v44 = vld [vmem:[%s5419_s2 + $0x10] sm:$0xff] }
 0x15a   :  { %v1523_v36 = vmul.f32 %v3776_v25, %v1521_v3  ;;  %v1938_v63 = vmul.f32 %v3781_v44, %v1937_v57 }
 0x15b   :  { %v3766_v59 = vpop.permute.xlu1 %956  ;;  %v3768_v0 = vpop.permute.xlu0 %954 }
 0x15c   :  { %5517 = vst [vmem:[#allocation91_spill] sm:$0xff] %v3766_v59  ;;  %5518 = vst [vmem:[#allocation92_spill] sm:$0xff] %v3768_v0  ;;  %v1547_v0 = vstv %s3018_s5  ;;  %s4021_s5 = sld [smem:[#allocation2 + $0x3c]] }
 0x15d   :  { %1481 = vrot.lane.b32.xlu1 %v1474_v55, %s3124_s13  ;;  %1479 = vrot.lane.b32.xlu0 %v1475_v58, %s3124_s13  ;;  %v1522_v55 = vmul.f32 %v3781_v44, %v1521_v3  ;;  %v3799_v58 = vld [vmem:[%s5419_s2 + $0x30] sm:$0xff] }
 0x15f   :  { %v3783_v2 = vpop.permute.xlu1 %984  ;;  %v3785_v7 = vpop.permute.xlu0 %982 }
 0x160   :  { %5519 = vst [vmem:[#allocation93_spill] sm:$0xff] %v3783_v2  ;;  %5520 = vst [vmem:[#allocation94_spill] sm:$0xff] %v3785_v7 }
 0x161   :  { %1485 = vrot.lane.b32.xlu1 %v1477_v22, %s3124_s13  ;;  %1483 = vrot.lane.b32.xlu0 %v1478_v4, %s3124_s13  ;;  %v1525_v22 = vmul.f32 %v3794_v35, %v1521_v3  ;;  %v1524_v4 = vmul.f32 %v3799_v58, %v1521_v3  ;;  %v1551_v3 = vmul.f32 %v3794_v35, %v1547_v0 }
 0x162   :  { %v606_v41 = vstv %s4021_s5 }
 0x163   :  { %v3801_v2 = vpop.permute.xlu1 %988  ;;  %v3803_v7 = vpop.permute.xlu0 %986 }
 0x164   :  { %5521 = vst [vmem:[#allocation95_spill] sm:$0xff] %v3801_v2  ;;  %5522 = vst [vmem:[#allocation96_spill] sm:$0xff] %v3803_v7  ;;  %v1549_v7 = vmul.f32 %v3776_v25, %v1547_v0 }
 0x165   :  { %1532 = vrot.lane.b32.xlu1 %v1523_v36, %s3121_s30  ;;  %1530 = vrot.lane.b32.xlu0 %v1522_v55, %s3121_s30  ;;  %v1548_v36 = vmul.f32 %v3781_v44, %v1547_v0 }
 0x167   :  { %v3809_v59 = vpop.permute.xlu1 %1016  ;;  %v3811_v45 = vpop.permute.xlu0 %1014 }
 0x168   :  { %5523 = vst [vmem:[#allocation97_spill] sm:$0xff] %v3809_v59  ;;  %5524 = vst [vmem:[#allocation98_spill] sm:$0xff] %v3811_v45  ;;  %v1550_v45 = vmul.f32 %v3799_v58, %v1547_v0  ;;  %v1573_v59 = vstv %s3019_s12  ;;  %s4210_s12 = sld [smem:[#allocation2 + $0x56]] }
 0x169   :  { %1536 = vrot.lane.b32.xlu1 %v1525_v22, %s3121_s30  ;;  %1534 = vrot.lane.b32.xlu0 %v1524_v4, %s3121_s30  ;;  %v1577_v0 = vmul.f32 %v3794_v35, %v1573_v59 }
 0x16b   :  { %v3817_v2 = vpop.permute.xlu1 %1020  ;;  %v3819_v55 = vpop.permute.xlu0 %1018 }
 0x16c   :  { %5525 = vst [vmem:[#allocation99_spill] sm:$0xff] %v3817_v2  ;;  %5526 = vst [vmem:[#allocation100_spill] sm:$0xff] %v3819_v55  ;;  %v1575_v55 = vmul.f32 %v3776_v25, %v1573_v59 }
 0x16d   :  { %1558 = vrot.lane.b32.xlu1 %v1549_v7, %s3121_s30  ;;  %1556 = vrot.lane.b32.xlu0 %v1548_v36, %s3121_s30  ;;  %v1574_v7 = vmul.f32 %v3781_v44, %v1573_v59 }
 0x16f   :  { %v3825_v22 = vpop.permute.xlu1 %1048  ;;  %v3827_v4 = vpop.permute.xlu0 %1046 }
 0x170   :  { %5527 = vst [vmem:[#allocation101_spill] sm:$0xff] %v3825_v22  ;;  %5528 = vst [vmem:[#allocation102_spill] sm:$0xff] %v3827_v4  ;;  %v1576_v4 = vmul.f32 %v3799_v58, %v1573_v59  ;;  %v1599_v22 = vstv %s3020_s14  ;;  %s4575_s14 = sld [smem:[#allocation2 + $0x4b]] }
 0x171   :  { %1562 = vrot.lane.b32.xlu1 %v1551_v3, %s3121_s30  ;;  %1560 = vrot.lane.b32.xlu0 %v1550_v45, %s3121_s30  ;;  %v1603_v59 = vmul.f32 %v3794_v35, %v1599_v22 }
 0x173   :  { %v3833_v2 = vpop.permute.xlu1 %1052  ;;  %v3835_v36 = vpop.permute.xlu0 %1050 }
 0x174   :  { %5529 = vst [vmem:[#allocation103_spill] sm:$0xff] %v3833_v2  ;;  %5530 = vst [vmem:[#allocation104_spill] sm:$0xff] %v3835_v36  ;;  %v1601_v36 = vmul.f32 %v3776_v25, %v1599_v22 }
 0x175   :  { %1584 = vrot.lane.b32.xlu1 %v1575_v55, %s3122_s6  ;;  %1582 = vrot.lane.b32.xlu0 %v1574_v7, %s3122_s6  ;;  %v1600_v55 = vmul.f32 %v3781_v44, %v1599_v22 }
 0x177   :  { %v3841_v3 = vpop.permute.xlu1 %1080  ;;  %v3843_v45 = vpop.permute.xlu0 %1078 }
 0x178   :  { %5531 = vst [vmem:[#allocation105_spill] sm:$0xff] %v3841_v3  ;;  %5532 = vst [vmem:[#allocation106_spill] sm:$0xff] %v3843_v45  ;;  %v1602_v45 = vmul.f32 %v3799_v58, %v1599_v22  ;;  %v1625_v3 = vstv %s3021_s15  ;;  %s4616_s15 = sld [smem:[#allocation2 + $0x29]] }
 0x179   :  { %1588 = vrot.lane.b32.xlu1 %v1577_v0, %s3122_s6  ;;  %1586 = vrot.lane.b32.xlu0 %v1576_v4, %s3122_s6  ;;  %v1629_v22 = vmul.f32 %v3794_v35, %v1625_v3 }
 0x17b   :  { %v3849_v2 = vpop.permute.xlu1 %1084  ;;  %v3851_v7 = vpop.permute.xlu0 %1082 }
 0x17c   :  { %5533 = vst [vmem:[#allocation107_spill] sm:$0xff] %v3849_v2  ;;  %5534 = vst [vmem:[#allocation108_spill] sm:$0xff] %v3851_v7  ;;  %v1627_v7 = vmul.f32 %v3776_v25, %v1625_v3 }
 0x17d   :  { %1610 = vrot.lane.b32.xlu1 %v1601_v36, %s3122_s6  ;;  %1608 = vrot.lane.b32.xlu0 %v1600_v55, %s3122_s6  ;;  %v1626_v36 = vmul.f32 %v3781_v44, %v1625_v3 }
 0x17f   :  { %v3857_v0 = vpop.permute.xlu1 %1112  ;;  %v3859_v4 = vpop.permute.xlu0 %1110 }
 0x180   :  { %5535 = vst [vmem:[#allocation109_spill] sm:$0xff] %v3857_v0  ;;  %5536 = vst [vmem:[#allocation110_spill] sm:$0xff] %v3859_v4  ;;  %v1628_v4 = vmul.f32 %v3799_v58, %v1625_v3  ;;  %v1651_v0 = vstv %s3022_s16  ;;  %s4652_s16 = sld [smem:[#allocation2 + $0x1e]] }
 0x181   :  { %1614 = vrot.lane.b32.xlu1 %v1603_v59, %s3122_s6  ;;  %1612 = vrot.lane.b32.xlu0 %v1602_v45, %s3122_s6  ;;  %v1655_v3 = vmul.f32 %v3794_v35, %v1651_v0 }
 0x183   :  { %v3865_v2 = vpop.permute.xlu1 %1116  ;;  %v3867_v55 = vpop.permute.xlu0 %1114 }
 0x184   :  { %5537 = vst [vmem:[#allocation111_spill] sm:$0xff] %v3865_v2  ;;  %5538 = vst [vmem:[#allocation112_spill] sm:$0xff] %v3867_v55  ;;  %v1653_v55 = vmul.f32 %v3776_v25, %v1651_v0 }
 0x185   :  { %1636 = vrot.lane.b32.xlu1 %v1627_v7, %s3123_s9  ;;  %1634 = vrot.lane.b32.xlu0 %v1626_v36, %s3123_s9  ;;  %v1652_v7 = vmul.f32 %v3781_v44, %v1651_v0 }
 0x187   :  { %v3873_v59 = vpop.permute.xlu1 %1144  ;;  %v3875_v45 = vpop.permute.xlu0 %1142 }
 0x188   :  { %5539 = vst [vmem:[#allocation113_spill] sm:$0xff] %v3873_v59  ;;  %5540 = vst [vmem:[#allocation114_spill] sm:$0xff] %v3875_v45  ;;  %v1654_v45 = vmul.f32 %v3799_v58, %v1651_v0 }
 0x189   :  { %1640 = vrot.lane.b32.xlu1 %v1629_v22, %s3123_s9  ;;  %1638 = vrot.lane.b32.xlu0 %v1628_v4, %s3123_s9  ;;  %v1677_v22 = vstv %s3023_s17  ;;  %s4665_s17 = sld [smem:[#allocation2 + $0x5b]] }
 0x18a   :  { %v1681_v0 = vmul.f32 %v3794_v35, %v1677_v22 }
 0x18b   :  { %v3881_v2 = vpop.permute.xlu1 %1148  ;;  %v3883_v36 = vpop.permute.xlu0 %1146 }
 0x18c   :  { %5541 = vst [vmem:[#allocation115_spill] sm:$0xff] %v3881_v2  ;;  %5542 = vst [vmem:[#allocation116_spill] sm:$0xff] %v3883_v36  ;;  %v1679_v36 = vmul.f32 %v3776_v25, %v1677_v22 }
 0x18d   :  { %1662 = vrot.lane.b32.xlu1 %v1653_v55, %s3123_s9  ;;  %1660 = vrot.lane.b32.xlu0 %v1652_v7, %s3123_s9  ;;  %v1678_v55 = vmul.f32 %v3781_v44, %v1677_v22 }
 0x18f   :  { %v3889_v4 = vpop.permute.xlu1 %1176  ;;  %v3891_v59 = vpop.permute.xlu0 %1174 }
 0x190   :  { %5543 = vst [vmem:[#allocation117_spill] sm:$0xff] %v3889_v4  ;;  %5544 = vst [vmem:[#allocation118_spill] sm:$0xff] %v3891_v59  ;;  %v1680_v59 = vmul.f32 %v3799_v58, %v1677_v22  ;;  %v1703_v4 = vstv %s3024_s18  ;;  %s4701_s18 = sld [smem:[#allocation2 + $0x50]] }
 0x191   :  { %1666 = vrot.lane.b32.xlu1 %v1655_v3, %s3123_s9  ;;  %1664 = vrot.lane.b32.xlu0 %v1654_v45, %s3123_s9  ;;  %v1777_v3 = vstv %s3027_s19  ;;  %v1705_v5 = vmul.f32 %v3776_v25, %v1703_v4  ;;  %s4710_s19 = sld [smem:[#allocation2 + $0x2a]] }
 0x192   :  { %v1781_v18 = vmul.f32 %v3794_v35, %v1777_v3  ;;  %v1780_v6 = vmul.f32 %v3799_v58, %v1777_v3 }
 0x193   :  { %v3897_v7 = vpop.permute.xlu1 %1180  ;;  %v3899_v2 = vpop.permute.xlu0 %1178 }
 0x194   :  { %5545 = vst [vmem:[#allocation119_spill] sm:$0xff] %v3897_v7  ;;  %5546 = vst [vmem:[#allocation120_spill] sm:$0xff] %v3899_v2  ;;  %v1778_v2 = vmul.f32 %v3781_v44, %v1777_v3 }
 0x195   :  { %1688 = vrot.lane.b32.xlu1 %v1679_v36, %s3124_s13  ;;  %1686 = vrot.lane.b32.xlu0 %v1678_v55, %s3124_s13  ;;  %v1704_v36 = vmul.f32 %v3781_v44, %v1703_v4  ;;  %v1779_v55 = vmul.f32 %v3776_v25, %v1777_v3 }
 0x197   :  { %v3905_v26 = vpop.permute.xlu1 %1257  ;;  %v3907_v45 = vpop.permute.xlu0 %1255 }
 0x198   :  { %5547 = vst [vmem:[#allocation121_spill] sm:$0xff] %v3905_v26  ;;  %5548 = vst [vmem:[#allocation122_spill] sm:$0xff] %v3907_v45  ;;  %v1707_v45 = vmul.f32 %v3794_v35, %v1703_v4  ;;  %v1787_v26 = vrot.slane %v1779_v55, 1 }
 0x199   :  { %1692 = vrot.lane.b32.xlu1 %v1681_v0, %s3124_s13  ;;  %1690 = vrot.lane.b32.xlu0 %v1680_v59, %s3124_s13  ;;  %v1706_v0 = vmul.f32 %v3799_v58, %v1703_v4  ;;  %v1786_v59 = vrot.slane %v1778_v2, 1  ;;  %v1789_v4 = vrot.slane %v1780_v6, 1 }
 0x19b   :  { %v3915_v22 = vpop.permute.xlu1 %1261  ;;  %v3917_v7 = vpop.permute.xlu0 %1259 }
 0x19c   :  { %5549 = vst [vmem:[#allocation123_spill] sm:$0xff] %v3915_v22  ;;  %5550 = vst [vmem:[#allocation124_spill] sm:$0xff] %v3917_v7  ;;  %v1809_v7 = vstv %s3028_s20  ;;  %s4286_s20 = sld [smem:[#allocation2 + $0x25]] }
 0x19d   :  { %1714 = vrot.lane.b32.xlu1 %v1705_v5, %s3124_s13  ;;  %1712 = vrot.lane.b32.xlu0 %v1704_v36, %s3124_s13  ;;  %v1788_v5 = vsel %vm285_vm0, %v1786_v59, %v1787_v26  ;;  %v1790_v36 = vrot.slane %v1781_v18, 1  ;;  %v1811_v2 = vmul.f32 %v3776_v25, %v1809_v7  ;;  %v1810_v55 = vmul.f32 %v3781_v44, %v1809_v7 }
 0x19f   :  { %v3925_v49 = vpop.permute.xlu1 %1289  ;;  %v3927_v22 = vpop.permute.xlu0 %1287  ;;  %v1791_v59 = vsel %vm285_vm0, %v1789_v4, %v1790_v36  ;;  %v1819_v18 = vrot.slane %v1811_v2, 1  ;;  %v1818_v6 = vrot.slane %v1810_v55, 1 }
 0x1a0   :  { %5551 = vst [vmem:[#allocation125_spill] sm:$0xff] %v3925_v49  ;;  %5552 = vst [vmem:[#allocation126_spill] sm:$0xff] %v3927_v22  ;;  %v1841_v22 = vstv %s3029_s0  ;;  %s4805_s0 = sld [smem:[#allocation2 + $0x2b]] }
 0x1a1   :  { %1718 = vrot.lane.b32.xlu1 %v1707_v45, %s3124_s13  ;;  %1716 = vrot.lane.b32.xlu0 %v1706_v0, %s3124_s13  ;;  %v1813_v45 = vmul.f32 %v3794_v35, %v1809_v7  ;;  %v1812_v0 = vmul.f32 %v3799_v58, %v1809_v7  ;;  %v1820_v7 = vsel %vm285_vm0, %v1818_v6, %v1819_v18  ;;  %v1873_v6 = vstv %s3030_s1  ;;  %s4824_s1 = sld [smem:[#allocation2 + $0x5d]] }
 0x1a2   :  { %v1842_v4 = vmul.f32 %v3781_v44, %v1841_v22 }
 0x1a3   :  { %v3934_v48 = vpop.permute.xlu1 %1293  ;;  %v3936_v3 = vpop.permute.xlu0 %1291 }
 0x1a4   :  { %5553 = vst [vmem:[#allocation127_spill] sm:$0xff] %v3934_v48  ;;  %5554 = vst [vmem:[#allocation128_spill] sm:$0xff] %v3936_v3  ;;  %v1843_v3 = vmul.f32 %v3776_v25, %v1841_v22 }
 0x1a5   :  { %1794 = vrot.lane.b32.xlu1 %v1787_v26, %s3121_s30  ;;  %1792 = vrot.lane.b32.xlu0 %v1788_v5, %s3121_s30  ;;  %v1822_v26 = vrot.slane %v1813_v45, 1  ;;  %v1821_v5 = vrot.slane %v1812_v0, 1  ;;  %v1850_v45 = vrot.slane %v1842_v4, 1  ;;  %v1845_v0 = vmul.f32 %v3794_v35, %v1841_v22 }
 0x1a7   :  { %v3943_v49 = vpop.permute.xlu1 %1321  ;;  %v3945_v34 = vpop.permute.xlu0 %1319 }
 0x1a8   :  { %5555 = vst [vmem:[#allocation129_spill] sm:$0xff] %v3943_v49  ;;  %5556 = vst [vmem:[#allocation130_spill] sm:$0xff] %v3945_v34  ;;  %v1844_v34 = vmul.f32 %v3799_v58, %v1841_v22 }
 0x1a9   :  { %1798 = vrot.lane.b32.xlu1 %v1790_v36, %s3121_s30  ;;  %1796 = vrot.lane.b32.xlu0 %v1791_v59, %s3121_s30  ;;  %v1823_v36 = vsel %vm285_vm0, %v1821_v5, %v1822_v26  ;;  %v1851_v59 = vrot.slane %v1843_v3, 1  ;;  %v1874_v3 = vmul.f32 %v3781_v44, %v1873_v6 }
 0x1aa   :  { %v1853_v4 = vrot.slane %v1844_v34, 1 }
 0x1ab   :  { %v3952_v2 = vpop.permute.xlu1 %1325  ;;  %v3954_v55 = vpop.permute.xlu0 %1323  ;;  %v1852_v5 = vsel %vm285_vm0, %v1850_v45, %v1851_v59  ;;  %v1876_v45 = vmul.f32 %v3799_v58, %v1873_v6 }
 0x1ac   :  { %5557 = vst [vmem:[#allocation131_spill] sm:$0xff] %v3952_v2  ;;  %5558 = vst [vmem:[#allocation132_spill] sm:$0xff] %v3954_v55  ;;  %v1877_v2 = vmul.f32 %v3794_v35, %v1873_v6 }
 0x1ad   :  { %1826 = vrot.lane.b32.xlu1 %v1819_v18, %s3121_s30  ;;  %1824 = vrot.lane.b32.xlu0 %v1820_v7, %s3121_s30  ;;  %v1875_v18 = vmul.f32 %v3776_v25, %v1873_v6  ;;  %v1854_v7 = vrot.slane %v1845_v0, 1 }
 0x1ae   :  { %v1886_v6 = vrot.slane %v1877_v2, 1 }
 0x1af   :  { %v3961_v49 = vpop.permute.xlu1 %1353  ;;  %v3963_v48 = vpop.permute.xlu0 %1351 }
 0x1b0   :  { %5559 = vst [vmem:[#allocation133_spill] sm:$0xff] %v3961_v49  ;;  %5560 = vst [vmem:[#allocation134_spill] sm:$0xff] %v3963_v48  ;;  %v48_v48 = vstv %s47_s21  ;;  %v1855_v49 = vsel %vm285_vm0, %v1853_v4, %v1854_v7  ;;  %s4322_s21 = sld [smem:[#allocation2 + $0x14]] }
 0x1b1   :  { %1830 = vrot.lane.b32.xlu1 %v1822_v26, %s3121_s30  ;;  %1828 = vrot.lane.b32.xlu0 %v1823_v36, %s3121_s30  ;;  %v1883_v26 = vrot.slane %v1875_v18, 1  ;;  %v1882_v36 = vrot.slane %v1874_v3, 1  ;;  %v1885_v3 = vrot.slane %v1876_v45, 1  ;;  %v50_v2 = vmul.f32 %v3620_v19, %v48_v48 }
 0x1b2   :  { %v276_v45 = vstv %s2971_s25  ;;  %s4444_s25 = sld [smem:[#allocation2 + $0x58]] }
 0x1b3   :  { %v3970_v22 = vpop.permute.xlu1 %1357  ;;  %v3972_v55 = vpop.permute.xlu0 %1355  ;;  %v1884_v18 = vsel %vm285_vm0, %v1882_v36, %v1883_v26  ;;  %v58_v36 = vstv %s2962_s24  ;;  %s4391_s24 = sld [smem:[#allocation2 + $0x26]] }
 0x1b4   :  { %5561 = vst [vmem:[#allocation135_spill] sm:$0xff] %v3970_v22  ;;  %5562 = vst [vmem:[#allocation136_spill] sm:$0xff] %v3972_v55  ;;  %v1905_v55 = vstv %s3031_s22  ;;  %v60_v43 = vmul.f32 %v3620_v19, %v58_v36  ;;  %s4330_s22 = sld [smem:[#allocation2 + $0x57]] }
 0x1b5   :  { %1858 = vrot.lane.b32.xlu1 %v1851_v59, %s3122_s6  ;;  %1856 = vrot.lane.b32.xlu0 %v1852_v5, %s3122_s6  ;;  %v51_v59 = vmul.f32 %v3607_v52, %v48_v48  ;;  %v40_v5 = vstv %s39_s23  ;;  %v1907_v4 = vmul.f32 %v3776_v25, %v1905_v55  ;;  %v1909_v13 = vmul.f32 %v3794_v35, %v1905_v55  ;;  %s4383_s23 = sld [smem:[#allocation2 + $0x46]] }
 0x1b6   :  { %v4042_v27 = vadd.f32 %v50_v2, %v40_v5 }
 0x1b7   :  { %v3983_v34 = vpop.permute.xlu1 %1385  ;;  %v3985_v0 = vpop.permute.xlu0 %1383 }
 0x1b8   :  { %5563 = vst [vmem:[#allocation137_spill] sm:$0xff] %v3983_v34  ;;  %5564 = vst [vmem:[#allocation138_spill] sm:$0xff] %v3985_v0  ;;  %v1906_v34 = vmul.f32 %v3781_v44, %v1905_v55  ;;  %v49_v0 = vmul.f32 %v3587_v37, %v48_v48 }
 0x1b9   :  { %1862 = vrot.lane.b32.xlu1 %v1854_v7, %s3122_s6  ;;  %1860 = vrot.lane.b32.xlu0 %v1855_v49, %s3122_s6  ;;  %v4000_v7 = vadd.f32 %v51_v59, %v40_v5  ;;  %v52_v49 = vmul.f32 %v3601_v1, %v48_v48  ;;  %v1887_v59 = vsel %vm285_vm0, %v1885_v3, %v1886_v6  ;;  %v4017_v48 = vstv %s3981_s27  ;;  %s5142_s27 = sld [smem:[#allocation2 + $0x2f]] }
 0x1ba   :  { %v1914_v10 = vrot.slane %v1906_v34, 1  ;;  %v4014_v56 = vadd.f32 %v49_v0, %v40_v5  ;;  %v62_v34 = vmul.f32 %v3601_v1, %v58_v36  ;;  %v4029_v3 = vmul.f32 %v3620_v19, %v276_v45 }
 0x1bb   :  { %v3996_v22 = vpop.permute.xlu1 %1389  ;;  %v3998_v33 = vpop.permute.xlu0 %1387  ;;  %v4032_v0 = vmul.f32 %v3587_v37, %v276_v45  ;;  %v4037_v38 = vadd.f32 %v52_v49, %v40_v5  ;;  %v4048_v60 = vadd.f32 %v60_v43, %v4017_v48  ;;  %v1940_v43 = vmul.f32 %v3799_v58, %v1937_v57 }
 0x1bc   :  { %5565 = vst [vmem:[#allocation139_spill] sm:$0xff] %v3996_v22  ;;  %5566 = vst [vmem:[#allocation140_spill] sm:$0xff] %v3998_v33  ;;  %v1908_v22 = vmul.f32 %v3799_v58, %v1905_v55  ;;  %v1915_v33 = vrot.slane %v1907_v4, 1  ;;  %v4035_v4 = vmul.f32 %v3601_v1, %v276_v45 }
 0x1bd   :  { %1890 = vrot.lane.b32.xlu1 %v1883_v26, %s3122_s6  ;;  %1888 = vrot.lane.b32.xlu0 %v1884_v18, %s3122_s6  ;;  %v59_v26 = vmul.f32 %v3587_v37, %v58_v36  ;;  %v286_v2 = vrot.slane %v4032_v0, 1  ;;  %v1949_v21 = vrot.slane %v1940_v43, 1 }
 0x1be   :  { %v1917_v28 = vrot.slane %v1908_v22, 1  ;;  %v1916_v14 = vsel %vm285_vm0, %v1914_v10, %v1915_v33  ;;  %v4064_v10 = vadd.f32 %v62_v34, %v4017_v48  ;;  %v1946_v34 = vrot.slane %v1938_v63, 1 }
 0x1bf   :  { %v4023_v18 = vpop.permute.xlu1 %1417  ;;  %v4025_v55 = vpop.permute.xlu0 %1415  ;;  %v4051_v49 = vadd.f32 %v59_v26, %v4017_v48  ;;  %v304_v63 = vmul.f32 %v3607_v52, %v301_v15 }
 0x1c0   :  { %5567 = vst [vmem:[#allocation141_spill] sm:$0xff] %v4023_v18  ;;  %5568 = vst [vmem:[#allocation142_spill] sm:$0xff] %v4025_v55  ;;  %v1918_v18 = vrot.slane %v1909_v13, 1  ;;  %v1939_v55 = vmul.f32 %v3776_v25, %v1937_v57  ;;  %v4057_v13 = vmul.f32 %v3607_v52, %v276_v45  ;;  %v581_v45 = vstv %s4004_s29 }
 0x1c1   :  { %1894 = vrot.lane.b32.xlu1 %v1886_v6, %s3122_s6  ;;  %1892 = vrot.lane.b32.xlu0 %v1887_v59, %s3122_s6  ;;  %v4054_v6 = vmul.f32 %v3607_v52, %v58_v36  ;;  %v4070_v36 = vmul.f32 %v3620_v19, %v301_v15  ;;  %v302_v59 = vmul.f32 %v3587_v37, %v301_v15 }
 0x1c2   :  { %v1919_v26 = vsel %vm285_vm0, %v1917_v28, %v1918_v18  ;;  %v289_v0 = vrot.slane %v4057_v13, 1  ;;  %v4093_v28 = vmul.f32 %v3620_v19, %v581_v45  ;;  %v584_v50 = vmul.f32 %v3607_v52, %v581_v45 }
 0x1c3   :  { %v4059_v22 = vpop.permute.xlu1 %1421  ;;  %v4061_v5 = vpop.permute.xlu0 %1419  ;;  %v1970_v15 = vmul.f32 %v3781_v44, %v1969_v51  ;;  %v310_v20 = vrot.slane %v302_v59, 1  ;;  %v607_v13 = vmul.f32 %v3587_v37, %v606_v41  ;;  %v1973_v59 = vmul.f32 %v3794_v35, %v1969_v51 }
 0x1c4   :  { %5569 = vst [vmem:[#allocation143_spill] sm:$0xff] %v4059_v22  ;;  %5570 = vst [vmem:[#allocation144_spill] sm:$0xff] %v4061_v5  ;;  %v1947_v5 = vrot.slane %v1939_v55, 1  ;;  %v1941_v22 = vmul.f32 %v3794_v35, %v1937_v57  ;;  %v582_v57 = vmul.f32 %v3587_v37, %v581_v45  ;;  %v4097_v55 = vmul.f32 %v3601_v1, %v581_v45 }
 0x1c5   :  { %1922 = vrot.lane.b32.xlu1 %v1915_v33, %s3123_s9  ;;  %1920 = vrot.lane.b32.xlu0 %v1916_v14, %s3123_s9  ;;  %v4111_v45 = vmul.f32 %v3601_v1, %v606_v41  ;;  %v594_v43 = vrot.slane %v584_v50, 2 }
 0x1c6   :  { %v1948_v30 = vsel %vm285_vm0, %v1946_v34, %v1947_v5  ;;  %v1950_v29 = vrot.slane %v1941_v22, 1  ;;  %v591_v34 = vrot.slane %v582_v57, 2  ;;  %v615_v57 = vrot.slane %v607_v13, 2 }
 0x1c7   :  { %v4085_v33 = vpop.permute.xlu1 %1449  ;;  %v4087_v14 = vpop.permute.xlu0 %1447 }
 0x1c8   :  { %5571 = vst [vmem:[#allocation145_spill] sm:$0xff] %v4085_v33  ;;  %5572 = vst [vmem:[#allocation146_spill] sm:$0xff] %v4087_v14  ;;  %v1971_v14 = vmul.f32 %v3776_v25, %v1969_v51  ;;  %v4106_v33 = vmul.f32 %v3620_v19, %v606_v41  ;;  %v313_v19 = vrot.slane %v304_v63, 1  ;;  %v1972_v63 = vmul.f32 %v3799_v58, %v1969_v51 }
 0x1c9   :  { %1926 = vrot.lane.b32.xlu1 %v1918_v18, %s3123_s9  ;;  %1924 = vrot.lane.b32.xlu0 %v1919_v26, %s3123_s9  ;;  %v609_v18 = vmul.f32 %v3607_v52, %v606_v41  ;;  %v1978_v41 = vrot.slane %v1970_v15, 1  ;;  %v1951_v52 = vsel %vm285_vm0, %v1949_v21, %v1950_v29  ;;  %v5575_v21 = vrot.slane %v4029_v3, 1 }
 0x1ca   :  { %v1979_v1 = vrot.slane %v1971_v14, 1  ;;  %v65_v14 = vadd.f32 %v4054_v6, %v4017_v48  ;;  %v5576_v51 = vrot.slane %v4035_v4, 1  ;;  %v4155_v37 = vsel %vm285_vm0, %v313_v19, %v5421_v62 }
 0x1cb   :  { %v4114_v26 = vpop.permute.xlu1 %1453  ;;  %v4116_v12 = vpop.permute.xlu0 %1451  ;;  %v618_v50 = vrot.slane %v609_v18, 2  ;;  %v4140_v15 = vsel %vm285_vm0, %v286_v2, %v5575_v21  ;;  %v5577_v18 = vrot.slane %v4070_v36, 1  ;;  %v5578_v48 = vrot.slane %v4093_v28, 2 }
 0x1cc   :  { %v4145_v13 = vsel %vm285_vm0, %v289_v0, %v5576_v51  ;;  %v1980_v2 = vsel %vm285_vm0, %v1978_v41, %v1979_v1  ;;  %v1981_v0 = vrot.slane %v1972_v63, 1  ;;  %v91_v51 = vadd.f32 %v3307_v8, %v4000_v7 }
 0x1cd   :  { %1954 = vrot.lane.b32.xlu1 %v1947_v5, %s3123_s9  ;;  %1952 = vrot.lane.b32.xlu0 %v1948_v30, %s3123_s9  ;;  %v2001_v30 = vstv %s4089_s7  ;;  %v4150_v22 = vsel %vm285_vm0, %v310_v20, %v5577_v18  ;;  %v4160_v6 = vsel %vm590_vm1, %v591_v34, %v5578_v48  ;;  %v1982_v20 = vrot.slane %v1973_v59, 1 }
 0x1ce   :  { %v2003_v21 = vmul.f32 %v3776_v25, %v2001_v30  ;;  %v2002_v19 = vmul.f32 %v3781_v44, %v2001_v30  ;;  %v5579_v34 = vrot.slane %v4097_v55, 2  ;;  %v5581_v41 = vrot.slane %v4111_v45, 2 }
 0x1cf   :  { %v4130_v11 = vpop.permute.xlu1 %1481  ;;  %v4132_v5 = vpop.permute.xlu0 %1479  ;;  %v89_v8 = vadd.f32 %v3309_v9, %v4014_v56  ;;  %v92_v7 = vadd.f32 %v3316_v16, %v4037_v38  ;;  %v4205_v9 = vmul.f32 %v3794_v35, %v2001_v30  ;;  %v2004_v16 = vmul.f32 %v3799_v58, %v2001_v30 }
 0x1d0   :  { %5573 = vst [vmem:[#allocation147_spill] sm:$0xff] %v4130_v11  ;;  %5574 = vst [vmem:[#allocation148_spill] sm:$0xff] %v4132_v5  ;;  %v4174_v18 = vsel %vm590_vm1, %v594_v43, %v5579_v34  ;;  %v4184_v59 = vsel %vm590_vm1, %v618_v50, %v5581_v41  ;;  %v90_v43 = vadd.f32 %v3318_v17, %v4042_v27  ;;  %v2011_v27 = vrot.slane %v2003_v21, 1  ;;  %v5603_v5 = vld [vmem:[#allocation21_spill] sm:$0xff] }
 0x1d1   :  { %1958 = vrot.lane.b32.xlu1 %v1950_v29, %s3123_s9  ;;  %1956 = vrot.lane.b32.xlu0 %v1951_v52, %s3123_s9  ;;  %v5580_v29 = vrot.slane %v4106_v33, 2  ;;  %v115_v50 = vadd.f32 %v3327_v24, %v4051_v49  ;;  %v1983_v17 = vsel %vm285_vm0, %v1981_v0, %v1982_v20  ;;  %v2010_v38 = vrot.slane %v2002_v19, 1 }
 0x1d2   :  { %v118_v24 = vadd.f32 %v3334_v31, %v4064_v10  ;;  %v142_v56 = vadd.f32 %v3343_v39, %v90_v43  ;;  %v141_v49 = vadd.f32 %v3345_v40, %v89_v8  ;;  %v143_v0 = vadd.f32 %v3354_v47, %v91_v51  ;;  %v5589_v8 = vld [vmem:[#allocation12_spill] sm:$0xff] }
 0x1d3   :  { %v4179_v52 = vsel %vm590_vm1, %v615_v57, %v5580_v29  ;;  %v4186_v63 = vpop.permute.xlu1 %1485  ;;  %v4188_v48 = vpop.permute.xlu0 %1483  ;;  %v116_v57 = vadd.f32 %v3325_v23, %v4048_v60  ;;  %v2081_v23 = vstv %s4127_s8  ;;  %v117_v60 = vadd.f32 %v3336_v32, %v65_v14  ;;  %v5588_v29 = vld [vmem:[#allocation11_spill] sm:$0xff] }
 0x1d4   :  { %5582 = vst [vmem:[#allocation149_spill] sm:$0xff] %v4188_v48  ;;  %v167_v19 = vadd.f32 %v3363_v54, %v115_v50  ;;  %v886_v34 = vstv %s4162_s10  ;;  %v2014_v31 = vrot.slane %v4205_v9, 1  ;;  %v2013_v32 = vrot.slane %v2004_v16, 1  ;;  %v5586_v54 = vld [vmem:[#allocation8_spill] sm:$0xff]  ;;  %v5593_v9 = vld [vmem:[#allocation14_spill] sm:$0xff]  ;;  %s4504_s10 = sld [smem:[#allocation2 + $0x27]] }
 0x1d5   :  { %1986 = vrot.lane.b32.xlu1 %v1979_v1, %s3124_s13  ;;  %1984 = vrot.lane.b32.xlu0 %v1980_v2, %s3124_s13  ;;  %v144_v2 = vadd.f32 %v3352_v46, %v92_v7  ;;  %v168_v21 = vadd.f32 %v3361_v53, %v116_v57  ;;  %v4230_v39 = vmul.f32 %v3776_v25, %v2081_v23  ;;  %v5585_v46 = vld [vmem:[#allocation9_spill] sm:$0xff]  ;;  %v5604_v48 = vld [vmem:[#allocation22_spill] sm:$0xff] }
 0x1d6   :  { %v170_v40 = vadd.f32 %v3370_v61, %v118_v24  ;;  %v194_v10 = vadd.f32 %v5585_v46, %v142_v56  ;;  %v2012_v47 = vsel %vm285_vm0, %v2010_v38, %v2011_v27  ;;  %v2082_v53 = vmul.f32 %v3781_v44, %v2081_v23  ;;  %v5592_v61 = vld [vmem:[#allocation13_spill] sm:$0xff]  ;;  %v4258_v56 = vld [vmem:[%s5419_s2] sm:$0xff] }
 0x1d7   :  { %v4217_v1 = vpop.permute.xlu1 %1532  ;;  %v4219_v30 = vpop.permute.xlu0 %1530  ;;  %v169_v14 = vadd.f32 %v5586_v54, %v117_v60  ;;  %v196_v41 = vadd.f32 %v5588_v29, %v144_v2  ;;  %v195_v7 = vadd.f32 %v5589_v8, %v143_v0  ;;  %v220_v50 = vadd.f32 %v5592_v61, %v168_v21  ;;  %v4250_v24 = vld [vmem:[%s5419_s2 + $0x8] sm:$0xff]  ;;  %v5596_v8 = vld [vmem:[#allocation16_spill] sm:$0xff] }
 0x1d8   :  { %5583 = vst [vmem:[#allocation150_spill] sm:$0xff] %v4217_v1  ;;  %5584 = vst [vmem:[#allocation151_spill] sm:$0xff] %v4219_v30  ;;  %v219_v16 = vadd.f32 %v5593_v9, %v167_v19  ;;  %v4253_v60 = vmul.f32 %v4250_v24, %v886_v34  ;;  %v911_v2 = vstv %s4200_s11  ;;  %v2015_v0 = vsel %vm285_vm0, %v2013_v32, %v2014_v31  ;;  %v5597_v9 = vld [vmem:[#allocation18_spill] sm:$0xff]  ;;  %v5602_v30 = vld [vmem:[#allocation20_spill] sm:$0xff]  ;;  %s4551_s11 = sld [smem:[#allocation2 + $0x19]] }
 0x1d9   :  { %1990 = vrot.lane.b32.xlu1 %v1982_v20, %s3124_s13  ;;  %1988 = vrot.lane.b32.xlu0 %v1983_v17, %s3124_s13  ;;  %v5587_v20 = vld [vmem:[#allocation10_spill] sm:$0xff]  ;;  %v5594_v17 = vld [vmem:[#allocation17_spill] sm:$0xff]  ;;  %v2091_v21 = vrot.slane %v4230_v39, 2  ;;  %v2090_v19 = vrot.slane %v2082_v53, 2  ;;  %v2085_v46 = vmul.f32 %v3794_v35, %v2081_v23  ;;  %v2113_v54 = vstv %s4210_s12  ;;  %s4560_s12 = sld [smem:[#allocation2 + $0x59]] }
 0x1da   :  { %v193_v51 = vadd.f32 %v5587_v20, %v141_v49  ;;  %v246_v38 = vadd.f32 %v5594_v17, %v194_v10  ;;  %v4261_v49 = vmul.f32 %v4258_v56, %v886_v34  ;;  %v2084_v10 = vmul.f32 %v3799_v58, %v2081_v23  ;;  %v5595_v20 = vld [vmem:[#allocation15_spill] sm:$0xff] }
 0x1db   :  { %v4240_v43 = vpop.permute.xlu1 %1536  ;;  %v4242_v57 = vpop.permute.xlu0 %1534  ;;  %v222_v29 = vadd.f32 %v5595_v20, %v170_v40  ;;  %v221_v61 = vadd.f32 %v5596_v8, %v169_v14  ;;  %v5600_v23 = vrot.slane %v4029_v3, 1  ;;  %v4294_v14 = vld [vmem:[%s5419_s2 + $0x20] sm:$0xff]  ;;  %v4298_v20 = vmul.f32 %v4250_v24, %v911_v2 }
 0x1dc   :  { %5590 = vst [vmem:[#allocation9_spill] sm:$0xff] %v4240_v43  ;;  %5591 = vst [vmem:[#allocation8_spill] sm:$0xff] %v4242_v57  ;;  %v245_v17 = vadd.f32 %v5597_v9, %v193_v51  ;;  %v889_v51 = vmul.f32 %v4294_v14, %v886_v34  ;;  %v896_v8 = vrot.slane %v4261_v49, 3  ;;  %v912_v9 = vmul.f32 %v4258_v56, %v911_v2  ;;  %v5601_v49 = vld [vmem:[#allocation19_spill] sm:$0xff] }
 0x1dd   :  { %2018 = vrot.lane.b32.xlu1 %v2011_v27, %s3124_s13  ;;  %2016 = vrot.lane.b32.xlu0 %v2012_v47, %s3124_s13  ;;  %v4277_v27 = vld [vmem:[%s5419_s2 + $0x28] sm:$0xff]  ;;  %v297_v40 = vadd.f32 %v5600_v23, %v246_v38  ;;  %v2115_v3 = vmul.f32 %v3776_v25, %v2113_v54  ;;  %v2114_v38 = vmul.f32 %v3781_v44, %v2113_v54  ;;  %v2094_v62 = vrot.slane %v2085_v46, 2 }
 0x1de   :  { %v4280_v32 = vmul.f32 %v4277_v27, %v886_v34  ;;  %v4307_v23 = vmul.f32 %v4277_v27, %v911_v2  ;;  %v2092_v34 = vsel %vm590_vm1, %v2090_v19, %v2091_v21  ;;  %v2093_v53 = vrot.slane %v2084_v10, 2 }
 0x1df   :  { %v4282_v39 = vpop.permute.xlu1 %1558  ;;  %v4284_v47 = vpop.permute.xlu0 %1556  ;;  %v247_v1 = vadd.f32 %v5602_v30, %v195_v7  ;;  %v272_v11 = vadd.f32 %v5603_v5, %v220_v50  ;;  %v271_v19 = vadd.f32 %v5604_v48, %v219_v16  ;;  %v899_v46 = vrot.slane %v889_v51, 3  ;;  %v5605_v7 = vld [vmem:[#allocation23_spill] sm:$0xff]  ;;  %v5606_v16 = vld [vmem:[#allocation24_spill] sm:$0xff] }
 0x1e0   :  { %5598 = vst [vmem:[#allocation10_spill] sm:$0xff] %v4282_v39  ;;  %5599 = vst [vmem:[#allocation11_spill] sm:$0xff] %v4284_v47  ;;  %v296_v47 = vadd.f32 %v4140_v15, %v245_v17  ;;  %v248_v39 = vadd.f32 %v5601_v49, %v196_v41  ;;  %v5423_v57 = vrot.slane %v4280_v32, 3  ;;  %v5422_v10 = vrot.slane %v4298_v20, 3 }
 0x1e1   :  { %2022 = vrot.lane.b32.xlu1 %v2014_v31, %s3124_s13  ;;  %2020 = vrot.lane.b32.xlu0 %v2015_v0, %s3124_s13  ;;  %v914_v31 = vmul.f32 %v4294_v14, %v911_v2  ;;  %v920_v15 = vrot.slane %v912_v9, 3  ;;  %v2123_v41 = vrot.slane %v2115_v3, 2  ;;  %v2122_v2 = vrot.slane %v2114_v38, 2 }
 0x1e2   :  { %v2095_v30 = vsel %vm590_vm1, %v2093_v53, %v2094_v62  ;;  %v2117_v5 = vmul.f32 %v3794_v35, %v2113_v54  ;;  %v2116_v48 = vmul.f32 %v3799_v58, %v2113_v54  ;;  %v274_v50 = vadd.f32 %v5605_v7, %v222_v29 }
 0x1e3   :  { %v4314_v0 = vpop.permute.xlu1 %1562  ;;  %v4316_v43 = vpop.permute.xlu0 %1560  ;;  %v273_v51 = vadd.f32 %v5606_v16, %v221_v61  ;;  %v923_v9 = vrot.slane %v914_v31, 3  ;;  %v2145_v3 = vstv %s4286_s20  ;;  %v5607_v38 = vrot.slane %v4035_v4, 1  ;;  %v5617_v16 = vld [vmem:[#allocation28_spill] sm:$0xff]  ;;  %s4770_s20 = sld [smem:[#allocation2 + $0x5c]] }
 0x1e4   :  { %v298_v53 = vadd.f32 %v4145_v13, %v247_v1  ;;  %v5608_v17 = vrot.slane %v4253_v60, 3  ;;  %v4350_v29 = vsel %vm895_vm2, %v899_v46, %v5423_v57  ;;  %v5609_v61 = vrot.slane %v4070_v36, 1 }
 0x1e5   :  { %2098 = vrot.lane.b32.xlu1 %v2091_v21, %s3121_s30  ;;  %2096 = vrot.lane.b32.xlu0 %v2092_v34, %s3121_s30  ;;  %v299_v49 = vadd.f32 %v5607_v38, %v248_v39  ;;  %v320_v7 = vadd.f32 %v4150_v22, %v271_v19  ;;  %v2124_v4 = vsel %vm590_vm1, %v2122_v2, %v2123_v41  ;;  %v2126_v13 = vrot.slane %v2117_v5, 2  ;;  %v5615_v5 = vld [vmem:[#allocation26_spill] sm:$0xff] }
 0x1e6   :  { %v4345_v54 = vsel %vm895_vm2, %v896_v8, %v5608_v17  ;;  %v321_v31 = vadd.f32 %v5609_v61, %v272_v11  ;;  %v2125_v1 = vrot.slane %v2116_v48, 2  ;;  %v2147_v39 = vmul.f32 %v3776_v25, %v2145_v3 }
 0x1e7   :  { %v4334_v21 = vpop.permute.xlu1 %1584  ;;  %v4336_v34 = vpop.permute.xlu0 %1582  ;;  %v2146_v8 = vmul.f32 %v3781_v44, %v2145_v3  ;;  %v5610_v46 = vrot.slane %v4082_v42, 1  ;;  %v322_v11 = vadd.f32 %v4155_v37, %v273_v51  ;;  %v5611_v36 = vrot.slane %v4307_v23, 3  ;;  %v5616_v37 = vld [vmem:[#allocation27_spill] sm:$0xff] }
 0x1e8   :  { %v352_v48 = vadd.f32 %v5615_v5, %v296_v47  ;;  %v354_v51 = vadd.f32 %v5617_v16, %v298_v53  ;;  %v1191_v61 = vstv %s4322_s21  ;;  %v2155_v47 = vrot.slane %v2147_v39, 2  ;;  %v5619_v53 = vld [vmem:[#allocation30_spill] sm:$0xff]  ;;  %s4826_s21 = sld [smem:[#allocation2 + $0x23]] }
 0x1e9   :  { %2102 = vrot.lane.b32.xlu1 %v2094_v62, %s3121_s30  ;;  %2100 = vrot.lane.b32.xlu0 %v2095_v30, %s3121_s30  ;;  %v323_v17 = vadd.f32 %v5610_v46, %v274_v50  ;;  %v4366_v62 = vsel %vm895_vm2, %v920_v15, %v5422_v10  ;;  %v4371_v22 = vsel %vm895_vm2, %v923_v9, %v5611_v36  ;;  %v5614_v30 = vld [vmem:[#allocation25_spill] sm:$0xff]  ;;  %v2154_v36 = vrot.slane %v2146_v8, 2  ;;  %v5627_v8 = vld [vmem:[#allocation36_spill] sm:$0xff] }
 0x1ea   :  { %v353_v42 = vadd.f32 %v5614_v30, %v297_v40  ;;  %v355_v50 = vadd.f32 %v5616_v37, %v299_v49  ;;  %v5618_v15 = vld [vmem:[#allocation29_spill] sm:$0xff]  ;;  %v2149_v9 = vmul.f32 %v3794_v35, %v2145_v3  ;;  %v2148_v46 = vmul.f32 %v3799_v58, %v2145_v3  ;;  %v5620_v30 = vld [vmem:[#allocation31_spill] sm:$0xff]  ;;  %v5621_v37 = vld [vmem:[#allocation32_spill] sm:$0xff] }
 0x1eb   :  { %v4373_v19 = vpop.permute.xlu1 %1588  ;;  %v4375_v2 = vpop.permute.xlu0 %1586  ;;  %v385_v38 = vadd.f32 %v5618_v15, %v321_v31  ;;  %v2127_v40 = vsel %vm590_vm1, %v2125_v1, %v2126_v13  ;;  %v2177_v49 = vstv %s4330_s22  ;;  %v384_v31 = vadd.f32 %v5619_v53, %v320_v7  ;;  %v5625_v3 = vld [vmem:[#allocation34_spill] sm:$0xff]  ;;  %v5626_v1 = vld [vmem:[#allocation35_spill] sm:$0xff]  ;;  %v5628_v53 = vld [vmem:[#allocation37_spill] sm:$0xff]  ;;  %s4883_s22 = sld [smem:[#allocation2 + $0x2c]] }
 0x1ec   :  { %5612 = vst [vmem:[#allocation12_spill] sm:$0xff] %v4373_v19  ;;  %5613 = vst [vmem:[#allocation13_spill] sm:$0xff] %v4375_v2  ;;  %v387_v5 = vadd.f32 %v5620_v30, %v323_v17  ;;  %v386_v16 = vadd.f32 %v5621_v37, %v322_v11  ;;  %v416_v57 = vadd.f32 %v5625_v3, %v352_v48  ;;  %v2158_v17 = vrot.slane %v2149_v9, 2  ;;  %v5629_v30 = vld [vmem:[#allocation38_spill] sm:$0xff] }
 0x1ed   :  { %2130 = vrot.lane.b32.xlu1 %v2123_v41, %s3121_s30  ;;  %2128 = vrot.lane.b32.xlu0 %v2124_v4, %s3121_s30  ;;  %v5622_v41 = vld [vmem:[#allocation33_spill] sm:$0xff]  ;;  %v419_v39 = vadd.f32 %v5626_v1, %v355_v50  ;;  %v418_v2 = vadd.f32 %v5627_v8, %v354_v51  ;;  %v4405_v19 = vmul.f32 %v4250_v24, %v1191_v61  ;;  %v2157_v11 = vrot.slane %v2148_v46, 2  ;;  %v5631_v1 = vld [vmem:[#allocation40_spill] sm:$0xff] }
 0x1ee   :  { %v417_v15 = vadd.f32 %v5622_v41, %v353_v42  ;;  %v1192_v7 = vmul.f32 %v4258_v56, %v1191_v61  ;;  %v2179_v42 = vmul.f32 %v3776_v25, %v2177_v49  ;;  %v449_v48 = vadd.f32 %v5628_v53, %v385_v38  ;;  %v5630_v41 = vld [vmem:[#allocation39_spill] sm:$0xff] }
 0x1ef   :  { %v4397_v4 = vpop.permute.xlu1 %1610  ;;  %v4399_v10 = vpop.permute.xlu0 %1608  ;;  %v448_v50 = vadd.f32 %v5629_v30, %v384_v31  ;;  %v2156_v51 = vsel %vm590_vm1, %v2154_v36, %v2155_v47  ;;  %v2178_v37 = vmul.f32 %v3781_v44, %v2177_v49  ;;  %v451_v3 = vadd.f32 %v5630_v41, %v387_v5  ;;  %v5634_v38 = vld [vmem:[#allocation43_spill] sm:$0xff]  ;;  %v5635_v31 = vld [vmem:[#allocation44_spill] sm:$0xff]  ;;  %v5636_v36 = vld [vmem:[#allocation45_spill] sm:$0xff] }
 0x1f0   :  { %5623 = vst [vmem:[#allocation14_spill] sm:$0xff] %v4397_v4  ;;  %5624 = vst [vmem:[#allocation17_spill] sm:$0xff] %v4399_v10  ;;  %v450_v8 = vadd.f32 %v5631_v1, %v386_v16  ;;  %v483_v53 = vadd.f32 %v5634_v38, %v419_v39  ;;  %v482_v30 = vadd.f32 %v5635_v31, %v418_v2  ;;  %v5424_v44 = vrot.slane %v4405_v19, 4  ;;  %v5637_v2 = vld [vmem:[#allocation46_spill] sm:$0xff]  ;;  %v5639_v31 = vld [vmem:[#allocation49_spill] sm:$0xff] }
 0x1f1   :  { %2134 = vrot.lane.b32.xlu1 %v2126_v13, %s3121_s30  ;;  %2132 = vrot.lane.b32.xlu0 %v2127_v40, %s3121_s30  ;;  %v5632_v13 = vld [vmem:[#allocation41_spill] sm:$0xff]  ;;  %v5633_v40 = vld [vmem:[#allocation42_spill] sm:$0xff]  ;;  %v513_v4 = vadd.f32 %v5636_v36, %v449_v48  ;;  %v1201_v5 = vrot.slane %v1192_v7, 4  ;;  %v1216_v41 = vstv %s4383_s23  ;;  %v2187_v16 = vrot.slane %v2179_v42, 2  ;;  %v5638_v48 = vld [vmem:[#allocation47_spill] sm:$0xff]  ;;  %s4893_s23 = sld [smem:[#allocation2 + $0x55]] }
 0x1f2   :  { %v481_v10 = vadd.f32 %v5632_v13, %v417_v15  ;;  %v480_v9 = vadd.f32 %v5633_v40, %v416_v57  ;;  %v2159_v57 = vsel %vm590_vm1, %v2157_v11, %v2158_v17  ;;  %v2186_v15 = vrot.slane %v2178_v37, 2  ;;  %v5642_v11 = vld [vmem:[#allocation48_spill] sm:$0xff]  ;;  %v5643_v42 = vld [vmem:[#allocation50_spill] sm:$0xff]  ;;  %v4458_v37 = vld [vmem:[%s5419_s2 + $0x18] sm:$0xff] }
 0x1f3   :  { %v4419_v46 = vpop.permute.xlu1 %1614  ;;  %v4421_v25 = vpop.permute.xlu0 %1612  ;;  %v2181_v1 = vmul.f32 %v3794_v35, %v2177_v49  ;;  %v2180_v39 = vmul.f32 %v3799_v58, %v2177_v49  ;;  %v2209_v13 = vstv %s4391_s24  ;;  %v512_v40 = vadd.f32 %v5637_v2, %v448_v50  ;;  %s4915_s24 = sld [smem:[#allocation2 + $0x5e]] }
 0x1f4   :  { %v515_v38 = vadd.f32 %v5638_v48, %v451_v3  ;;  %v545_v7 = vadd.f32 %v5639_v31, %v481_v10  ;;  %v4438_v36 = vmul.f32 %v4277_v27, %v1191_v61  ;;  %v514_v35 = vadd.f32 %v5642_v11, %v450_v8 }
 0x1f5   :  { %2162 = vrot.lane.b32.xlu1 %v2155_v47, %s3122_s6  ;;  %2160 = vrot.lane.b32.xlu0 %v2156_v51, %s3122_s6  ;;  %v544_v58 = vadd.f32 %v5643_v42, %v480_v9  ;;  %v1194_v49 = vmul.f32 %v4294_v14, %v1191_v61  ;;  %v4450_v50 = vmul.f32 %v4250_v24, %v1216_v41  ;;  %v4464_v61 = vld [vmem:[%s5419_s2 + $0x10] sm:$0xff]  ;;  %v2190_v8 = vrot.slane %v2181_v1, 2 }
 0x1f6   :  { %v1217_v10 = vmul.f32 %v4258_v56, %v1216_v41  ;;  %v2211_v3 = vmul.f32 %v4458_v37, %v2209_v13  ;;  %v2210_v24 = vmul.f32 %v4464_v61, %v2209_v13  ;;  %v4470_v56 = vsel %vm1200_vm3, %v1201_v5, %v5424_v44  ;;  %v5647_v5 = vld [vmem:[#allocation51_spill] sm:$0xff] }
 0x1f7   :  { %v4440_v47 = vpop.permute.xlu1 %1636  ;;  %v4442_v51 = vpop.permute.xlu0 %1634  ;;  %v2189_v9 = vrot.slane %v2180_v39, 2  ;;  %v4477_v31 = vmul.f32 %v4277_v27, %v1216_v41  ;;  %v1219_v11 = vmul.f32 %v4294_v14, %v1216_v41  ;;  %v547_v44 = vadd.f32 %v5647_v5, %v483_v53  ;;  %v5650_v41 = vld [vmem:[#allocation54_spill] sm:$0xff]  ;;  %v4495_v53 = vld [vmem:[%s5419_s2 + $0x38] sm:$0xff] }
 0x1f8   :  { %5640 = vst [vmem:[#allocation15_spill] sm:$0xff] %v4440_v47  ;;  %5641 = vst [vmem:[#allocation16_spill] sm:$0xff] %v4442_v51  ;;  %v5648_v47 = vld [vmem:[#allocation52_spill] sm:$0xff]  ;;  %v1204_v1 = vrot.slane %v1194_v49, 4  ;;  %v2219_v27 = vrot.slane %v2211_v3, 2  ;;  %v2218_v14 = vrot.slane %v2210_v24, 2  ;;  %v576_v48 = vadd.f32 %v5650_v41, %v512_v40 }
 0x1f9   :  { %2166 = vrot.lane.b32.xlu1 %v2158_v17, %s3122_s6  ;;  %2164 = vrot.lane.b32.xlu0 %v2159_v57, %s3122_s6  ;;  %v2188_v17 = vsel %vm590_vm1, %v2186_v15, %v2187_v16  ;;  %v5644_v57 = vrot.slane %v4093_v28, 2  ;;  %v546_v15 = vadd.f32 %v5648_v47, %v482_v30  ;;  %v5649_v28 = vld [vmem:[#allocation53_spill] sm:$0xff]  ;;  %v2213_v30 = vmul.f32 %v4495_v53, %v2209_v13  ;;  %v5651_v47 = vld [vmem:[#allocation55_spill] sm:$0xff]  ;;  %v5655_v41 = vld [vmem:[#allocation56_spill] sm:$0xff] }
 0x1fa   :  { %v579_v40 = vadd.f32 %v5651_v47, %v515_v38  ;;  %v5425_v49 = vrot.slane %v4477_v31, 4  ;;  %v5654_v5 = vrot.slane %v4097_v55, 2  ;;  %v578_v39 = vadd.f32 %v5655_v41, %v514_v35 }
 0x1fb   :  { %v602_v2 = vadd.f32 %v5644_v57, %v545_v7  ;;  %v4480_v42 = vpop.permute.xlu1 %1640  ;;  %v4482_v51 = vpop.permute.xlu0 %1638  ;;  %v577_v7 = vadd.f32 %v5649_v28, %v513_v4  ;;  %v1225_v57 = vrot.slane %v1217_v10, 4  ;;  %v4501_v4 = vld [vmem:[%s5419_s2 + $0x30] sm:$0xff]  ;;  %v1228_v10 = vrot.slane %v1219_v11, 4 }
 0x1fc   :  { %5645 = vst [vmem:[#allocation18_spill] sm:$0xff] %v4480_v42  ;;  %5646 = vst [vmem:[#allocation19_spill] sm:$0xff] %v4482_v51  ;;  %v2191_v51 = vsel %vm590_vm1, %v2189_v9, %v2190_v8  ;;  %v601_v9 = vadd.f32 %v4160_v6, %v544_v58  ;;  %v604_v28 = vadd.f32 %v5654_v5, %v547_v44  ;;  %v5657_v11 = vrot.slane %v4450_v50, 4 }
 0x1fd   :  { %2194 = vrot.lane.b32.xlu1 %v2187_v16, %s3122_s6  ;;  %2192 = vrot.lane.b32.xlu0 %v2188_v17, %s3122_s6  ;;  %v2212_v16 = vmul.f32 %v4501_v4, %v2209_v13  ;;  %v2241_v17 = vstv %s4444_s25  ;;  %v5656_v13 = vrot.slane %v4438_v36, 4  ;;  %v603_v38 = vadd.f32 %v4174_v18, %v546_v15  ;;  %s4974_s25 = sld [smem:[#allocation2 + $0x2e]] }
 0x1fe   :  { %v4526_v47 = vsel %vm1200_vm3, %v1225_v57, %v5657_v11  ;;  %v2220_v55 = vsel %vm590_vm1, %v2218_v14, %v2219_v27  ;;  %v2222_v6 = vrot.slane %v2213_v30, 2  ;;  %v2243_v35 = vmul.f32 %v4458_v37, %v2241_v17 }
 0x1ff   :  { %v4508_v3 = vpop.permute.xlu1 %1662  ;;  %v4510_v24 = vpop.permute.xlu0 %1660  ;;  %v4520_v42 = vsel %vm1200_vm3, %v1204_v1, %v5656_v13  ;;  %v2221_v44 = vrot.slane %v2212_v16, 2  ;;  %v2242_v58 = vmul.f32 %v4464_v61, %v2241_v17  ;;  %v5658_v1 = vrot.slane %v4106_v33, 2  ;;  %v5661_v16 = vld [vmem:[#allocation57_spill] sm:$0xff] }
 0x200   :  { %5652 = vst [vmem:[#allocation20_spill] sm:$0xff] %v4508_v3  ;;  %5653 = vst [vmem:[#allocation21_spill] sm:$0xff] %v4510_v24  ;;  %v625_v15 = vadd.f32 %v4179_v52, %v576_v48  ;;  %v5659_v57 = vrot.slane %v4111_v45, 2  ;;  %v627_v30 = vadd.f32 %v4184_v59, %v578_v39  ;;  %v658_v33 = vadd.f32 %v5661_v16, %v602_v2  ;;  %v5663_v52 = vld [vmem:[#allocation59_spill] sm:$0xff]  ;;  %v5664_v45 = vld [vmem:[#allocation60_spill] sm:$0xff] }
 0x201   :  { %2198 = vrot.lane.b32.xlu1 %v2190_v8, %s3122_s6  ;;  %2196 = vrot.lane.b32.xlu0 %v2191_v51, %s3122_s6  ;;  %v626_v18 = vadd.f32 %v5658_v1, %v577_v7  ;;  %v4541_v51 = vsel %vm1200_vm3, %v1228_v10, %v5425_v49  ;;  %v5662_v7 = vld [vmem:[#allocation58_spill] sm:$0xff]  ;;  %v660_v48 = vadd.f32 %v5663_v52, %v604_v28  ;;  %v2251_v39 = vrot.slane %v2243_v35, 2  ;;  %v5674_v24 = vld [vmem:[#allocation68_spill] sm:$0xff] }
 0x202   :  { %v628_v5 = vadd.f32 %v5659_v57, %v579_v40  ;;  %v657_v41 = vadd.f32 %v5662_v7, %v601_v9  ;;  %v659_v40 = vadd.f32 %v5664_v45, %v603_v38  ;;  %v2245_v10 = vmul.f32 %v4495_v53, %v2241_v17  ;;  %v5665_v9 = vld [vmem:[#allocation61_spill] sm:$0xff]  ;;  %v5666_v1 = vld [vmem:[#allocation62_spill] sm:$0xff]  ;;  %v5667_v38 = vld [vmem:[#allocation63_spill] sm:$0xff] }
 0x203   :  { %v4543_v8 = vpop.permute.xlu1 %1666  ;;  %v4545_v14 = vpop.permute.xlu0 %1664  ;;  %v2244_v13 = vmul.f32 %v4501_v4, %v2241_v17  ;;  %v2223_v59 = vsel %vm590_vm1, %v2221_v44, %v2222_v6  ;;  %v2250_v2 = vrot.slane %v2242_v58, 2  ;;  %v2273_v11 = vstv %s4504_s10  ;;  %v5671_v17 = vld [vmem:[#allocation65_spill] sm:$0xff]  ;;  %v5672_v44 = vld [vmem:[#allocation66_spill] sm:$0xff]  ;;  %v5673_v58 = vld [vmem:[#allocation67_spill] sm:$0xff]  ;;  %s5222_s10 = sld [smem:[#allocation2 + $0x61]] }
 0x204   :  { %5660 = vst [vmem:[#allocation22_spill] sm:$0xff] %v4545_v14  ;;  %v690_v28 = vadd.f32 %v5665_v9, %v626_v18  ;;  %v689_v57 = vadd.f32 %v5666_v1, %v625_v15  ;;  %v692_v16 = vadd.f32 %v5667_v38, %v628_v5  ;;  %v722_v45 = vadd.f32 %v5671_v17, %v658_v33  ;;  %v5675_v14 = vld [vmem:[#allocation69_spill] sm:$0xff]  ;;  %v5676_v33 = vld [vmem:[#allocation70_spill] sm:$0xff] }
 0x205   :  { %2226 = vrot.lane.b32.xlu1 %v2219_v27, %s3123_s9  ;;  %2224 = vrot.lane.b32.xlu0 %v2220_v55, %s3123_s9  ;;  %v5668_v27 = vld [vmem:[#allocation64_spill] sm:$0xff]  ;;  %v721_v35 = vadd.f32 %v5672_v44, %v657_v41  ;;  %v724_v49 = vadd.f32 %v5673_v58, %v660_v48  ;;  %v723_v3 = vadd.f32 %v5674_v24, %v659_v40  ;;  %v2254_v15 = vrot.slane %v2245_v10, 2  ;;  %v5677_v41 = vld [vmem:[#allocation73_spill] sm:$0xff] }
 0x206   :  { %v691_v7 = vadd.f32 %v5668_v27, %v627_v30  ;;  %v754_v18 = vadd.f32 %v5675_v14, %v690_v28  ;;  %v2253_v5 = vrot.slane %v2244_v13, 2  ;;  %v2275_v30 = vmul.f32 %v4458_v37, %v2273_v11  ;;  %v5678_v14 = vld [vmem:[#allocation71_spill] sm:$0xff]  ;;  %v5679_v28 = vld [vmem:[#allocation72_spill] sm:$0xff] }
 0x207   :  { %v4566_v55 = vpop.permute.xlu1 %1688  ;;  %v4568_v52 = vpop.permute.xlu0 %1686  ;;  %v753_v9 = vadd.f32 %v5676_v33, %v689_v57  ;;  %v786_v1 = vadd.f32 %v5677_v41, %v722_v45  ;;  %v2252_v48 = vsel %vm590_vm1, %v2250_v2, %v2251_v39  ;;  %v2274_v24 = vmul.f32 %v4464_v61, %v2273_v11  ;;  %v5684_v57 = vld [vmem:[#allocation76_spill] sm:$0xff]  ;;  %v5685_v45 = vld [vmem:[#allocation77_spill] sm:$0xff] }
 0x208   :  { %5669 = vst [vmem:[#allocation23_spill] sm:$0xff] %v4566_v55  ;;  %5670 = vst [vmem:[#allocation24_spill] sm:$0xff] %v4568_v52  ;;  %v756_v40 = vadd.f32 %v5678_v14, %v692_v16  ;;  %v755_v38 = vadd.f32 %v5679_v28, %v691_v7  ;;  %v787_v44 = vadd.f32 %v5684_v57, %v723_v3  ;;  %v5686_v2 = vld [vmem:[#allocation81_spill] sm:$0xff]  ;;  %v1501_v41 = vstv %s4551_s11  ;;  %v5687_v52 = vld [vmem:[#allocation78_spill] sm:$0xff] }
 0x209   :  { %2230 = vrot.lane.b32.xlu1 %v2222_v6, %s3123_s9  ;;  %2228 = vrot.lane.b32.xlu0 %v2223_v59, %s3123_s9  ;;  %v5680_v6 = vld [vmem:[#allocation74_spill] sm:$0xff]  ;;  %v5681_v59 = vld [vmem:[#allocation75_spill] sm:$0xff]  ;;  %v818_v58 = vadd.f32 %v5685_v45, %v754_v18  ;;  %v850_v33 = vadd.f32 %v5686_v2, %v786_v1  ;;  %v817_v16 = vadd.f32 %v5687_v52, %v753_v9  ;;  %v2282_v28 = vrot.slane %v2274_v24, 2  ;;  %v5690_v57 = vld [vmem:[#allocation80_spill] sm:$0xff] }
 0x20a   :  { %v785_v27 = vadd.f32 %v5680_v6, %v721_v35  ;;  %v788_v10 = vadd.f32 %v5681_v59, %v724_v49  ;;  %v5688_v14 = vld [vmem:[#allocation82_spill] sm:$0xff]  ;;  %v2255_v49 = vsel %vm590_vm1, %v2253_v5, %v2254_v15  ;;  %v2283_v35 = vrot.slane %v2275_v30, 2  ;;  %v5689_v1 = vld [vmem:[#allocation79_spill] sm:$0xff]  ;;  %v5695_v45 = vld [vmem:[#allocation85_spill] sm:$0xff] }
 0x20b   :  { %v4588_v13 = vpop.permute.xlu1 %1692  ;;  %v4590_v17 = vpop.permute.xlu0 %1690  ;;  %v2277_v3 = vmul.f32 %v4495_v53, %v2273_v11  ;;  %v2276_v18 = vmul.f32 %v4501_v4, %v2273_v11  ;;  %v2305_v6 = vstv %s4560_s12  ;;  %v820_v59 = vadd.f32 %v5689_v1, %v756_v40  ;;  %v5693_v30 = vld [vmem:[#allocation83_spill] sm:$0xff]  ;;  %v5694_v11 = vld [vmem:[#allocation84_spill] sm:$0xff] }
 0x20c   :  { %5682 = vst [vmem:[#allocation25_spill] sm:$0xff] %v4588_v13  ;;  %5683 = vst [vmem:[#allocation26_spill] sm:$0xff] %v4590_v17  ;;  %v849_v7 = vadd.f32 %v5688_v14, %v785_v27  ;;  %v819_v52 = vadd.f32 %v5690_v57, %v755_v38  ;;  %v4607_v9 = vmul.f32 %v4458_v37, %v1501_v41  ;;  %v5696_v38 = vrot.slane %v4253_v60, 3  ;;  %v5697_v14 = vld [vmem:[#allocation86_spill] sm:$0xff]  ;;  %v5710_v17 = vld [vmem:[#allocation92_spill] sm:$0xff] }
 0x20d   :  { %2258 = vrot.lane.b32.xlu1 %v2251_v39, %s3123_s9  ;;  %2256 = vrot.lane.b32.xlu0 %v2252_v48, %s3123_s9  ;;  %v4610_v39 = vmul.f32 %v4464_v61, %v1501_v41  ;;  %v852_v24 = vadd.f32 %v5693_v30, %v788_v10  ;;  %v851_v27 = vadd.f32 %v5694_v11, %v787_v44  ;;  %v1511_v57 = vstv %s4575_s14  ;;  %v5698_v11 = vld [vmem:[#allocation87_spill] sm:$0xff]  ;;  %s3063_s14 = sld [smem:[#allocation2 + $0x31]] }
 0x20e   :  { %v882_v40 = vadd.f32 %v5695_v45, %v818_v58  ;;  %v907_v2 = vadd.f32 %v5696_v38, %v850_v33  ;;  %v881_v1 = vadd.f32 %v5697_v14, %v817_v16  ;;  %v906_v10 = vadd.f32 %v4345_v54, %v849_v7  ;;  %v5699_v33 = vld [vmem:[#allocation88_spill] sm:$0xff] }
 0x20f   :  { %v4612_v48 = vpop.permute.xlu1 %1714  ;;  %v4614_v5 = vpop.permute.xlu0 %1712  ;;  %v2284_v44 = vsel %vm590_vm1, %v2282_v28, %v2283_v35  ;;  %v2286_v30 = vrot.slane %v2277_v3, 2  ;;  %v2285_v58 = vrot.slane %v2276_v18, 2  ;;  %v884_v60 = vadd.f32 %v5698_v11, %v820_v59 }
 0x210   :  { %5691 = vst [vmem:[#allocation27_spill] sm:$0xff] %v4612_v48  ;;  %5692 = vst [vmem:[#allocation28_spill] sm:$0xff] %v4614_v5  ;;  %v2307_v5 = vmul.f32 %v4458_v37, %v2305_v6  ;;  %v2306_v48 = vmul.f32 %v4464_v61, %v2305_v6  ;;  %v883_v45 = vadd.f32 %v5699_v33, %v819_v52  ;;  %v5702_v54 = vrot.slane %v4280_v32, 3  ;;  %v5708_v33 = vld [vmem:[#allocation90_spill] sm:$0xff] }
 0x211   :  { %2262 = vrot.lane.b32.xlu1 %v2254_v15, %s3123_s9  ;;  %2260 = vrot.lane.b32.xlu0 %v2255_v49, %s3123_s9  ;;  %v4634_v16 = vmul.f32 %v4495_v53, %v1501_v41  ;;  %v4637_v15 = vmul.f32 %v4501_v4, %v1501_v41  ;;  %v908_v28 = vadd.f32 %v4350_v29, %v851_v27  ;;  %v5703_v41 = vrot.slane %v4298_v20, 3 }
 0x212   :  { %v909_v7 = vadd.f32 %v5702_v54, %v852_v24  ;;  %v4647_v3 = vmul.f32 %v4458_v37, %v1511_v57  ;;  %v4650_v18 = vmul.f32 %v4464_v61, %v1511_v57  ;;  %v930_v52 = vadd.f32 %v4366_v62, %v881_v1 }
 0x213   :  { %v4639_v49 = vpop.permute.xlu1 %1718  ;;  %v4641_v38 = vpop.permute.xlu0 %1716  ;;  %v931_v59 = vadd.f32 %v5703_v41, %v882_v40  ;;  %v2315_v32 = vrot.slane %v2307_v5, 2  ;;  %v2314_v29 = vrot.slane %v2306_v48, 2  ;;  %v4660_v24 = vmul.f32 %v4495_v53, %v1511_v57 }
 0x214   :  { %5700 = vst [vmem:[#allocation29_spill] sm:$0xff] %v4639_v49  ;;  %5701 = vst [vmem:[#allocation30_spill] sm:$0xff] %v4641_v38  ;;  %v2287_v27 = vsel %vm590_vm1, %v2285_v58, %v2286_v30  ;;  %v2309_v14 = vmul.f32 %v4495_v53, %v2305_v6  ;;  %v2308_v11 = vmul.f32 %v4501_v4, %v2305_v6  ;;  %v5704_v20 = vrot.slane %v4307_v23, 3  ;;  %v5709_v6 = vld [vmem:[#allocation91_spill] sm:$0xff]  ;;  %v5711_v23 = vld [vmem:[#allocation93_spill] sm:$0xff] }
 0x215   :  { %2290 = vrot.lane.b32.xlu1 %v2283_v35, %s3124_s13  ;;  %2288 = vrot.lane.b32.xlu0 %v2284_v44, %s3124_s13  ;;  %v932_v35 = vadd.f32 %v4371_v22, %v883_v45  ;;  %v4671_v40 = vmul.f32 %v4501_v4, %v1511_v57  ;;  %v2385_v1 = vstv %s4616_s15  ;;  %v5707_v44 = vld [vmem:[#allocation89_spill] sm:$0xff]  ;;  %v962_v54 = vadd.f32 %v5708_v33, %v906_v10  ;;  %s3045_s15 = sld [smem:[#allocation2 + $0x28]] }
 0x216   :  { %v933_v62 = vadd.f32 %v5704_v20, %v884_v60  ;;  %v963_v58 = vadd.f32 %v5707_v44, %v907_v2  ;;  %v965_v41 = vadd.f32 %v5709_v6, %v909_v7  ;;  %v964_v13 = vadd.f32 %v5710_v17, %v908_v28  ;;  %v5712_v20 = vld [vmem:[#allocation94_spill] sm:$0xff]  ;;  %v5713_v7 = vld [vmem:[#allocation95_spill] sm:$0xff]  ;;  %v5714_v17 = vld [vmem:[#allocation96_spill] sm:$0xff] }
 0x217   :  { %v4673_v48 = vpop.permute.xlu1 %1794  ;;  %v4675_v5 = vpop.permute.xlu0 %1792  ;;  %v995_v60 = vadd.f32 %v5711_v23, %v931_v59  ;;  %v994_v22 = vadd.f32 %v5712_v20, %v930_v52  ;;  %v2316_v57 = vsel %vm590_vm1, %v2314_v29, %v2315_v32  ;;  %v2318_v45 = vrot.slane %v2309_v14, 2  ;;  %v5715_v59 = vld [vmem:[#allocation97_spill] sm:$0xff]  ;;  %v5716_v52 = vld [vmem:[#allocation98_spill] sm:$0xff]  ;;  %v5719_v29 = vld [vmem:[#allocation99_spill] sm:$0xff] }
 0x218   :  { %5705 = vst [vmem:[#allocation31_spill] sm:$0xff] %v4673_v48  ;;  %5706 = vst [vmem:[#allocation32_spill] sm:$0xff] %v4675_v5  ;;  %v2317_v5 = vrot.slane %v2308_v11, 2  ;;  %v2387_v2 = vmul.f32 %v4458_v37, %v2385_v1  ;;  %v2386_v10 = vmul.f32 %v4464_v61, %v2385_v1  ;;  %v997_v44 = vadd.f32 %v5713_v7, %v933_v62  ;;  %v5720_v11 = vld [vmem:[#allocation100_spill] sm:$0xff]  ;;  %v5721_v20 = vld [vmem:[#allocation101_spill] sm:$0xff] }
 0x219   :  { %2294 = vrot.lane.b32.xlu1 %v2286_v30, %s3124_s13  ;;  %2292 = vrot.lane.b32.xlu0 %v2287_v27, %s3124_s13  ;;  %v996_v28 = vadd.f32 %v5714_v17, %v932_v35  ;;  %v1027_v33 = vadd.f32 %v5715_v59, %v963_v58  ;;  %v1026_v6 = vadd.f32 %v5716_v52, %v962_v54  ;;  %v1729_v55 = vstv %s4652_s16  ;;  %v5722_v62 = vld [vmem:[#allocation105_spill] sm:$0xff]  ;;  %v5724_v52 = vld [vmem:[#allocation106_spill] sm:$0xff]  ;;  %s5282_s16 = sld [smem:[#allocation2 + $0x5a]] }
 0x21a   :  { %v1029_v14 = vadd.f32 %v5719_v29, %v965_v41  ;;  %v1028_v23 = vadd.f32 %v5720_v11, %v964_v13  ;;  %v1059_v48 = vadd.f32 %v5721_v20, %v995_v60  ;;  %v2389_v58 = vmul.f32 %v4495_v53, %v2385_v1  ;;  %v5723_v60 = vld [vmem:[#allocation102_spill] sm:$0xff]  ;;  %v5730_v20 = vld [vmem:[#allocation107_spill] sm:$0xff] }
 0x21b   :  { %v4693_v30 = vpop.permute.xlu1 %1798  ;;  %v4695_v27 = vpop.permute.xlu0 %1796  ;;  %v1091_v35 = vadd.f32 %v5722_v62, %v1027_v33  ;;  %v2388_v54 = vmul.f32 %v4501_v4, %v2385_v1  ;;  %v2319_v7 = vsel %vm590_vm1, %v2317_v5, %v2318_v45  ;;  %v2395_v41 = vrot.slane %v2387_v2, 3  ;;  %v5728_v1 = vld [vmem:[#allocation103_spill] sm:$0xff]  ;;  %v5729_v2 = vld [vmem:[#allocation104_spill] sm:$0xff] }
 0x21c   :  { %5717 = vst [vmem:[#allocation33_spill] sm:$0xff] %v4693_v30  ;;  %5718 = vst [vmem:[#allocation34_spill] sm:$0xff] %v4695_v27  ;;  %v2394_v17 = vrot.slane %v2386_v10, 3  ;;  %v2417_v13 = vstv %s4665_s17  ;;  %v1058_v59 = vadd.f32 %v5723_v60, %v994_v22  ;;  %v1090_v29 = vadd.f32 %v5724_v52, %v1026_v6  ;;  %v5731_v27 = vld [vmem:[#allocation113_spill] sm:$0xff]  ;;  %v5732_v22 = vld [vmem:[#allocation114_spill] sm:$0xff] }
 0x21d   :  { %2322 = vrot.lane.b32.xlu1 %v2315_v32, %s3124_s13  ;;  %2320 = vrot.lane.b32.xlu0 %v2316_v57, %s3124_s13  ;;  %v4715_v33 = vmul.f32 %v4458_v37, %v1729_v55  ;;  %v1730_v32 = vmul.f32 %v4464_v61, %v1729_v55  ;;  %v1061_v5 = vadd.f32 %v5728_v1, %v997_v44  ;;  %v2398_v6 = vrot.slane %v2389_v58, 3  ;;  %v5734_v44 = vld [vmem:[#allocation109_spill] sm:$0xff] }
 0x21e   :  { %v1060_v10 = vadd.f32 %v5729_v2, %v996_v28  ;;  %v1093_v62 = vadd.f32 %v5730_v20, %v1029_v14  ;;  %v1155_v30 = vadd.f32 %v5731_v27, %v1091_v35  ;;  %v1154_v60 = vadd.f32 %v5732_v22, %v1090_v29  ;;  %v5735_v27 = vld [vmem:[#allocation110_spill] sm:$0xff] }
 0x21f   :  { %5725 = vst [vmem:[#allocation35_spill] sm:$0xff] %v4715_v33  ;;  %v4718_v57 = vpop.permute.xlu1 %1826  ;;  %v4720_v11 = vpop.permute.xlu0 %1824  ;;  %v2397_v52 = vrot.slane %v2388_v54, 3  ;;  %v1123_v1 = vadd.f32 %v5734_v44, %v1059_v48  ;;  %v2396_v28 = vsel %vm895_vm2, %v2394_v17, %v2395_v41  ;;  %v2418_v14 = vmul.f32 %v4464_v61, %v2417_v13  ;;  %v5739_v48 = vld [vmem:[#allocation112_spill] sm:$0xff] }
 0x220   :  { %5726 = vst [vmem:[#allocation36_spill] sm:$0xff] %v4718_v57  ;;  %5727 = vst [vmem:[#allocation37_spill] sm:$0xff] %v4720_v11  ;;  %v2419_v57 = vmul.f32 %v4458_v37, %v2417_v13  ;;  %v5733_v11 = vld [vmem:[#allocation108_spill] sm:$0xff]  ;;  %v1122_v35 = vadd.f32 %v5735_v27, %v1058_v59  ;;  %v1124_v2 = vadd.f32 %v5739_v48, %v1060_v10  ;;  %v5740_v17 = vrot.slane %v4405_v19, 4 }
 0x221   :  { %2326 = vrot.lane.b32.xlu1 %v2318_v45, %s3124_s13  ;;  %2324 = vrot.lane.b32.xlu0 %v2319_v7, %s3124_s13  ;;  %v1092_v38 = vadd.f32 %v5733_v11, %v1028_v23  ;;  %v1738_v45 = vrot.slane %v1730_v32, 1  ;;  %v4737_v7 = vmul.f32 %v4495_v53, %v1729_v55  ;;  %v5738_v23 = vld [vmem:[#allocation111_spill] sm:$0xff]  ;;  %v1753_v22 = vstv %s4701_s18 }
 0x222   :  { %v1125_v11 = vadd.f32 %v5738_v23, %v1061_v5  ;;  %v1212_v20 = vadd.f32 %v5740_v17, %v1155_v30  ;;  %v1211_v59 = vadd.f32 %v4470_v56, %v1154_v60  ;;  %v1732_v32 = vmul.f32 %v4501_v4, %v1729_v55  ;;  %v5748_v17 = vld [vmem:[#allocation117_spill] sm:$0xff] }
 0x223   :  { %v4739_v58 = vpop.permute.xlu1 %1830  ;;  %v4741_v54 = vpop.permute.xlu0 %1828  ;;  %v2399_v44 = vsel %vm895_vm2, %v2397_v52, %v2398_v6  ;;  %v2427_v27 = vrot.slane %v2419_v57, 3  ;;  %v2426_v29 = vrot.slane %v2418_v14, 3  ;;  %v2421_v5 = vmul.f32 %v4495_v53, %v2417_v13 }
 0x224   :  { %5736 = vst [vmem:[#allocation38_spill] sm:$0xff] %v4739_v58  ;;  %5737 = vst [vmem:[#allocation39_spill] sm:$0xff] %v4741_v54  ;;  %v2420_v10 = vmul.f32 %v4501_v4, %v2417_v13  ;;  %v2449_v23 = vstv %s4710_s19  ;;  %v5741_v19 = vrot.slane %v4715_v33, 1  ;;  %v4763_v55 = vmul.f32 %v4458_v37, %v1753_v22  ;;  %v5746_v13 = vld [vmem:[#allocation115_spill] sm:$0xff]  ;;  %v5749_v54 = vld [vmem:[#allocation118_spill] sm:$0xff] }
 0x225   :  { %2402 = vrot.lane.b32.xlu1 %v2395_v41, %s3121_s30  ;;  %2400 = vrot.lane.b32.xlu0 %v2396_v28, %s3121_s30  ;;  %v1754_v41 = vmul.f32 %v4464_v61, %v1753_v22  ;;  %v1157_v52 = vadd.f32 %v5746_v13, %v1093_v62  ;;  %v5747_v28 = vld [vmem:[#allocation116_spill] sm:$0xff]  ;;  %v1756_v48 = vmul.f32 %v4501_v4, %v1753_v22  ;;  %v1741_v56 = vrot.slane %v1732_v32, 1  ;;  %v5750_v58 = vld [vmem:[#allocation119_spill] sm:$0xff] }
 0x226   :  { %v4759_v30 = vsel %vm285_vm0, %v1738_v45, %v5741_v19  ;;  %5743 = vst [vmem:[#allocation41_spill] sm:$0xff] %v4763_v55  ;;  %v1156_v14 = vadd.f32 %v5747_v28, %v1092_v38  ;;  %v4775_v45 = vmul.f32 %v4495_v53, %v1753_v22  ;;  %v1187_v19 = vadd.f32 %v5748_v17, %v1123_v1  ;;  %v5751_v22 = vld [vmem:[#allocation120_spill] sm:$0xff] }
 0x227   :  { %5742 = vst [vmem:[#allocation40_spill] sm:$0xff] %v4759_v30  ;;  %v4766_v60 = vpop.permute.xlu1 %1858  ;;  %v4768_v57 = vpop.permute.xlu0 %1856  ;;  %v1186_v62 = vadd.f32 %v5749_v54, %v1122_v35  ;;  %v2428_v38 = vsel %vm895_vm2, %v2426_v29, %v2427_v27  ;;  %v2430_v13 = vrot.slane %v2421_v5, 3  ;;  %v2429_v28 = vrot.slane %v2420_v10, 3 }
 0x228   :  { %5744 = vst [vmem:[#allocation42_spill] sm:$0xff] %v4766_v60  ;;  %5745 = vst [vmem:[#allocation43_spill] sm:$0xff] %v4768_v57  ;;  %v2451_v57 = vmul.f32 %v4458_v37, %v2449_v23  ;;  %v2450_v60 = vmul.f32 %v4464_v61, %v2449_v23  ;;  %v1189_v30 = vadd.f32 %v5750_v58, %v1125_v11  ;;  %v5427_v1 = vrot.slane %v4763_v55, 1 }
 0x229   :  { %2406 = vrot.lane.b32.xlu1 %v2398_v6, %s3121_s30  ;;  %2404 = vrot.lane.b32.xlu0 %v2399_v44, %s3121_s30  ;;  %v1188_v33 = vadd.f32 %v5751_v22, %v1124_v2  ;;  %v1762_v32 = vrot.slane %v1754_v41, 1  ;;  %v5754_v17 = vrot.slane %v4438_v36, 4  ;;  %v1213_v35 = vadd.f32 %v4520_v42, %v1156_v14  ;;  %v5766_v22 = vld [vmem:[#allocation125_spill] sm:$0xff] }
 0x22a   :  { %v5428_v29 = vrot.slane %v4775_v45, 1  ;;  %v1765_v54 = vrot.slane %v1756_v48, 1  ;;  %v5755_v5 = vrot.slane %v4450_v50, 4  ;;  %v5756_v11 = vrot.slane %v4737_v7, 1 }
 0x22b   :  { %v4788_v6 = vpop.permute.xlu1 %1862  ;;  %v4790_v44 = vpop.permute.xlu0 %1860  ;;  %v1214_v49 = vadd.f32 %v5754_v17, %v1157_v52  ;;  %v2459_v36 = vrot.slane %v2451_v57, 3  ;;  %v2458_v10 = vrot.slane %v2450_v60, 3  ;;  %v1235_v42 = vadd.f32 %v4526_v47, %v1186_v62  ;;  %v5764_v62 = vld [vmem:[#allocation123_spill] sm:$0xff] }
 0x22c   :  { %5752 = vst [vmem:[#allocation44_spill] sm:$0xff] %v4788_v6  ;;  %5753 = vst [vmem:[#allocation45_spill] sm:$0xff] %v4790_v44  ;;  %v1236_v58 = vadd.f32 %v5755_v5, %v1187_v19  ;;  %v4801_v2 = vsel %vm285_vm0, %v1741_v56, %v5756_v11  ;;  %v2431_v41 = vsel %vm895_vm2, %v2429_v28, %v2430_v13  ;;  %v5758_v14 = vrot.slane %v4477_v31, 4  ;;  %v5763_v31 = vld [vmem:[#allocation122_spill] sm:$0xff] }
 0x22d   :  { %5757 = vst [vmem:[#allocation46_spill] sm:$0xff] %v4801_v2  ;;  %2434 = vrot.lane.b32.xlu1 %v2427_v27, %s3121_s30  ;;  %2432 = vrot.lane.b32.xlu0 %v2428_v38, %s3121_s30  ;;  %v2453_v50 = vmul.f32 %v4495_v53, %v2449_v23  ;;  %v2452_v52 = vmul.f32 %v4501_v4, %v2449_v23  ;;  %v2481_v47 = vstv %s4770_s20  ;;  %v5762_v23 = vld [vmem:[#allocation121_spill] sm:$0xff]  ;;  %v5765_v38 = vld [vmem:[#allocation124_spill] sm:$0xff]  ;;  %v5767_v11 = vld [vmem:[#allocation126_spill] sm:$0xff] }
 0x22e   :  { %v1238_v56 = vadd.f32 %v5758_v14, %v1189_v30  ;;  %v1237_v48 = vadd.f32 %v4541_v51, %v1188_v33  ;;  %v4817_v27 = vsel %vm285_vm0, %v1762_v32, %v5427_v1  ;;  %v1268_v19 = vadd.f32 %v5762_v23, %v1212_v20  ;;  %v5768_v14 = vld [vmem:[#allocation127_spill] sm:$0xff]  ;;  %v5787_v2 = vld [vmem:[#allocation146_spill] sm:$0xff] }
 0x22f   :  { %5759 = vst [vmem:[#allocation47_spill] sm:$0xff] %v4817_v27  ;;  %v4819_v60 = vpop.permute.xlu1 %1890  ;;  %v4821_v57 = vpop.permute.xlu0 %1888  ;;  %v1267_v30 = vadd.f32 %v5763_v31, %v1211_v59  ;;  %v1270_v51 = vadd.f32 %v5764_v62, %v1214_v49  ;;  %v4834_v33 = vsel %vm285_vm0, %v1765_v54, %v5428_v29  ;;  %v1269_v28 = vadd.f32 %v5765_v38, %v1213_v35  ;;  %v5769_v35 = vld [vmem:[#allocation128_spill] sm:$0xff]  ;;  %v5774_v29 = vld [vmem:[#allocation133_spill] sm:$0xff] }
 0x230   :  { %5760 = vst [vmem:[#allocation49_spill] sm:$0xff] %v4819_v60  ;;  %5761 = vst [vmem:[#allocation48_spill] sm:$0xff] %v4821_v57  ;;  %v1300_v32 = vadd.f32 %v5766_v22, %v1236_v58  ;;  %v2460_v17 = vsel %vm895_vm2, %v2458_v10, %v2459_v36  ;;  %v2462_v20 = vrot.slane %v2453_v50, 3  ;;  %v2461_v5 = vrot.slane %v2452_v52, 3  ;;  %v5770_v58 = vld [vmem:[#allocation129_spill] sm:$0xff]  ;;  %v5771_v10 = vld [vmem:[#allocation130_spill] sm:$0xff] }
 0x231   :  { %2438 = vrot.lane.b32.xlu1 %v2430_v13, %s3121_s30  ;;  %2436 = vrot.lane.b32.xlu0 %v2431_v41, %s3121_s30  ;;  %v2483_v59 = vmul.f32 %v4458_v37, %v2481_v47  ;;  %v2482_v49 = vmul.f32 %v4464_v61, %v2481_v47  ;;  %v1299_v54 = vadd.f32 %v5767_v11, %v1235_v42  ;;  %v5772_v52 = vld [vmem:[#allocation131_spill] sm:$0xff]  ;;  %v5773_v22 = vld [vmem:[#allocation132_spill] sm:$0xff]  ;;  %v5775_v42 = vld [vmem:[#allocation134_spill] sm:$0xff]  ;;  %v2513_v11 = vstv %s4805_s0 }
 0x232   :  { %v1302_v23 = vadd.f32 %v5768_v14, %v1238_v56  ;;  %v1301_v31 = vadd.f32 %v5769_v35, %v1237_v48  ;;  %v1332_v62 = vadd.f32 %v5770_v58, %v1268_v19  ;;  %v1331_v50 = vadd.f32 %v5771_v10, %v1267_v30  ;;  %v5776_v30 = vld [vmem:[#allocation135_spill] sm:$0xff]  ;;  %v5777_v58 = vld [vmem:[#allocation136_spill] sm:$0xff] }
 0x233   :  { %v4847_v13 = vpop.permute.xlu1 %1894  ;;  %v4849_v41 = vpop.permute.xlu0 %1892  ;;  %v1334_v38 = vadd.f32 %v5772_v52, %v1270_v51  ;;  %v1333_v1 = vadd.f32 %v5773_v22, %v1269_v28  ;;  %v1364_v57 = vadd.f32 %v5774_v29, %v1300_v32  ;;  %v1363_v56 = vadd.f32 %v5775_v42, %v1299_v54  ;;  %v5778_v32 = vld [vmem:[#allocation137_spill] sm:$0xff] }
 0x234   :  { %v2485_v48 = vmul.f32 %v4495_v53, %v2481_v47  ;;  %v2484_v19 = vmul.f32 %v4501_v4, %v2481_v47  ;;  %v1366_v14 = vadd.f32 %v5776_v30, %v1302_v23  ;;  %v2463_v51 = vsel %vm895_vm2, %v2461_v5, %v2462_v20 }
 0x235   :  { %2466 = vrot.lane.b32.xlu1 %v2459_v36, %s3122_s6  ;;  %2464 = vrot.lane.b32.xlu0 %v2460_v17, %s3122_s6  ;;  %v2491_v28 = vrot.slane %v2483_v59, 3  ;;  %v2490_v35 = vrot.slane %v2482_v49, 3  ;;  %v1365_v29 = vadd.f32 %v5777_v58, %v1301_v31  ;;  %v1396_v10 = vadd.f32 %v5778_v32, %v1332_v62  ;;  %v5781_v59 = vld [vmem:[#allocation138_spill] sm:$0xff]  ;;  %v5782_v31 = vld [vmem:[#allocation139_spill] sm:$0xff] }
 0x236   :  { %v2545_v17 = vstv %s4824_s1  ;;  %v2033_v52 = vstv %s4826_s21  ;;  %v4872_v22 = vmul.f32 %v4458_v37, %v2513_v11  ;;  %v2514_v47 = vmul.f32 %v4464_v61, %v2513_v11 }
 0x237   :  { %v4865_v54 = vpop.permute.xlu1 %1922  ;;  %v4867_v36 = vpop.permute.xlu0 %1920  ;;  %v4876_v23 = vmul.f32 %v4495_v53, %v2513_v11  ;;  %v2516_v5 = vmul.f32 %v4501_v4, %v2513_v11  ;;  %v1395_v49 = vadd.f32 %v5781_v59, %v1331_v50  ;;  %v1398_v62 = vadd.f32 %v5782_v31, %v1334_v38  ;;  %v5783_v38 = vld [vmem:[#allocation140_spill] sm:$0xff]  ;;  %v5784_v11 = vld [vmem:[#allocation141_spill] sm:$0xff] }
 0x238   :  { %5779 = vst [vmem:[#allocation50_spill] sm:$0xff] %v4865_v54  ;;  %5780 = vst [vmem:[#allocation51_spill] sm:$0xff] %v4867_v36  ;;  %v2494_v42 = vrot.slane %v2485_v48, 3  ;;  %v2493_v30 = vrot.slane %v2484_v19, 3  ;;  %v2492_v58 = vsel %vm895_vm2, %v2490_v35, %v2491_v28  ;;  %v4887_v32 = vmul.f32 %v4458_v37, %v2545_v17  ;;  %v5785_v48 = vld [vmem:[#allocation142_spill] sm:$0xff]  ;;  %v5786_v54 = vld [vmem:[#allocation145_spill] sm:$0xff] }
 0x239   :  { %2470 = vrot.lane.b32.xlu1 %v2462_v20, %s3122_s6  ;;  %2468 = vrot.lane.b32.xlu0 %v2463_v51, %s3122_s6  ;;  %v4890_v60 = vmul.f32 %v4458_v37, %v2033_v52  ;;  %v2034_v50 = vmul.f32 %v4464_v61, %v2033_v52  ;;  %v1397_v20 = vadd.f32 %v5783_v38, %v1333_v1  ;;  %v2523_v44 = vrot.slane %v4872_v22, 3 }
 0x23a   :  { %v1428_v51 = vadd.f32 %v5784_v11, %v1364_v57  ;;  %v1427_v19 = vadd.f32 %v5785_v48, %v1363_v56  ;;  %v2546_v35 = vmul.f32 %v4464_v61, %v2545_v17  ;;  %v2522_v6 = vrot.slane %v2514_v47, 3 }
 0x23b   :  { %v4898_v59 = vpop.permute.xlu1 %1926  ;;  %v4900_v31 = vpop.permute.xlu0 %1924  ;;  %v2526_v27 = vrot.slane %v4876_v23, 3  ;;  %v2525_v36 = vrot.slane %v2516_v5, 3  ;;  %v1460_v55 = vadd.f32 %v5786_v54, %v1396_v10  ;;  %v1459_v1 = vadd.f32 %v5787_v2, %v1395_v49  ;;  %v5789_v5 = vld [vmem:[#allocation143_spill] sm:$0xff] }
 0x23c   :  { %v2495_v57 = vsel %vm895_vm2, %v2493_v30, %v2494_v42  ;;  %v5431_v56 = vrot.slane %v4887_v32, 3  ;;  %v5430_v38 = vrot.slane %v4890_v60, 2  ;;  %v2042_v11 = vrot.slane %v2034_v50, 2  ;;  %v5790_v30 = vld [vmem:[#allocation144_spill] sm:$0xff] }
 0x23d   :  { %2498 = vrot.lane.b32.xlu1 %v2491_v28, %s3122_s6  ;;  %2496 = vrot.lane.b32.xlu0 %v2492_v58, %s3122_s6  ;;  %v4913_v22 = vmul.f32 %v4495_v53, %v2033_v52  ;;  %v1462_v10 = vadd.f32 %v4114_v26, %v1398_v62  ;;  %v1461_v2 = vadd.f32 %v4116_v12, %v1397_v20  ;;  %v2554_v47 = vrot.slane %v2546_v35, 3 }
 0x23e   :  { %v2036_v23 = vmul.f32 %v4501_v4, %v2033_v52  ;;  %v1430_v49 = vadd.f32 %v5789_v5, %v1366_v14  ;;  %v1429_v58 = vadd.f32 %v5790_v30, %v1365_v29  ;;  %v2524_v50 = vsel %vm895_vm2, %v2522_v6, %v2523_v44 }
 0x23f   :  { %v4919_v28 = vpop.permute.xlu1 %1954  ;;  %v4921_v54 = vpop.permute.xlu0 %1952  ;;  %v2527_v48 = vsel %vm895_vm2, %v2525_v36, %v2526_v27  ;;  %v1507_v26 = vadd.f32 %v4607_v9, %v1460_v55  ;;  %v4932_v12 = vmul.f32 %v4495_v53, %v2545_v17  ;;  %v2548_v62 = vmul.f32 %v4501_v4, %v2545_v17 }
 0x240   :  { %5788 = vst [vmem:[#allocation52_spill] sm:$0xff] %v4921_v54  ;;  %v2577_v52 = vstv %s4883_s22  ;;  %v1506_v14 = vadd.f32 %v4610_v39, %v1459_v1  ;;  %v4940_v6 = vsel %vm590_vm1, %v2042_v11, %v5430_v38  ;;  %v5432_v29 = vrot.slane %v4913_v22, 2 }
 0x241   :  { %2502 = vrot.lane.b32.xlu1 %v2494_v42, %s3122_s6  ;;  %2500 = vrot.lane.b32.xlu0 %v2495_v57, %s3122_s6  ;;  %v2057_v9 = vstv %s4893_s23  ;;  %v1509_v55 = vadd.f32 %v4634_v16, %v1462_v10  ;;  %v1508_v36 = vadd.f32 %v4637_v15, %v1461_v2  ;;  %v2556_v39 = vsel %vm895_vm2, %v2554_v47, %v5431_v56  ;;  %v5791_v47 = vld [vmem:[#allocation149_spill] sm:$0xff] }
 0x242   :  { %v2045_v17 = vrot.slane %v2036_v23, 2  ;;  %v4954_v35 = vmul.f32 %v4458_v37, %v2577_v52  ;;  %v2578_v1 = vmul.f32 %v4464_v61, %v2577_v52  ;;  %v4958_v57 = vmul.f32 %v4495_v53, %v2057_v9 }
 0x243   :  { %v4946_v42 = vpop.permute.xlu1 %1958  ;;  %v4948_v20 = vpop.permute.xlu0 %1956  ;;  %v2060_v16 = vmul.f32 %v4501_v4, %v2057_v9  ;;  %v1494_v15 = vadd.f32 %v4186_v63, %v1430_v49  ;;  %v2558_v11 = vrot.slane %v4932_v12, 3  ;;  %v2557_v10 = vrot.slane %v2548_v62, 3  ;;  %v5792_v63 = vld [vmem:[#allocation147_spill] sm:$0xff]  ;;  %v5793_v49 = vld [vmem:[#allocation148_spill] sm:$0xff] }
 0x244   :  { %v4966_v2 = vmul.f32 %v4458_v37, %v2057_v9  ;;  %v1493_v23 = vadd.f32 %v5791_v47, %v1429_v58  ;;  %v4970_v5 = vmul.f32 %v4495_v53, %v2577_v52  ;;  %v2580_v30 = vmul.f32 %v4501_v4, %v2577_v52 }
 0x245   :  { %2530 = vrot.lane.b32.xlu1 %v2523_v44, %s3123_s9  ;;  %2528 = vrot.lane.b32.xlu0 %v2524_v50, %s3123_s9  ;;  %v2609_v38 = vstv %s4915_s24  ;;  %v1492_v44 = vadd.f32 %v5792_v63, %v1428_v51  ;;  %v1491_v50 = vadd.f32 %v5793_v49, %v1427_v19  ;;  %v4985_v58 = vsel %vm590_vm1, %v2045_v17, %v5432_v29 }
 0x246   :  { %v4988_v62 = vmul.f32 %v4464_v61, %v2057_v9  ;;  %v2586_v47 = vrot.slane %v2578_v1, 3  ;;  %v2069_v51 = vrot.slane %v2060_v16, 2  ;;  %v2559_v19 = vsel %vm895_vm2, %v2557_v10, %v2558_v11 }
 0x247   :  { %v4978_v56 = vpop.permute.xlu1 %1986  ;;  %v4980_v12 = vpop.permute.xlu0 %1984  ;;  %v4996_v63 = vmul.f32 %v4458_v37, %v2609_v38  ;;  %v2610_v17 = vmul.f32 %v4464_v61, %v2609_v38  ;;  %v1519_v9 = vadd.f32 %v4660_v24, %v1494_v15  ;;  %v1518_v49 = vadd.f32 %v4671_v40, %v1493_v23 }
 0x248   :  { %v2589_v29 = vrot.slane %v2580_v30, 3  ;;  %v1517_v16 = vadd.f32 %v4647_v3, %v1492_v44  ;;  %v5009_v10 = vmul.f32 %v4495_v53, %v2609_v38  ;;  %v2612_v52 = vmul.f32 %v4501_v4, %v2609_v38  ;;  %v5796_v30 = vld [vmem:[#allocation150_spill] sm:$0xff] }
 0x249   :  { %2534 = vrot.lane.b32.xlu1 %v2526_v27, %s3123_s9  ;;  %2532 = vrot.lane.b32.xlu0 %v2527_v48, %s3123_s9  ;;  %v1516_v27 = vadd.f32 %v4650_v18, %v1491_v50  ;;  %v1571_v24 = vadd.f32 %v4314_v0, %v1519_v9  ;;  %v1570_v40 = vadd.f32 %v4316_v43, %v1518_v49  ;;  %v5794_v15 = vrot.slane %v4954_v35, 3  ;;  %v5797_v50 = vld [vmem:[#allocation151_spill] sm:$0xff] }
 0x24a   :  { %v5795_v18 = vrot.slane %v4958_v57, 2  ;;  %v1543_v44 = vadd.f32 %v5796_v30, %v1507_v26  ;;  %v1542_v1 = vadd.f32 %v5797_v50, %v1506_v14  ;;  %v5798_v38 = vrot.slane %v4887_v32, 3  ;;  %v5800_v14 = vld [vmem:[#allocation9_spill] sm:$0xff]  ;;  %v5801_v32 = vld [vmem:[#allocation8_spill] sm:$0xff] }
 0x24b   :  { %v5004_v54 = vpop.permute.xlu1 %1990  ;;  %v5006_v48 = vpop.permute.xlu0 %1988  ;;  %v2588_v3 = vsel %vm895_vm2, %v2586_v47, %v5794_v15  ;;  %v5433_v43 = vrot.slane %v4996_v63, 3  ;;  %v2618_v0 = vrot.slane %v2610_v17, 3  ;;  %v1623_v47 = vadd.f32 %v4419_v46, %v1571_v24 }
 0x24c   :  { %v5020_v23 = vsel %vm590_vm1, %v2069_v51, %v5795_v18  ;;  %v1622_v9 = vadd.f32 %v4421_v25, %v1570_v40  ;;  %v5799_v51 = vrot.slane %v4970_v5, 3  ;;  %v2689_v26 = vstv %s4974_s25  ;;  %v5804_v40 = vld [vmem:[#allocation22_spill] sm:$0xff] }
 0x24d   :  { %2562 = vrot.lane.b32.xlu1 %v5798_v38, %s3123_s9  ;;  %2560 = vrot.lane.b32.xlu0 %v2556_v39, %s3123_s9  ;;  %v1545_v15 = vadd.f32 %v5800_v14, %v1509_v55  ;;  %v1544_v18 = vadd.f32 %v5801_v32, %v1508_v36  ;;  %v2621_v46 = vrot.slane %v2612_v52, 3  ;;  %v1595_v25 = vadd.f32 %v4334_v21, %v1543_v44  ;;  %v5807_v38 = vld [vmem:[#allocation29_spill] sm:$0xff]  ;;  %v5810_v14 = vld [vmem:[#allocation11_spill] sm:$0xff]  ;;  %v5811_v32 = vld [vmem:[#allocation12_spill] sm:$0xff] }
 0x24e   :  { %v2591_v49 = vsel %vm895_vm2, %v2589_v29, %v5799_v51  ;;  %v1594_v24 = vadd.f32 %v4336_v34, %v1542_v1  ;;  %v1675_v29 = vadd.f32 %v4543_v8, %v1623_v47  ;;  %v1674_v50 = vadd.f32 %v5804_v40, %v1622_v9  ;;  %v5805_v34 = vld [vmem:[#allocation15_spill] sm:$0xff]  ;;  %v5806_v1 = vld [vmem:[#allocation16_spill] sm:$0xff]  ;;  %v5808_v47 = vld [vmem:[#allocation30_spill] sm:$0xff] }
 0x24f   :  { %v5039_v30 = vpop.permute.xlu1 %2018  ;;  %v5041_v39 = vpop.permute.xlu0 %2016  ;;  %v2620_v55 = vsel %vm895_vm2, %v2618_v0, %v5433_v43  ;;  %v5055_v52 = vmul.f32 %v4458_v37, %v2689_v26  ;;  %v5058_v21 = vmul.f32 %v4464_v61, %v2689_v26  ;;  %v1647_v8 = vadd.f32 %v5805_v34, %v1595_v25  ;;  %v5809_v9 = vld [vmem:[#allocation10_spill] sm:$0xff]  ;;  %v5812_v36 = vld [vmem:[#allocation13_spill] sm:$0xff]  ;;  %v5814_v25 = vld [vmem:[#allocation24_spill] sm:$0xff] }
 0x250   :  { %5802 = vst [vmem:[#allocation53_spill] sm:$0xff] %v5039_v30  ;;  %5803 = vst [vmem:[#allocation54_spill] sm:$0xff] %v5041_v39  ;;  %v1646_v44 = vadd.f32 %v5806_v1, %v1594_v24  ;;  %v1569_v51 = vadd.f32 %v5809_v9, %v1517_v16  ;;  %v1568_v0 = vadd.f32 %v5810_v14, %v1516_v27  ;;  %v5813_v39 = vld [vmem:[#allocation23_spill] sm:$0xff]  ;;  %v5815_v24 = vrot.slane %v5009_v10, 3  ;;  %v5816_v27 = vld [vmem:[#allocation14_spill] sm:$0xff] }
 0x251   :  { %2566 = vrot.lane.b32.xlu1 %v2558_v11, %s3123_s9  ;;  %2564 = vrot.lane.b32.xlu0 %v2559_v19, %s3123_s9  ;;  %v1727_v11 = vadd.f32 %v5807_v38, %v1675_v29  ;;  %v1726_v19 = vadd.f32 %v5808_v47, %v1674_v50  ;;  %v1597_v40 = vadd.f32 %v5811_v32, %v1545_v15  ;;  %v5817_v15 = vld [vmem:[#allocation18_spill] sm:$0xff]  ;;  %v5819_v38 = vrot.slane %v4954_v35, 3  ;;  %v5821_v9 = vld [vmem:[#allocation17_spill] sm:$0xff] }
 0x252   :  { %v1596_v43 = vadd.f32 %v5812_v36, %v1544_v18  ;;  %v1699_v30 = vadd.f32 %v5813_v39, %v1647_v8  ;;  %v1698_v34 = vadd.f32 %v5814_v25, %v1646_v44  ;;  %v5073_v29 = vsel %vm895_vm2, %v2621_v46, %v5815_v24  ;;  %v5818_v18 = vld [vmem:[#allocation19_spill] sm:$0xff]  ;;  %v5823_v32 = vld [vmem:[#allocation25_spill] sm:$0xff] }
 0x253   :  { %v2023_v17 = vpop.permute.xlu1 %2022  ;;  %v2021_v61 = vpop.permute.xlu0 %2020  ;;  %v5076_v16 = vmul.f32 %v4495_v53, %v2689_v26  ;;  %v1621_v50 = vadd.f32 %v5816_v27, %v1569_v51  ;;  %v1649_v1 = vadd.f32 %v5817_v15, %v1597_v40  ;;  %v2699_v39 = vrot.slane %v5055_v52, 4  ;;  %v5824_v40 = vld [vmem:[#allocation26_spill] sm:$0xff] }
 0x254   :  { %v1648_v36 = vadd.f32 %v5818_v18, %v1596_v43  ;;  %v5820_v46 = vrot.slane %v4775_v45, 1  ;;  %v1774_v53 = vadd.f32 %v4834_v33, %v1726_v19  ;;  %v2698_v44 = vrot.slane %v5058_v21, 4  ;;  %v5822_v43 = vld [vmem:[#allocation20_spill] sm:$0xff]  ;;  %v5825_v45 = vld [vmem:[#allocation35_spill] sm:$0xff]  ;;  %v5828_v21 = vld [vmem:[#allocation38_spill] sm:$0xff] }
 0x255   :  { %2594 = vrot.lane.b32.xlu1 %v5819_v38, %s3124_s13  ;;  %2592 = vrot.lane.b32.xlu0 %v2588_v3, %s3124_s13  ;;  %v5091_v47 = vstv %s5035_s26  ;;  %v1620_v51 = vadd.f32 %v5821_v9, %v1568_v0  ;;  %v1673_v14 = vadd.f32 %v5822_v43, %v1621_v50  ;;  %v1701_v35 = vadd.f32 %v5823_v32, %v1649_v1  ;;  %v5827_v33 = vld [vmem:[#allocation40_spill] sm:$0xff]  ;;  %v5829_v18 = vld [vmem:[#allocation39_spill] sm:$0xff]  ;;  %v5830_v0 = vld [vmem:[#allocation21_spill] sm:$0xff] }
 0x256   :  { %v1775_v8 = vadd.f32 %v5820_v46, %v1727_v11  ;;  %v1700_v25 = vadd.f32 %v5824_v40, %v1648_v36  ;;  %v5826_v11 = vrot.slane %v5825_v45, 1  ;;  %v1748_v19 = vadd.f32 %v5827_v33, %v1698_v34  ;;  %v5831_v50 = vld [vmem:[#allocation27_spill] sm:$0xff]  ;;  %v5834_v32 = vld [vmem:[#allocation32_spill] sm:$0xff] }
 0x257   :  { %v5097_v3 = vpop.permute.xlu1 %2098  ;;  %v5099_v24 = vpop.permute.xlu0 %2096  ;;  %v1838_v38 = vadd.f32 %v5829_v18, %v1774_v53  ;;  %v1672_v46 = vadd.f32 %v5830_v0, %v1620_v51  ;;  %v1725_v9 = vadd.f32 %v5831_v50, %v1673_v14  ;;  %v5832_v1 = vrot.slane %v4970_v5, 3  ;;  %v5833_v43 = vld [vmem:[#allocation31_spill] sm:$0xff]  ;;  %v5835_v40 = vld [vmem:[#allocation28_spill] sm:$0xff]  ;;  %v5841_v18 = vld [vmem:[#allocation34_spill] sm:$0xff] }
 0x258   :  { %v1749_v27 = vadd.f32 %v5826_v11, %v1699_v30  ;;  %v1839_v15 = vadd.f32 %v5828_v21, %v1775_v8  ;;  %v2702_v36 = vrot.slane %v5076_v16, 4  ;;  %v2692_v30 = vmul.f32 %v4501_v4, %v2689_v26  ;;  %v5837_v11 = vld [vmem:[#allocation46_spill] sm:$0xff] }
 0x259   :  { %2598 = vrot.lane.b32.xlu1 %v5832_v1, %s3124_s13  ;;  %2596 = vrot.lane.b32.xlu0 %v2591_v49, %s3124_s13  ;;  %v1804_v8 = vadd.f32 %v5834_v32, %v1748_v19  ;;  %v1902_v51 = vadd.f32 %v4849_v41, %v1838_v38  ;;  %v1724_v14 = vadd.f32 %v5835_v40, %v1672_v46  ;;  %v5836_v45 = vrot.slane %v4737_v7, 1  ;;  %v5838_v26 = vld [vmem:[#allocation42_spill] sm:$0xff]  ;;  %v5840_v7 = vld [vmem:[#allocation33_spill] sm:$0xff] }
 0x25a   :  { %v1805_v34 = vadd.f32 %v5833_v43, %v1749_v27  ;;  %v1903_v53 = vadd.f32 %v4847_v13, %v1839_v15  ;;  %v1750_v33 = vadd.f32 %v5837_v11, %v1700_v25  ;;  %v5128_v4 = vmul.f32 %v4458_v37, %v5091_v47  ;;  %v5839_v13 = vld [vmem:[#allocation43_spill] sm:$0xff]  ;;  %v5842_v38 = vld [vmem:[#allocation41_spill] sm:$0xff]  ;;  %v5845_v1 = vld [vmem:[#allocation50_spill] sm:$0xff] }
 0x25b   :  { %v1751_v5 = vadd.f32 %v5836_v45, %v1701_v35  ;;  %v5122_v49 = vpop.permute.xlu1 %2102  ;;  %v5124_v21 = vpop.permute.xlu0 %2100  ;;  %v1868_v19 = vadd.f32 %v5839_v13, %v1804_v8  ;;  %v1966_v15 = vadd.f32 %v4948_v20, %v1902_v51  ;;  %v5843_v0 = vrot.slane %v5842_v38, 1  ;;  %v5846_v43 = vld [vmem:[#allocation51_spill] sm:$0xff]  ;;  %v5848_v51 = vld [vmem:[#allocation44_spill] sm:$0xff] }
 0x25c   :  { %v1869_v27 = vadd.f32 %v5838_v26, %v1805_v34  ;;  %v1967_v41 = vadd.f32 %v4946_v42, %v1903_v53  ;;  %v1806_v25 = vadd.f32 %v5841_v18, %v1750_v33  ;;  %v5844_v50 = vrot.slane %v4996_v63, 3  ;;  %v5847_v8 = vld [vmem:[#allocation47_spill] sm:$0xff]  ;;  %v5851_v26 = vld [vmem:[#allocation37_spill] sm:$0xff] }
 0x25d   :  { %v1807_v35 = vadd.f32 %v5840_v7, %v1751_v5  ;;  %v1773_v46 = vadd.f32 %v5843_v0, %v1725_v9  ;;  %2624 = vrot.lane.b32.xlu0 %v2620_v55, %s3124_s13  ;;  %v2701_v37 = vrot.slane %v2692_v30, 4  ;;  %v1932_v20 = vadd.f32 %v5846_v43, %v1868_v19  ;;  %v5849_v9 = vld [vmem:[#allocation45_spill] sm:$0xff]  ;;  %v5850_v30 = vld [vmem:[#allocation36_spill] sm:$0xff] }
 0x25e   :  { %2626 = vrot.lane.b32.xlu1 %v5844_v50, %s3124_s13  ;;  %v1933_v42 = vadd.f32 %v5845_v1, %v1869_v27  ;;  %v2031_v34 = vadd.f32 %v2023_v17, %v1967_v41  ;;  %v2030_v32 = vadd.f32 %v2021_v61, %v1966_v15  ;;  %v1772_v53 = vadd.f32 %v5847_v8, %v1724_v14  ;;  %v5162_v61 = vld [vmem:[%s5419_s2 + $0x10] sm:$0xff]  ;;  %v5854_v7 = vld [vmem:[#allocation49_spill] sm:$0xff] }
 0x25f   :  { %v1871_v40 = vadd.f32 %v5848_v51, %v1807_v35  ;;  %v1870_v45 = vadd.f32 %v5849_v9, %v1806_v25  ;;  %v5149_v5 = vpop.permute.xlu1 %2130  ;;  %v5151_v63 = vpop.permute.xlu0 %2128  ;;  %v2700_v55 = vsel %vm1200_vm3, %v2698_v44, %v2699_v39  ;;  %v1837_v11 = vadd.f32 %v5850_v30, %v1773_v46  ;;  %v5855_v35 = vld [vmem:[#allocation48_spill] sm:$0xff]  ;;  %v5861_v9 = vld [vmem:[#allocation54_spill] sm:$0xff] }
 0x260   :  { %v1997_v33 = vadd.f32 %v4978_v56, %v1933_v42  ;;  %v1996_v17 = vadd.f32 %v4980_v12, %v1932_v20  ;;  %v2722_v14 = vmul.f32 %v5162_v61, %v5091_v47  ;;  %v1836_v27 = vadd.f32 %v5851_v26, %v1772_v53 }
 0x261   :  { %v1935_v13 = vadd.f32 %v4898_v59, %v1871_v40  ;;  %v1934_v44 = vadd.f32 %v4900_v31, %v1870_v45  ;;  %v2066_v19 = vrot.slane %v4988_v62, 2  ;;  %v5852_v56 = vrot.slane %v5009_v10, 3  ;;  %2628 = vrot.lane.b32.xlu0 %v5073_v29, %s3124_s13 }
 0x262   :  { %v5853_v12 = vrot.slane %v4958_v57, 2  ;;  %v2078_v15 = vadd.f32 %v5020_v23, %v2030_v32  ;;  %v2703_v59 = vsel %vm1200_vm3, %v2701_v37, %v2702_v36  ;;  %v2731_v31 = vrot.slane %v5128_v4, 4  ;;  %v5857_v37 = vld [vmem:[#allocation52_spill] sm:$0xff] }
 0x263   :  { %2630 = vrot.lane.b32.xlu1 %v5852_v56, %s3124_s13  ;;  %v1901_v62 = vadd.f32 %v5854_v7, %v1837_v11  ;;  %v1900_v18 = vadd.f32 %v5855_v35, %v1836_v27  ;;  %v1999_v10 = vadd.f32 %v5004_v54, %v1935_v13  ;;  %v1998_v29 = vadd.f32 %v5006_v48, %v1934_v44  ;;  %v2135_v25 = vpop.permute.xlu1 %2134  ;;  %v2133_v57 = vpop.permute.xlu0 %2132  ;;  %v5200_v48 = vld [vmem:[%s5419_s2 + $0x38] sm:$0xff] }
 0x264   :  { %v2079_v41 = vadd.f32 %v5853_v12, %v2031_v34  ;;  %v5856_v38 = vrot.slane %v4890_v60, 2  ;;  %v2052_v0 = vadd.f32 %v4940_v6, %v1996_v17  ;;  %v5191_v50 = vadd.f32 %v2133_v57, %v2078_v15  ;;  %v5207_v6 = vld [vmem:[%s5419_s2 + $0x30] sm:$0xff] }
 0x265   :  { %2704 = vrot.lane.b32.xlu0 %v2700_v55, %s3121_s30  ;;  %v2730_v54 = vrot.slane %v2722_v14, 4  ;;  %v2725_v60 = vmul.f32 %v5200_v48, %v5091_v47  ;;  %v2724_v52 = vmul.f32 %v5207_v6, %v5091_v47  ;;  %v1965_v4 = vadd.f32 %v4919_v28, %v1901_v62  ;;  %v5860_v28 = vld [vmem:[#allocation53_spill] sm:$0xff] }
 0x266   :  { %v2053_v23 = vadd.f32 %v5856_v38, %v1997_v33  ;;  %v5189_v46 = vadd.f32 %v2135_v25, %v2079_v41  ;;  %v1964_v1 = vadd.f32 %v5857_v37, %v1900_v18  ;;  %v2108_v43 = vadd.f32 %v5099_v24, %v2052_v0  ;;  %v5233_v24 = vld [vmem:[%s5419_s2 + $0x18] sm:$0xff]  ;;  %s3061_s2 = sld [smem:[#allocation2 + $0x30]] }
 0x267   :  { %2706 = vrot.lane.b32.xlu1 %v2699_v39, %s3121_s30  ;;  %v2753_v39 = vstv %s5142_s27  ;;  %v5858_v20 = vrot.slane %v4913_v22, 2  ;;  %v2054_v32 = vadd.f32 %v4985_v58, %v1998_v29  ;;  %v5859_v8 = vrot.slane %v4966_v2, 2  ;;  %v2163_v51 = vpop.permute.xlu1 %2162  ;;  %v2161_v47 = vpop.permute.xlu0 %2160 }
 0x268   :  { %v2109_v42 = vadd.f32 %v5097_v3, %v2053_v23  ;;  %v2029_v40 = vadd.f32 %v5860_v28, %v1965_v4  ;;  %v2028_v45 = vadd.f32 %v5861_v9, %v1964_v1  ;;  %v2172_v55 = vadd.f32 %v2161_v47, %v2108_v43 }
 0x269   :  { %v2055_v34 = vadd.f32 %v5858_v20, %v1999_v10  ;;  %v2068_v53 = vsel %vm590_vm1, %v2066_v19, %v5859_v8  ;;  %2708 = vrot.lane.b32.xlu0 %v2703_v59, %s3121_s30  ;;  %v2734_v22 = vrot.slane %v2725_v60, 4  ;;  %v2733_v58 = vrot.slane %v2724_v52, 4 }
 0x26a   :  { %v2173_v3 = vadd.f32 %v2163_v51, %v2109_v42  ;;  %v2755_v30 = vmul.f32 %v5233_v24, %v2753_v39  ;;  %v2754_v11 = vmul.f32 %v5162_v61, %v2753_v39  ;;  %v2110_v17 = vadd.f32 %v5124_v21, %v2054_v32 }
 0x26b   :  { %2710 = vrot.lane.b32.xlu1 %v2702_v36, %s3121_s30  ;;  %v2111_v33 = vadd.f32 %v5122_v49, %v2055_v34  ;;  %v2732_v16 = vsel %vm1200_vm3, %v2730_v54, %v2731_v31  ;;  %v2167_v36 = vpop.permute.xlu1 %2166  ;;  %v2165_v14 = vpop.permute.xlu0 %2164  ;;  %v5862_v26 = vmov %v5859_v8  ;;  %v2076_v13 = vadd.f32 %v2068_v53, %v2028_v45 }
 0x26c   :  { %v2077_v27 = vadd.f32 %v5862_v26, %v2029_v40  ;;  %v2174_v19 = vadd.f32 %v2165_v14, %v2110_v17  ;;  %v2735_v56 = vsel %vm1200_vm3, %v2733_v58, %v2734_v22  ;;  %v2763_v49 = vrot.slane %v2755_v30, 4 }
 0x26d   :  { %v2175_v44 = vadd.f32 %v2167_v36, %v2111_v33  ;;  %2736 = vrot.lane.b32.xlu0 %v2732_v16, %s3121_s30  ;;  %v2762_v12 = vrot.slane %v2754_v11, 4  ;;  %v2140_v41 = vadd.f32 %v5151_v63, %v2076_v13  ;;  %v2757_v15 = vmul.f32 %v5200_v48, %v2753_v39 }
 0x26e   :  { %v2141_v21 = vadd.f32 %v5149_v5, %v2077_v27  ;;  %v2756_v2 = vmul.f32 %v5207_v6, %v2753_v39  ;;  %v2785_v62 = vstv %s5222_s10  ;;  %v2817_v4 = vstv %s3061_s2 }
 0x26f   :  { %2738 = vrot.lane.b32.xlu1 %v2731_v31, %s3121_s30  ;;  %v2195_v59 = vpop.permute.xlu1 %2194  ;;  %v2193_v7 = vpop.permute.xlu0 %2192  ;;  %v2764_v18 = vsel %vm1200_vm3, %v2762_v12, %v2763_v49  ;;  %v2766_v10 = vrot.slane %v2757_v15, 4  ;;  %v2787_v63 = vmul.f32 %v5233_v24, %v2785_v62  ;;  %v2786_v29 = vmul.f32 %v5162_v61, %v2785_v62 }
 0x270   :  { %v2205_v35 = vadd.f32 %v2195_v59, %v2141_v21  ;;  %v2204_v31 = vadd.f32 %v2193_v7, %v2140_v41  ;;  %v2765_v5 = vrot.slane %v2756_v2, 4  ;;  %v2789_v0 = vmul.f32 %v5200_v48, %v2785_v62 }
 0x271   :  { %2740 = vrot.lane.b32.xlu0 %v2735_v56, %s3121_s30  ;;  %v2788_v54 = vmul.f32 %v5207_v6, %v2785_v62  ;;  %v2795_v52 = vrot.slane %v2787_v63, 4  ;;  %v2794_v39 = vrot.slane %v2786_v29, 4  ;;  %v2819_v20 = vmul.f32 %v5233_v24, %v2817_v4 }
 0x272   :  { %v2767_v60 = vsel %vm1200_vm3, %v2765_v5, %v2766_v10  ;;  %v2818_v32 = vmul.f32 %v5162_v61, %v2817_v4  ;;  %v2821_v45 = vmul.f32 %v5200_v48, %v2817_v4  ;;  %v2881_v2 = vstv %s3063_s14 }
 0x273   :  { %2742 = vrot.lane.b32.xlu1 %v2734_v22, %s3121_s30  ;;  %v2199_v25 = vpop.permute.xlu1 %2198  ;;  %v2197_v57 = vpop.permute.xlu0 %2196  ;;  %s3062_s30 = sld [smem:[#allocation2 + $0x62]]  ;;  %v2797_v43 = vrot.slane %v2788_v54, 4  ;;  %v2796_v34 = vsel %vm1200_vm3, %v2794_v39, %v2795_v52  ;;  %v2827_v40 = vrot.slane %v2819_v20, 4  ;;  %v2337_v62 = vstv %s3045_s15 }
 0x274   :  { %v2207_v38 = vadd.f32 %v2199_v25, %v5189_v46  ;;  %v2206_v23 = vadd.f32 %v2197_v57, %v5191_v50  ;;  %v2798_v50 = vrot.slane %v2789_v0, 4  ;;  %v2826_v9 = vrot.slane %v2818_v32, 4 }
 0x275   :  { %2768 = vrot.lane.b32.xlu0 %v2764_v18, %s3122_s6  ;;  %v2830_v36 = vrot.slane %v2821_v45, 4  ;;  %v2882_v5 = vmul.f32 %v5162_v61, %v2881_v2  ;;  %v2339_v25 = vmul.f32 %v5233_v24, %v2337_v62  ;;  %v2338_v57 = vmul.f32 %v5162_v61, %v2337_v62 }
 0x276   :  { %v2799_v28 = vsel %vm1200_vm3, %v2797_v43, %v2798_v50  ;;  %v2828_v16 = vsel %vm1200_vm3, %v2826_v9, %v2827_v40  ;;  %v2340_v54 = vmul.f32 %v5207_v6, %v2337_v62 }
 0x277   :  { %2770 = vrot.lane.b32.xlu1 %v2763_v49, %s3122_s6  ;;  %v2227_v37 = vpop.permute.xlu1 %2226  ;;  %v2225_v1 = vpop.permute.xlu0 %2224  ;;  %v2346_v43 = vrot.slane %v2338_v57, 3 }
 0x278   :  { %v2237_v42 = vadd.f32 %v2227_v37, %v2173_v3  ;;  %v2236_v46 = vadd.f32 %v2225_v1, %v2172_v55  ;;  %v2820_v3 = vmul.f32 %v5207_v6, %v2817_v4  ;;  %v2890_v37 = vrot.slane %v2882_v5, 4 }
 0x279   :  { %2772 = vrot.lane.b32.xlu0 %v2767_v60, %s3122_s6  ;;  %v2849_v55 = vstv %s3062_s30  ;;  %v2885_v60 = vmul.f32 %v5200_v48, %v2881_v2 }
 0x27a   :  { %v2851_v33 = vmul.f32 %v5233_v24, %v2849_v55  ;;  %v2850_v17 = vmul.f32 %v5162_v61, %v2849_v55  ;;  %v2829_v14 = vrot.slane %v2820_v3, 4  ;;  %v2853_v12 = vmul.f32 %v5200_v48, %v2849_v55 }
 0x27b   :  { %2774 = vrot.lane.b32.xlu1 %v2766_v10, %s3122_s6  ;;  %v2231_v8 = vpop.permute.xlu1 %2230  ;;  %v2229_v53 = vpop.permute.xlu0 %2228  ;;  %v2852_v21 = vmul.f32 %v5207_v6, %v2849_v55  ;;  %v2883_v10 = vmul.f32 %v5233_v24, %v2881_v2 }
 0x27c   :  { %v2239_v51 = vadd.f32 %v2231_v8, %v2175_v44  ;;  %v2238_v47 = vadd.f32 %v2229_v53, %v2174_v19  ;;  %v2859_v19 = vrot.slane %v2851_v33, 4  ;;  %v2858_v56 = vrot.slane %v2850_v17, 4 }
 0x27d   :  { %2800 = vrot.lane.b32.xlu0 %v2796_v34, %s3122_s6  ;;  %v2831_v49 = vsel %vm1200_vm3, %v2829_v14, %v2830_v36  ;;  %v2861_v18 = vrot.slane %v2852_v21, 4  ;;  %v2891_v4 = vrot.slane %v2883_v10, 4  ;;  %v2349_v8 = vrot.slane %v2340_v54, 3 }
 0x27e   :  { %v2361_v53 = vstv %s5282_s16 }
 0x27f   :  { %2802 = vrot.lane.b32.xlu1 %v2795_v52, %s3122_s6  ;;  %v2259_v22 = vpop.permute.xlu1 %2258  ;;  %v2257_v58 = vpop.permute.xlu0 %2256  ;;  %v2884_v52 = vmul.f32 %v5207_v6, %v2881_v2  ;;  %v2892_v9 = vsel %vm1200_vm3, %v2890_v37, %v2891_v4  ;;  %v2364_v21 = vmul.f32 %v5207_v6, %v2361_v53 }
 0x280   :  { %v2269_v30 = vadd.f32 %v2259_v22, %v2205_v35  ;;  %v2268_v11 = vadd.f32 %v2257_v58, %v2204_v31  ;;  %v2860_v35 = vsel %vm1200_vm3, %v2858_v56, %v2859_v19  ;;  %v2862_v31 = vrot.slane %v2853_v12, 4 }
 0x281   :  { %2804 = vrot.lane.b32.xlu0 %v2799_v28, %s3122_s6  ;;  %v2363_v22 = vmul.f32 %v5233_v24, %v2361_v53  ;;  %v2362_v58 = vmul.f32 %v5162_v61, %v2361_v53  ;;  %v2365_v12 = vmul.f32 %v5200_v48, %v2361_v53 }
 0x282   :  { %v2863_v39 = vsel %vm1200_vm3, %v2861_v18, %v2862_v31 }
 0x283   :  { %2806 = vrot.lane.b32.xlu1 %v2798_v50, %s3122_s6  ;;  %v2263_v26 = vpop.permute.xlu1 %2262  ;;  %v2261_v27 = vpop.permute.xlu0 %2260  ;;  %s3064_s6 = sld [smem:[#allocation2 + $0x63]]  ;;  %v2347_v50 = vrot.slane %v2339_v25, 3  ;;  %v2374_v5 = vrot.slane %v2365_v12, 3 }
 0x284   :  { %v2271_v13 = vadd.f32 %v2263_v26, %v2207_v38  ;;  %v2270_v44 = vadd.f32 %v2261_v27, %v2206_v23  ;;  %v2341_v38 = vmul.f32 %v5200_v48, %v2337_v62 }
 0x285   :  { %2832 = vrot.lane.b32.xlu0 %v2828_v16, %s3123_s9  ;;  %v2348_v55 = vsel %vm895_vm2, %v2346_v43, %v2347_v50 }
 0x286   :  { %v2350_v20 = vrot.slane %v2341_v38, 3 }
 0x287   :  { %2834 = vrot.lane.b32.xlu1 %v2827_v40, %s3123_s9  ;;  %v2291_v41 = vpop.permute.xlu1 %2290  ;;  %v2289_v15 = vpop.permute.xlu0 %2288 }
 0x288   :  { %v2301_v59 = vadd.f32 %v2291_v41, %v2237_v42  ;;  %v2300_v7 = vadd.f32 %v2289_v15, %v2236_v46  ;;  %v2351_v17 = vsel %vm895_vm2, %v2349_v8, %v2350_v20 }
 0x289   :  { %2836 = vrot.lane.b32.xlu0 %v2831_v49, %s3123_s9  ;;  %v2913_v1 = vstv %s3064_s6 }
 0x28a   :  { %v2915_v28 = vmul.f32 %v5233_v24, %v2913_v1  ;;  %v2914_v40 = vmul.f32 %v5162_v61, %v2913_v1  ;;  %v2357_v14 = vadd.f32 %v2347_v50, %v2301_v59  ;;  %v2356_v26 = vadd.f32 %v2348_v55, %v2300_v7 }
 0x28b   :  { %2838 = vrot.lane.b32.xlu1 %v2830_v36, %s3123_s9  ;;  %v2295_v63 = vpop.permute.xlu1 %2294  ;;  %v2293_v29 = vpop.permute.xlu0 %2292  ;;  %v2917_v27 = vmul.f32 %v5200_v48, %v2913_v1 }
 0x28c   :  { %v2303_v23 = vadd.f32 %v2295_v63, %v2239_v51  ;;  %v2302_v0 = vadd.f32 %v2293_v29, %v2238_v47  ;;  %v2894_v51 = vrot.slane %v2885_v60, 4  ;;  %v2893_v47 = vrot.slane %v2884_v52, 4 }
 0x28d   :  { %2864 = vrot.lane.b32.xlu0 %v2860_v35, %s3123_s9  ;;  %v2923_v16 = vrot.slane %v2915_v28, 4  ;;  %v2922_v36 = vrot.slane %v2914_v40, 4  ;;  %v2926_v62 = vrot.slane %v2917_v27, 4  ;;  %v2373_v63 = vrot.slane %v2364_v21, 3 }
 0x28e   :  { %v2895_v33 = vsel %vm1200_vm3, %v2893_v47, %v2894_v51  ;;  %v2359_v59 = vadd.f32 %v2350_v20, %v2303_v23  ;;  %v2358_v7 = vadd.f32 %v2351_v17, %v2302_v0 }
 0x28f   :  { %2866 = vrot.lane.b32.xlu1 %v2859_v19, %s3123_s9  ;;  %v2323_v42 = vpop.permute.xlu1 %2322  ;;  %v2321_v46 = vpop.permute.xlu0 %2320  ;;  %v2916_v19 = vmul.f32 %v5207_v6, %v2913_v1  ;;  %v2924_v2 = vsel %vm1200_vm3, %v2922_v36, %v2923_v16  ;;  %v2375_v60 = vsel %vm895_vm2, %v2373_v63, %v2374_v5 }
 0x290   :  { %v2333_v34 = vadd.f32 %v2323_v42, %v2269_v30  ;;  %v2332_v32 = vadd.f32 %v2321_v46, %v2268_v11 }
 0x291   :  { %2868 = vrot.lane.b32.xlu0 %v2863_v39, %s3123_s9  ;;  %v2925_v35 = vrot.slane %v2916_v19, 4 }
 0x293   :  { %2870 = vrot.lane.b32.xlu1 %v2862_v31, %s3123_s9  ;;  %v2327_v45 = vpop.permute.xlu1 %2326  ;;  %v2325_v3 = vpop.permute.xlu0 %2324  ;;  %v2927_v54 = vsel %vm1200_vm3, %v2925_v35, %v2926_v62  ;;  %s3055_s9 = sld [smem:[#allocation2 + $0x2d]] }
 0x294   :  { %v2335_v30 = vadd.f32 %v2327_v45, %v2271_v13  ;;  %v2334_v11 = vadd.f32 %v2325_v3, %v2270_v44  ;;  %v2371_v13 = vrot.slane %v2363_v22, 3  ;;  %v2370_v44 = vrot.slane %v2362_v58, 3 }
 0x295   :  { %2896 = vrot.lane.b32.xlu0 %v2892_v9, %s3124_s13 }
 0x296   :  { %v2372_v10 = vsel %vm895_vm2, %v2370_v44, %v2371_v13  ;;  %v2381_v57 = vadd.f32 %v2371_v13, %v2333_v34  ;;  %v2382_v37 = vadd.f32 %v2375_v60, %v2334_v11 }
 0x297   :  { %2898 = vrot.lane.b32.xlu1 %v2891_v4, %s3124_s13  ;;  %v2403_v56 = vpop.permute.xlu1 %2402  ;;  %v2401_v49 = vpop.permute.xlu0 %2400  ;;  %v2380_v38 = vadd.f32 %v2372_v10, %v2332_v32  ;;  %v2383_v4 = vadd.f32 %v2374_v5, %v2335_v30 }
 0x298   :  { %v2413_v41 = vadd.f32 %v2403_v56, %v2357_v14  ;;  %v2412_v15 = vadd.f32 %v2401_v49, %v2356_v26 }
 0x299   :  { %2900 = vrot.lane.b32.xlu0 %v2895_v33, %s3124_s13 }
 0x29b   :  { %2902 = vrot.lane.b32.xlu1 %v2894_v51, %s3124_s13  ;;  %v2407_v31 = vpop.permute.xlu1 %2406  ;;  %v2405_v18 = vpop.permute.xlu0 %2404 }
 0x29c   :  { %v2415_v29 = vadd.f32 %v2407_v31, %v2359_v59  ;;  %v2414_v25 = vadd.f32 %v2405_v18, %v2358_v7 }
 0x29d   :  { %2928 = vrot.lane.b32.xlu0 %v2924_v2, %s3124_s13 }
 0x29f   :  { %2930 = vrot.lane.b32.xlu1 %v2923_v16, %s3124_s13  ;;  %v2435_v23 = vpop.permute.xlu1 %2434  ;;  %v2433_v0 = vpop.permute.xlu0 %2432 }
 0x2a0   :  { %v2445_v52 = vadd.f32 %v2435_v23, %v2381_v57  ;;  %v2444_v39 = vadd.f32 %v2433_v0, %v2380_v38 }
 0x2a1   :  { %2932 = vrot.lane.b32.xlu0 %v2927_v54, %s3124_s13 }
 0x2a3   :  { %2934 = vrot.lane.b32.xlu1 %v2926_v62, %s3124_s13  ;;  %v2439_v1 = vpop.permute.xlu1 %2438  ;;  %v2437_v42 = vpop.permute.xlu0 %2436  ;;  %s3056_s13 = sld [smem:[#allocation2 + $0x5f]] }
 0x2a4   :  { %v2447_v46 = vadd.f32 %v2439_v1, %v2383_v4  ;;  %v2446_v50 = vadd.f32 %v2437_v42, %v2382_v37  ;;  %v2641_v4 = vstv %s3055_s9 }
 0x2a5   :  { %v2643_v42 = vmul.f32 %v5233_v24, %v2641_v4 }
 0x2a7   :  { %v2467_v43 = vpop.permute.xlu1 %2466  ;;  %v2465_v20 = vpop.permute.xlu0 %2464 }
 0x2a8   :  { %v2477_v34 = vadd.f32 %v2467_v43, %v2413_v41  ;;  %v2476_v32 = vadd.f32 %v2465_v20, %v2412_v15  ;;  %v2651_v20 = vrot.slane %v2643_v42, 4 }
 0x2ab   :  { %v2471_v8 = vpop.permute.xlu1 %2470  ;;  %v2469_v53 = vpop.permute.xlu0 %2468 }
 0x2ac   :  { %v2479_v51 = vadd.f32 %v2471_v8, %v2415_v29  ;;  %v2478_v47 = vadd.f32 %v2469_v53, %v2414_v25  ;;  %v2645_v8 = vmul.f32 %v5200_v48, %v2641_v4  ;;  %v2644_v53 = vmul.f32 %v5207_v6, %v2641_v4 }
 0x2af   :  { %v2499_v28 = vpop.permute.xlu1 %2498  ;;  %v2497_v40 = vpop.permute.xlu0 %2496 }
 0x2b0   :  { %v2509_v9 = vadd.f32 %v2499_v28, %v2445_v52  ;;  %v2508_v45 = vadd.f32 %v2497_v40, %v2444_v39 }
 0x2b3   :  { %v2503_v3 = vpop.permute.xlu1 %2502  ;;  %v2501_v55 = vpop.permute.xlu0 %2500 }
 0x2b4   :  { %v2511_v22 = vadd.f32 %v2503_v3, %v2447_v46  ;;  %v2510_v58 = vadd.f32 %v2501_v55, %v2446_v50  ;;  %v2642_v46 = vmul.f32 %v5162_v61, %v2641_v4  ;;  %v2654_v55 = vrot.slane %v2645_v8, 4 }
 0x2b7   :  { %v2531_v30 = vpop.permute.xlu1 %2530  ;;  %v2529_v11 = vpop.permute.xlu0 %2528 }
 0x2b8   :  { %v2541_v33 = vadd.f32 %v2531_v30, %v2477_v34  ;;  %v2540_v17 = vadd.f32 %v2529_v11, %v2476_v32  ;;  %v2650_v34 = vrot.slane %v2642_v46, 4  ;;  %v2665_v32 = vstv %s3056_s13 }
 0x2b9   :  { %v2668_v30 = vmul.f32 %v5207_v6, %v2665_v32 }
 0x2ba   :  { %v2652_v3 = vsel %vm1200_vm3, %v2650_v34, %v2651_v20 }
 0x2bb   :  { %v2535_v16 = vpop.permute.xlu1 %2534  ;;  %v2533_v36 = vpop.permute.xlu0 %2532 }
 0x2bc   :  { %v2543_v14 = vadd.f32 %v2535_v16, %v2479_v51  ;;  %v2542_v26 = vadd.f32 %v2533_v36, %v2478_v47  ;;  %v2667_v51 = vmul.f32 %v5233_v24, %v2665_v32  ;;  %v2666_v47 = vmul.f32 %v5162_v61, %v2665_v32 }
 0x2be   :  { %v2675_v11 = vrot.slane %v2667_v51, 4  ;;  %v2674_v16 = vrot.slane %v2666_v47, 4 }
 0x2bf   :  { %v2563_v27 = vpop.permute.xlu1 %2562  ;;  %v2561_v19 = vpop.permute.xlu0 %2560 }
 0x2c0   :  { %v5325_v56 = vadd.f32 %v2563_v27, %v2509_v9  ;;  %v5327_v49 = vadd.f32 %v2561_v19, %v2508_v45  ;;  %v2676_v6 = vsel %vm1200_vm3, %v2674_v16, %v2675_v11 }
 0x2c3   :  { %v2567_v13 = vpop.permute.xlu1 %2566  ;;  %v2565_v44 = vpop.permute.xlu0 %2564 }
 0x2c4   :  { %v5329_v12 = vadd.f32 %v2567_v13, %v2511_v22  ;;  %v5331_v21 = vadd.f32 %v2565_v44, %v2510_v58  ;;  %v2653_v22 = vrot.slane %v2644_v53, 4  ;;  %v2669_v58 = vmul.f32 %v5200_v48, %v2665_v32 }
 0x2c6   :  { %v2655_v44 = vsel %vm1200_vm3, %v2653_v22, %v2654_v55 }
 0x2c7   :  { %v2595_v41 = vpop.permute.xlu1 %2594  ;;  %v2593_v15 = vpop.permute.xlu0 %2592 }
 0x2c8   :  { %v2605_v9 = vadd.f32 %v2595_v41, %v2541_v33  ;;  %v2604_v45 = vadd.f32 %v2593_v15, %v2540_v17  ;;  %v2678_v33 = vrot.slane %v2669_v58, 4  ;;  %v2677_v17 = vrot.slane %v2668_v30, 4 }
 0x2ca   :  { %v2661_v13 = vadd.f32 %v2651_v20, %v2605_v9  ;;  %v2660_v61 = vadd.f32 %v2652_v3, %v2604_v45 }
 0x2cb   :  { %v2599_v2 = vpop.permute.xlu1 %2598  ;;  %v2597_v59 = vpop.permute.xlu0 %2596 }
 0x2cc   :  { %v2607_v19 = vadd.f32 %v2599_v2, %v2543_v14  ;;  %v2606_v24 = vadd.f32 %v2597_v59, %v2542_v26  ;;  %v2679_v2 = vsel %vm1200_vm3, %v2677_v17, %v2678_v33 }
 0x2ce   :  { %v2663_v34 = vadd.f32 %v2654_v55, %v2607_v19  ;;  %v2662_v32 = vadd.f32 %v2655_v44, %v2606_v24 }
 0x2cf   :  { %v2625_v62 = vpop.permute.xlu0 %2624 }
 0x2d0   :  { %v2627_v7 = vpop.permute.xlu1 %2626  ;;  %v2636_v48 = vadd.f32 %v2625_v62, %v5327_v49 }
 0x2d1   :  { %v2637_v4 = vadd.f32 %v2627_v7, %v5325_v56 }
 0x2d2   :  { %v2684_v62 = vadd.f32 %v2676_v6, %v2636_v48 }
 0x2d3   :  { %v5335_v31 = vpop.permute.xlu0 %2628  ;;  %v2685_v7 = vadd.f32 %v2675_v11, %v2637_v4 }
 0x2d4   :  { %v2638_v49 = vadd.f32 %v5335_v31, %v5331_v21 }
 0x2d5   :  { %v5333_v35 = vpop.permute.xlu1 %2630 }
 0x2d6   :  { %v2639_v56 = vadd.f32 %v5333_v35, %v5329_v12  ;;  %v2686_v21 = vadd.f32 %v2679_v2, %v2638_v49 }
 0x2d7   :  { %v2705_v10 = vpop.permute.xlu0 %2704 }
 0x2d8   :  { %v2716_v15 = vadd.f32 %v2705_v10, %v2660_v61  ;;  %v2687_v12 = vadd.f32 %v2678_v33, %v2639_v56 }
 0x2d9   :  { %v2707_v18 = vpop.permute.xlu1 %2706 }
 0x2da   :  { %v2717_v41 = vadd.f32 %v2707_v18, %v2661_v13 }
 0x2db   :  { %v2709_v63 = vpop.permute.xlu0 %2708 }
 0x2dc   :  { %v2718_v20 = vadd.f32 %v2709_v63, %v2662_v32 }
 0x2dd   :  { %v2711_v5 = vpop.permute.xlu1 %2710 }
 0x2de   :  { %v2719_v59 = vadd.f32 %v2711_v5, %v2663_v34 }
 0x2df   :  { %v5339_v25 = vpop.permute.xlu0 %2736 }
 0x2e0   :  { %v2748_v63 = vadd.f32 %v5339_v25, %v2684_v62 }
 0x2e1   :  { %v5337_v29 = vpop.permute.xlu1 %2738 }
 0x2e2   :  { %v2749_v5 = vadd.f32 %v5337_v29, %v2685_v7 }
 0x2e3   :  { %v5343_v38 = vpop.permute.xlu0 %2740 }
 0x2e5   :  { %v5341_v57 = vpop.permute.xlu1 %2742 }
 0x2e7   :  { %v2769_v23 = vpop.permute.xlu0 %2768 }
 0x2e8   :  { %v2780_v26 = vadd.f32 %v2769_v23, %v2716_v15 }
 0x2e9   :  { %v2771_v54 = vpop.permute.xlu1 %2770 }
 0x2ea   :  { %v2781_v14 = vadd.f32 %v2771_v54, %v2717_v41 }
 0x2eb   :  { %v5347_v60 = vpop.permute.xlu0 %2772 }
 0x2ec   :  { %v2782_v23 = vadd.f32 %v5347_v60, %v2718_v20 }
 0x2ed   :  { %v5345_v0 = vpop.permute.xlu1 %2774 }
 0x2ee   :  { %v2783_v54 = vadd.f32 %v5345_v0, %v2719_v59 }
 0x2ef   :  { %v5351_v39 = vpop.permute.xlu0 %2800 }
 0x2f0   :  { %v2812_v25 = vadd.f32 %v5351_v39, %v2748_v63 }
 0x2f1   :  { %v5349_v52 = vpop.permute.xlu1 %2802 }
 0x2f2   :  { %v2813_v29 = vadd.f32 %v5349_v52, %v2749_v5 }
 0x2f3   :  { %v5355_v1 = vpop.permute.xlu0 %2804 }
 0x2f5   :  { %v5353_v37 = vpop.permute.xlu1 %2806 }
 0x2f7   :  { %v2833_v43 = vpop.permute.xlu0 %2832 }
 0x2f8   :  { %v2844_v10 = vadd.f32 %v2833_v43, %v2780_v26 }
 0x2f9   :  { %v2835_v50 = vpop.permute.xlu1 %2834 }
 0x2fa   :  { %v2845_v18 = vadd.f32 %v2835_v50, %v2781_v14 }
 0x2fb   :  { %v2837_v40 = vpop.permute.xlu0 %2836 }
 0x2fc   :  { %v2846_v43 = vadd.f32 %v2837_v40, %v2782_v23  ;;  %v2750_v40 = vadd.f32 %v5343_v38, %v2686_v21 }
 0x2fd   :  { %v2839_v28 = vpop.permute.xlu1 %2838 }
 0x2fe   :  { %v2847_v50 = vadd.f32 %v2839_v28, %v2783_v54  ;;  %v2751_v28 = vadd.f32 %v5341_v57, %v2687_v12  ;;  %v2814_v57 = vadd.f32 %v5355_v1, %v2750_v40 }
 0x2ff   :  { %v2865_v27 = vpop.permute.xlu0 %2864 }
 0x300   :  { %v2876_v45 = vadd.f32 %v2865_v27, %v2812_v25  ;;  %v2815_v3 = vadd.f32 %v5353_v37, %v2751_v28 }
 0x301   :  { %v2867_v36 = vpop.permute.xlu1 %2866 }
 0x302   :  { %v2877_v9 = vadd.f32 %v2867_v36, %v2813_v29 }
 0x303   :  { %v2869_v46 = vpop.permute.xlu0 %2868 }
 0x304   :  { %v2878_v58 = vadd.f32 %v2869_v46, %v2814_v57 }
 0x305   :  { %v2871_v42 = vpop.permute.xlu1 %2870 }
 0x306   :  { %v2879_v22 = vadd.f32 %v2871_v42, %v2815_v3 }
 0x307   :  { %v2897_v53 = vpop.permute.xlu0 %2896 }
 0x308   :  { %v2908_v47 = vadd.f32 %v2897_v53, %v2844_v10 }
 0x309   :  { %v2899_v8 = vpop.permute.xlu1 %2898 }
 0x30a   :  { %v2909_v51 = vadd.f32 %v2899_v8, %v2845_v18  ;;  %2945 = vst.msk [vmem:[%s5420_s3] sm:$0xff] %vm2944_vm5, %v2908_v47 }
 0x30b   :  { %v2901_v31 = vpop.permute.xlu0 %2900 }
 0x30c   :  { %2947 = vst.msk [vmem:[%s5420_s3 + $0x8] sm:$0xf] %vm2946_vm4, %v2909_v51  ;;  %v2910_v60 = vadd.f32 %v2901_v31, %v2846_v43 }
 0x30d   :  { %v2903_v35 = vpop.permute.xlu1 %2902 }
 0x30e   :  { %v2911_v0 = vadd.f32 %v2903_v35, %v2847_v50  ;;  %2948 = vst.msk [vmem:[%s5420_s3 + $0x20] sm:$0xff] %vm2944_vm5, %v2910_v60 }
 0x30f   :  { %v2929_v39 = vpop.permute.xlu0 %2928 }
 0x310   :  { %2949 = vst.msk [vmem:[%s5420_s3 + $0x28] sm:$0xf] %vm2946_vm4, %v2911_v0  ;;  %v2940_v38 = vadd.f32 %v2929_v39, %v2876_v45 }
 0x311   :  { %v2931_v52 = vpop.permute.xlu1 %2930 }
 0x312   :  { %v2941_v55 = vadd.f32 %v2931_v52, %v2877_v9  ;;  %3065 = vst.msk [vmem:[%s5420_s3 + $0x10] sm:$0xff] %vm2944_vm5, %v2940_v38 }
 0x313   :  { %v2933_v11 = vpop.permute.xlu0 %2932 }
 0x314   :  { %3066 = vst.msk [vmem:[%s5420_s3 + $0x18] sm:$0xf] %vm2946_vm4, %v2941_v55  ;;  %v2942_v37 = vadd.f32 %v2933_v11, %v2878_v58 }
 0x315   :  { %v2935_v30 = vpop.permute.xlu1 %2934 }
 0x316   :  { %v2943_v16 = vadd.f32 %v2935_v30, %v2879_v22  ;;  %3067 = vst.msk [vmem:[%s5420_s3 + $0x30] sm:$0xff] %vm2944_vm5, %v2942_v37 }
 0x318   :  { %3068 = vst.msk [vmem:[%s5420_s3 + $0x38] sm:$0xf] %vm2946_vm4, %v2943_v16 }
 0x319   :  { %2959 = vsyncpa [#allocation3], 1 }
 0x31a   :  { %2960 = vsyncpa [#allocation5], 1 }

</bundles_post_ra>
